<compile_context>
chip_gen: v5e
topology: v5e:2x2
jax: 0.10.0
libtpu: 0.0.40
codegen_flags: <defaults>
</compile_context>

<pallas_src>
import jax
import jax.numpy as jnp
from jax import lax
from jax.experimental import pallas as pl
from jax.experimental.pallas import tpu as pltpu  # noqa: F401  (TPU params if gridded later)

EPS = 1e-5


def bn_add_relu_conv_kernel(x_bn_ref, x_add_ref, gb_ref, wt_ref, o_ref):
    # x_bn_ref, x_add_ref: (Cin, M) f32
    # gb_ref: (Cin, 2) f32   column 0 = gamma, column 1 = beta
    # wt_ref: (Cin, Cout) bf16  (conv weight pre-transposed in the wrapper)
    # o_ref : (M, Cout) f32  (lane-dense output)
    x = x_bn_ref[...]
    m = x.shape[1]
    inv_m = 1.0 / m

    # Training-mode BatchNorm2d statistics, two-pass (numerically robust) form.
    mean = jnp.sum(x, axis=1, keepdims=True) * inv_m          # (C, 1)
    d = x - mean                                              # (C, M)
    var = jnp.sum(d * d, axis=1, keepdims=True) * inv_m       # (C, 1), biased

    gamma = gb_ref[:, 0:1]                                    # (C, 1)
    beta = gb_ref[:, 1:2]                                     # (C, 1)
    scale = gamma * lax.rsqrt(var + EPS)                      # (C, 1)

    # BN + residual add + ReLU, all in f32 (v5e-friendly elementwise path).
    y = jnp.maximum(d * scale + beta + x_add_ref[...], 0.0)   # (C, M)

    # 1x1 conv: contract channel dim of y with dim 0 of W^T -> (M, Cout).
    # Cout = 400 lands on the MXU output / lane dimension (lane-dense store).
    o_ref[...] = lax.dot_general(
        y.astype(jnp.bfloat16),
        wt_ref[...],
        dimension_numbers=(((0,), (0,)), ((), ())),
        preferred_element_type=jnp.float32,
    )


@jax.jit
def bn_add_relu_conv(x138, x131, gamma, beta, conv_w):
    """x138, x131: NCHW f32.  gamma/beta: (C,).  conv_w: (Cout, Cin) 1x1-conv weight."""
    n, c, h, w = x138.shape
    m = n * h * w
    cout, cin = conv_w.shape
    assert cin == c

    if n == 1:
        # NCHW with N==1: (C, H*W) is a free view — no transpose needed.
        x_bn = x138.reshape(c, m)
        x_add = x131.reshape(c, m)
    else:
        x_bn = jnp.transpose(x138, (1, 0, 2, 3)).reshape(c, m)
        x_add = jnp.transpose(x131, (1, 0, 2, 3)).reshape(c, m)

    gb = jnp.stack([gamma, beta], axis=1)          # (C, 2) packed BN affine params
    w_t = conv_w.T.astype(jnp.bfloat16)            # (Cin, Cout) bf16, half-size DMA

    cost = pl.CostEstimate(
        flops=2 * m * c * cout + 10 * c * m,
        transcendentals=c,
        bytes_accessed=2 * c * m * 4 + c * cout * 2 + c * 2 * 4 + m * cout * 4,
    )

    out_mc = pl.pallas_call(
        bn_add_relu_conv_kernel,
        out_shape=jax.ShapeDtypeStruct((m, cout), jnp.float32),
        in_specs=[
            pl.BlockSpec((c, m), lambda: (0, 0)),
            pl.BlockSpec((c, m), lambda: (0, 0)),
            pl.BlockSpec((c, 2), lambda: (0, 0)),
            pl.BlockSpec((c, cout), lambda: (0, 0)),
        ],
        out_specs=pl.BlockSpec((m, cout), lambda: (0, 0)),
        cost_estimate=cost,
    )(x_bn, x_add, gb, w_t)

    # (M, Cout) -> NCHW: one tiny (77 KiB) transpose.
    if n == 1:
        return out_mc.T.reshape(1, cout, h, w)
    return jnp.transpose(out_mc.reshape(n, h, w, cout), (0, 3, 1, 2))


if __name__ == "__main__":
    key = jax.random.PRNGKey(0)
    k1, k2, k3, k4, k5 = jax.random.split(key, 5)

    N, C, H, W = 1, 400, 7, 7
    x138 = jax.random.normal(k1, (N, C, H, W), dtype=jnp.float32)
    x131 = jax.random.normal(k2, (N, C, H, W), dtype=jnp.float32)

    # Deterministic synthetic parameters (shapes match the PyTorch module).
    gamma = 1.0 + 0.1 * jax.random.normal(k3, (C,), dtype=jnp.float32)   # BN weight
    beta = 0.1 * jax.random.normal(k4, (C,), dtype=jnp.float32)          # BN bias
    conv_w = 0.05 * jax.random.normal(k5, (C, C), dtype=jnp.float32)     # Conv2d 1x1, no bias

    out = bn_add_relu_conv(x138, x131, gamma, beta, conv_w)
    jax.block_until_ready(out)
    assert out.shape == (N, C, H, W)

    # Pure-JAX reference (f32 matmul); loose tolerance absorbs the bf16 MXU operands.
    mean = jnp.mean(x138, axis=(0, 2, 3), keepdims=True)
    var = jnp.mean((x138 - mean) ** 2, axis=(0, 2, 3), keepdims=True)
    xn = (x138 - mean) * jax.lax.rsqrt(var + EPS) * gamma.reshape(1, C, 1, 1) + beta.reshape(1, C, 1, 1)
    y_ref = jnp.maximum(x131 + xn, 0.0)
    ref = jnp.einsum("oc,nchw->nohw", conv_w, y_ref)
    assert jnp.allclose(out, ref, atol=5e-2, rtol=5e-2), float(jnp.max(jnp.abs(out - ref)))

    # TODO(synk): running_mean/running_var buffer updates (momentum=0.1) of the
    # PyTorch BatchNorm2d are a training-mode side effect and are not produced here.
    print("KERNEL_OK")
</pallas_src>

<mosaic_0001>
module attributes {stable_mosaic.version = 11 : i64} {
  func.func @bn_add_relu_conv_kernel(%arg0: memref<400x49xf32, #tpu.memory_space<vmem>>, %arg1: memref<400x49xf32, #tpu.memory_space<vmem>>, %arg2: memref<400x2xf32, #tpu.memory_space<vmem>>, %arg3: memref<400x400xbf16, #tpu.memory_space<vmem>>, %arg4: memref<49x400xf32, #tpu.memory_space<vmem>>) attributes {dimension_semantics = [], scalar_prefetch = 0 : i64, scratch_operands = 0 : i64, tpu.core_type = #tpu.core_type<tc>} {
    %c0 = arith.constant 0 : index
    %c0_0 = arith.constant 0 : index
    %0 = vector.load %arg0[%c0, %c0_0] : memref<400x49xf32, #tpu.memory_space<vmem>>, vector<400x49xf32>
    %cst = arith.constant dense<0.000000e+00> : vector<400xf32>
    %1 = vector.multi_reduction <add>, %0, %cst [1] : vector<400x49xf32> to vector<400xf32>
    %2 = vector.shape_cast %1 : vector<400xf32> to vector<400x1xf32>
    %cst_1 = arith.constant 0.0204081628 : f32
    %3 = vector.broadcast %cst_1 : f32 to vector<400x1xf32>
    %4 = arith.mulf %2, %3 : vector<400x1xf32>
    %5 = vector.broadcast %4 : vector<400x1xf32> to vector<400x49xf32>
    %6 = arith.subf %0, %5 : vector<400x49xf32>
    %7 = arith.mulf %6, %6 : vector<400x49xf32>
    %cst_2 = arith.constant dense<0.000000e+00> : vector<400xf32>
    %8 = vector.multi_reduction <add>, %7, %cst_2 [1] : vector<400x49xf32> to vector<400xf32>
    %9 = vector.shape_cast %8 : vector<400xf32> to vector<400x1xf32>
    %cst_3 = arith.constant 0.0204081628 : f32
    %10 = vector.broadcast %cst_3 : f32 to vector<400x1xf32>
    %11 = arith.mulf %9, %10 : vector<400x1xf32>
    %c0_4 = arith.constant 0 : index
    %c0_5 = arith.constant 0 : index
    %12 = vector.load %arg2[%c0_4, %c0_5] : memref<400x2xf32, #tpu.memory_space<vmem>>, vector<400x1xf32>
    %c0_6 = arith.constant 0 : index
    %c1 = arith.constant 1 : index
    %13 = vector.load %arg2[%c0_6, %c1] : memref<400x2xf32, #tpu.memory_space<vmem>>, vector<400x1xf32>
    %cst_7 = arith.constant 9.99999974E-6 : f32
    %14 = vector.broadcast %cst_7 : f32 to vector<400x1xf32>
    %15 = arith.addf %11, %14 : vector<400x1xf32>
    %16 = math.rsqrt %15 : vector<400x1xf32>
    %17 = arith.mulf %12, %16 : vector<400x1xf32>
    %18 = vector.broadcast %17 : vector<400x1xf32> to vector<400x49xf32>
    %19 = arith.mulf %6, %18 : vector<400x49xf32>
    %20 = vector.broadcast %13 : vector<400x1xf32> to vector<400x49xf32>
    %21 = arith.addf %19, %20 : vector<400x49xf32>
    %c0_8 = arith.constant 0 : index
    %c0_9 = arith.constant 0 : index
    %22 = vector.load %arg1[%c0_8, %c0_9] : memref<400x49xf32, #tpu.memory_space<vmem>>, vector<400x49xf32>
    %23 = arith.addf %21, %22 : vector<400x49xf32>
    %cst_10 = arith.constant 0.000000e+00 : f32
    %24 = vector.broadcast %cst_10 : f32 to vector<400x49xf32>
    %25 = arith.maximumf %23, %24 : vector<400x49xf32>
    %26 = arith.truncf %25 : vector<400x49xf32> to vector<400x49xbf16>
    %c0_11 = arith.constant 0 : index
    %c0_12 = arith.constant 0 : index
    %27 = vector.load %arg3[%c0_11, %c0_12] : memref<400x400xbf16, #tpu.memory_space<vmem>>, vector<400x400xbf16>
    %cst_13 = arith.constant dense<0.000000e+00> : vector<49x400xf32>
    %28 = tpu.matmul %26, %27, %cst_13 {dimension_numbers = #tpu.dot_dimension_numbers<[0], [0], [1], [1], [0, 1, 1, 1], [], []>} : vector<400x49xbf16>, vector<400x400xbf16>, vector<49x400xf32> -> vector<49x400xf32>
    %c0_14 = arith.constant 0 : index
    %c0_15 = arith.constant 0 : index
    %29 = vector.load %arg4[%c0_14, %c0_15] : memref<49x400xf32, #tpu.memory_space<vmem>>, vector<49x400xf32>
    tpu.vector_store %arg4[%c0_14, %c0_15], %28 {strides = array<i32>} : memref<49x400xf32, #tpu.memory_space<vmem>>, vector<49x400xf32>,
    return
  }
}

</mosaic_0001>

<bundles_post_ra>
// kernel: bn_add_relu_conv.1
= control target key start
LH: loop header
LB: loop body
LE: loop exit
PB: predicated region body
PF: predicated region fallthrough
CT: control target
= control target key end

     0   :  { %vm68_vm0 = vcmask 400384   ;;  %s6984_s0 = inlined_call_operand.vmem [shape: f32[400,49], index: 0, kind: input, shape index: {}]   ;;  %s6985_s2 = inlined_call_operand.vmem [shape: f32[400,2], index: 2, kind: input, shape index: {}]   ;;  %s6986_s1 = inlined_call_operand.vmem [shape: f32[400,49], index: 1, kind: input, shape index: {}]   ;;  %s6987_s3 = inlined_call_operand.vmem [shape: bf16[400,400], index: 3, kind: input, shape index: {}]   ;;  %s6988_s4 = inlined_call_operand.vmem [shape: f32[49,400], index: 4, kind: output, shape index: {}]  }
   0x1   :  { %v3939_v0 = vld [vmem:[%s6984_s0 + $0x20] sm:$0xff]  ;;  %v3944_v1 = vld [vmem:[%s6984_s0 + $0x10] sm:$0xff]  ;;  %v3960_v6 = vld [vmem:[%s6984_s0 + $0x28] sm:$0xff] }
   0x2   :  { %v3949_v2 = vld [vmem:[%s6984_s0] sm:$0xff]  ;;  %v81_v3 = vsel %vm68_vm0, %v3939_v0, 0.0  ;;  %v75_v4 = vsel %vm68_vm0, %v3944_v1, 0.0  ;;  %v3965_v7 = vld [vmem:[%s6984_s0 + $0x18] sm:$0xff]  ;;  %v3970_v8 = vld [vmem:[%s6984_s0 + $0x8] sm:$0xff]  ;;  %v84_v9 = vsel %vm68_vm0, %v3960_v6, 0.0 }
   0x3   :  { %v69_v5 = vsel %vm68_vm0, %v3949_v2, 0.0  ;;  %82 = vadd.xlane.f32.xlu2 %v81_v3  ;;  %76 = vadd.xlane.f32.xlu1 %v75_v4  ;;  %v78_v10 = vsel %vm68_vm0, %v3965_v7, 0.0  ;;  %v72_v11 = vsel %vm68_vm0, %v3970_v8, 0.0  ;;  %v3981_v12 = vld [vmem:[%s6984_s0 + $0x40] sm:$0xff]  ;;  %v3986_v13 = vld [vmem:[%s6984_s0 + $0x38] sm:$0xff]  ;;  %v3991_v14 = vld [vmem:[%s6984_s0 + $0x30] sm:$0xff] }
   0x4   :  { %70 = vadd.xlane.f32.xlu0 %v69_v5  ;;  %v93_v15 = vsel %vm68_vm0, %v3981_v12, 0.0  ;;  %v90_v16 = vsel %vm68_vm0, %v3986_v13, 0.0  ;;  %v87_v17 = vsel %vm68_vm0, %v3991_v14, 0.0  ;;  %v4002_v18 = vld [vmem:[%s6984_s0 + $0x58] sm:$0xff]  ;;  %v4007_v19 = vld [vmem:[%s6984_s0 + $0x50] sm:$0xff]  ;;  %v4012_v20 = vld [vmem:[%s6984_s0 + $0x48] sm:$0xff] }
   0x5   :  { %v102_v21 = vsel %vm68_vm0, %v4002_v18, 0.0  ;;  %v99_v22 = vsel %vm68_vm0, %v4007_v19, 0.0  ;;  %v96_v23 = vsel %vm68_vm0, %v4012_v20, 0.0  ;;  %v4023_v24 = vld [vmem:[%s6984_s0 + $0x70] sm:$0xff]  ;;  %v4028_v25 = vld [vmem:[%s6984_s0 + $0x68] sm:$0xff]  ;;  %v4033_v26 = vld [vmem:[%s6984_s0 + $0x60] sm:$0xff] }
   0x6   :  { %v111_v27 = vsel %vm68_vm0, %v4023_v24, 0.0  ;;  %v108_v28 = vsel %vm68_vm0, %v4028_v25, 0.0  ;;  %v105_v29 = vsel %vm68_vm0, %v4033_v26, 0.0  ;;  %v4044_v30 = vld [vmem:[%s6984_s0 + $0x88] sm:$0xff]  ;;  %v4049_v31 = vld [vmem:[%s6984_s0 + $0x80] sm:$0xff]  ;;  %v4054_v32 = vld [vmem:[%s6984_s0 + $0x78] sm:$0xff] }
   0x7   :  { %v120_v33 = vsel %vm68_vm0, %v4044_v30, 0.0  ;;  %v117_v34 = vsel %vm68_vm0, %v4049_v31, 0.0  ;;  %v114_v35 = vsel %vm68_vm0, %v4054_v32, 0.0  ;;  %v4065_v36 = vld [vmem:[%s6984_s0 + $0xa0] sm:$0xff]  ;;  %v4070_v37 = vld [vmem:[%s6984_s0 + $0x98] sm:$0xff]  ;;  %v4075_v38 = vld [vmem:[%s6984_s0 + $0x90] sm:$0xff] }
   0x8   :  { %v129_v39 = vsel %vm68_vm0, %v4065_v36, 0.0  ;;  %v126_v40 = vsel %vm68_vm0, %v4070_v37, 0.0  ;;  %v123_v41 = vsel %vm68_vm0, %v4075_v38, 0.0  ;;  %v4086_v42 = vld [vmem:[%s6984_s0 + $0xb8] sm:$0xff]  ;;  %v4091_v43 = vld [vmem:[%s6984_s0 + $0xb0] sm:$0xff]  ;;  %v4096_v44 = vld [vmem:[%s6984_s0 + $0xa8] sm:$0xff] }
   0x9   :  { %v138_v45 = vsel %vm68_vm0, %v4086_v42, 0.0  ;;  %v135_v46 = vsel %vm68_vm0, %v4091_v43, 0.0  ;;  %v132_v47 = vsel %vm68_vm0, %v4096_v44, 0.0  ;;  %v4107_v48 = vld [vmem:[%s6984_s0 + $0xd0] sm:$0xff]  ;;  %v4112_v49 = vld [vmem:[%s6984_s0 + $0xc8] sm:$0xff]  ;;  %v4117_v50 = vld [vmem:[%s6984_s0 + $0xc0] sm:$0xff] }
   0xa   :  { %v147_v51 = vsel %vm68_vm0, %v4107_v48, 0.0  ;;  %v144_v52 = vsel %vm68_vm0, %v4112_v49, 0.0  ;;  %v141_v53 = vsel %vm68_vm0, %v4117_v50, 0.0  ;;  %v4128_v54 = vld [vmem:[%s6984_s0 + $0xe8] sm:$0xff]  ;;  %v4133_v55 = vld [vmem:[%s6984_s0 + $0xe0] sm:$0xff]  ;;  %v4138_v56 = vld [vmem:[%s6984_s0 + $0xd8] sm:$0xff] }
   0xb   :  { %85 = vadd.xlane.f32.xlu2 %v84_v9  ;;  %79 = vadd.xlane.f32.xlu1 %v78_v10  ;;  %v156_v57 = vsel %vm68_vm0, %v4128_v54, 0.0  ;;  %v153_v58 = vsel %vm68_vm0, %v4133_v55, 0.0  ;;  %v150_v59 = vsel %vm68_vm0, %v4138_v56, 0.0  ;;  %v4149_v60 = vld [vmem:[%s6984_s0 + $0x100] sm:$0xff]  ;;  %v4154_v61 = vld [vmem:[%s6984_s0 + $0xf8] sm:$0xff]  ;;  %v4159_v62 = vld [vmem:[%s6984_s0 + $0xf0] sm:$0xff] }
   0xc   :  { %73 = vadd.xlane.f32.xlu0 %v72_v11  ;;  %v165_v63 = vsel %vm68_vm0, %v4149_v60, 0.0  ;;  %v162_v3 = vsel %vm68_vm0, %v4154_v61, 0.0  ;;  %v159_v4 = vsel %vm68_vm0, %v4159_v62, 0.0  ;;  %v4170_v5 = vld [vmem:[%s6984_s0 + $0x118] sm:$0xff]  ;;  %v4175_v9 = vld [vmem:[%s6984_s0 + $0x110] sm:$0xff]  ;;  %v4180_v10 = vld [vmem:[%s6984_s0 + $0x108] sm:$0xff] }
   0xd   :  { %v174_v11 = vsel %vm68_vm0, %v4170_v5, 0.0 }
  0x13   :  { %94 = vadd.xlane.f32.xlu2 %v93_v15  ;;  %91 = vadd.xlane.f32.xlu1 %v90_v16  ;;  %v171_v15 = vsel %vm68_vm0, %v4175_v9, 0.0  ;;  %v168_v16 = vsel %vm68_vm0, %v4180_v10, 0.0 }
  0x14   :  { %88 = vadd.xlane.f32.xlu0 %v87_v17  ;;  %v4191_v17 = vld [vmem:[%s6984_s0 + $0x130] sm:$0xff] }
  0x1b   :  { %103 = vadd.xlane.f32.xlu2 %v102_v21  ;;  %100 = vadd.xlane.f32.xlu1 %v99_v22  ;;  %v4196_v21 = vld [vmem:[%s6984_s0 + $0x128] sm:$0xff]  ;;  %v4201_v22 = vld [vmem:[%s6984_s0 + $0x120] sm:$0xff] }
  0x1c   :  { %97 = vadd.xlane.f32.xlu0 %v96_v23  ;;  %v183_v23 = vsel %vm68_vm0, %v4191_v17, 0.0 }
  0x23   :  { %112 = vadd.xlane.f32.xlu2 %v111_v27  ;;  %109 = vadd.xlane.f32.xlu1 %v108_v28  ;;  %v180_v27 = vsel %vm68_vm0, %v4196_v21, 0.0  ;;  %v177_v28 = vsel %vm68_vm0, %v4201_v22, 0.0 }
  0x24   :  { %106 = vadd.xlane.f32.xlu0 %v105_v29  ;;  %v4212_v29 = vld [vmem:[%s6984_s0 + $0x148] sm:$0xff] }
  0x2b   :  { %121 = vadd.xlane.f32.xlu2 %v120_v33  ;;  %118 = vadd.xlane.f32.xlu1 %v117_v34  ;;  %v4217_v33 = vld [vmem:[%s6984_s0 + $0x140] sm:$0xff]  ;;  %v4222_v34 = vld [vmem:[%s6984_s0 + $0x138] sm:$0xff] }
  0x2c   :  { %115 = vadd.xlane.f32.xlu0 %v114_v35  ;;  %v192_v35 = vsel %vm68_vm0, %v4212_v29, 0.0 }
  0x33   :  { %130 = vadd.xlane.f32.xlu2 %v129_v39  ;;  %127 = vadd.xlane.f32.xlu1 %v126_v40  ;;  %v189_v39 = vsel %vm68_vm0, %v4217_v33, 0.0  ;;  %v186_v40 = vsel %vm68_vm0, %v4222_v34, 0.0 }
  0x34   :  { %124 = vadd.xlane.f32.xlu0 %v123_v41  ;;  %v4233_v41 = vld [vmem:[%s6984_s0 + $0x160] sm:$0xff] }
  0x3b   :  { %139 = vadd.xlane.f32.xlu2 %v138_v45  ;;  %136 = vadd.xlane.f32.xlu1 %v135_v46  ;;  %v4238_v45 = vld [vmem:[%s6984_s0 + $0x158] sm:$0xff]  ;;  %v4243_v46 = vld [vmem:[%s6984_s0 + $0x150] sm:$0xff] }
  0x3c   :  { %133 = vadd.xlane.f32.xlu0 %v132_v47  ;;  %v201_v47 = vsel %vm68_vm0, %v4233_v41, 0.0 }
  0x43   :  { %148 = vadd.xlane.f32.xlu2 %v147_v51  ;;  %145 = vadd.xlane.f32.xlu1 %v144_v52  ;;  %v198_v51 = vsel %vm68_vm0, %v4238_v45, 0.0  ;;  %v195_v52 = vsel %vm68_vm0, %v4243_v46, 0.0 }
  0x44   :  { %142 = vadd.xlane.f32.xlu0 %v141_v53  ;;  %v4254_v53 = vld [vmem:[%s6984_s0 + $0x178] sm:$0xff] }
  0x4b   :  { %157 = vadd.xlane.f32.xlu2 %v156_v57  ;;  %154 = vadd.xlane.f32.xlu1 %v153_v58  ;;  %v4259_v57 = vld [vmem:[%s6984_s0 + $0x170] sm:$0xff] }
  0x4c   :  { %151 = vadd.xlane.f32.xlu0 %v150_v59 }
  0x53   :  { %166 = vadd.xlane.f32.xlu2 %v165_v63  ;;  %163 = vadd.xlane.f32.xlu1 %v162_v3  ;;  %v4264_v63 = vld [vmem:[%s6984_s0 + $0x168] sm:$0xff] }
  0x54   :  { %160 = vadd.xlane.f32.xlu0 %v159_v4 }
  0x5b   :  { %175 = vadd.xlane.f32.xlu2 %v174_v11  ;;  %172 = vadd.xlane.f32.xlu1 %v171_v15  ;;  %v210_v11 = vsel %vm68_vm0, %v4254_v53, 0.0  ;;  %v207_v15 = vsel %vm68_vm0, %v4259_v57, 0.0 }
  0x5c   :  { %169 = vadd.xlane.f32.xlu0 %v168_v16  ;;  %v204_v16 = vsel %vm68_vm0, %v4264_v63, 0.0 }
  0x63   :  { %184 = vadd.xlane.f32.xlu2 %v183_v23  ;;  %181 = vadd.xlane.f32.xlu1 %v180_v27 }
  0x64   :  { %178 = vadd.xlane.f32.xlu0 %v177_v28  ;;  %v4280_v28 = vld [vmem:[%s6984_s0 + $0x188] sm:$0xff] }
  0x65   :  { %7042 = vst [vmem:[#allocation3_spill] sm:$0xff] %v4280_v28 }
  0x6b   :  { %193 = vadd.xlane.f32.xlu2 %v192_v35  ;;  %190 = vadd.xlane.f32.xlu1 %v189_v39 }
  0x6c   :  { %187 = vadd.xlane.f32.xlu0 %v186_v40 }
  0x73   :  { %202 = vadd.xlane.f32.xlu2 %v201_v47  ;;  %199 = vadd.xlane.f32.xlu1 %v198_v51  ;;  %v4285_v47 = vld [vmem:[%s6984_s0 + $0x180] sm:$0xff] }
  0x74   :  { %196 = vadd.xlane.f32.xlu0 %v195_v52 }
  0x76   :  { %v83_v58 = vpop.xlane.xlu2 %82  ;;  %v77_v59 = vpop.xlane.xlu1 %76 }
  0x77   :  { %v71_v3 = vpop.xlane.xlu0 %70  ;;  %v221_v35 = vmul.f32 0.020408163, %v77_v59 }
  0x78   :  { %v219_v4 = vmul.f32 0.020408163, %v71_v3  ;;  %v216_v3 = vsel %vm68_vm0, %v4280_v28, 0.0 }
  0x79   :  { %v4293_v59 = vsub.f32 %v3944_v1, %v221_v35 }
  0x7a   :  { %v4273_v23 = vsub.f32 %v3949_v2, %v219_v4 }
  0x7b   :  { %211 = vadd.xlane.f32.xlu2 %v210_v11  ;;  %208 = vadd.xlane.f32.xlu1 %v207_v15  ;;  %v213_v11 = vsel %vm68_vm0, %v4285_v47, 0.0  ;;  %7043 = vst [vmem:[#allocation4_spill] sm:$0xff] %v4293_v59  ;;  %v321_v28 = vmul.f32 %v4293_v59, %v4293_v59 }
  0x7c   :  { %7041 = vst [vmem:[#allocation2_spill] sm:$0xff] %v4273_v23  ;;  %205 = vadd.xlane.f32.xlu0 %v204_v16  ;;  %v319_v27 = vmul.f32 %v4273_v23, %v4273_v23 }
  0x7e   :  { %v86_v39 = vpop.xlane.xlu2 %85  ;;  %v80_v40 = vpop.xlane.xlu1 %79  ;;  %v369_v4 = vsel %vm68_vm0, %v319_v27, 0.0 }
  0x7f   :  { %v222_v2 = vmul.f32 0.020408163, %v80_v40  ;;  %v74_v51 = vpop.xlane.xlu0 %73 }
  0x80   :  { %v220_v52 = vmul.f32 0.020408163, %v74_v51  ;;  %v224_v51 = vmul.f32 0.020408163, %v86_v39  ;;  %v375_v39 = vsel %vm68_vm0, %v321_v28, 0.0 }
  0x81   :  { %v4296_v15 = vsub.f32 %v3965_v7, %v222_v2  ;;  %v223_v7 = vmul.f32 0.020408163, %v83_v58 }
  0x82   :  { %v4299_v16 = vsub.f32 %v3970_v8, %v220_v52  ;;  %v4309_v52 = vsub.f32 %v3960_v6, %v224_v51 }
  0x83   :  { %217 = vadd.xlane.f32.xlu1 %v216_v3  ;;  %370 = vadd.xlane.f32.xlu2 %v369_v4  ;;  %v322_v1 = vmul.f32 %v4296_v15, %v4296_v15 }
  0x84   :  { %214 = vadd.xlane.f32.xlu0 %v213_v11  ;;  %v320_v40 = vmul.f32 %v4299_v16, %v4299_v16  ;;  %7044 = vst [vmem:[#allocation5_spill] sm:$0xff] %v4309_v52  ;;  %v4317_v11 = vsub.f32 %v3939_v0, %v223_v7 }
  0x85   :  { %v378_v4 = vsel %vm68_vm0, %v322_v1, 0.0 }
  0x86   :  { %v95_v27 = vpop.xlane.xlu2 %94  ;;  %v92_v23 = vpop.xlane.xlu1 %91  ;;  %v372_v8 = vsel %vm68_vm0, %v320_v40, 0.0  ;;  %7046 = vst [vmem:[#allocation7_spill] sm:$0xff] %v4317_v11  ;;  %v323_v28 = vmul.f32 %v4317_v11, %v4317_v11 }
  0x87   :  { %v89_v35 = vpop.xlane.xlu0 %88  ;;  %v227_v40 = vmul.f32 0.020408163, %v95_v27  ;;  %v226_v51 = vmul.f32 0.020408163, %v92_v23 }
  0x88   :  { %v225_v2 = vmul.f32 0.020408163, %v89_v35  ;;  %v381_v23 = vsel %vm68_vm0, %v323_v28, 0.0 }
  0x89   :  { %v4327_v7 = vsub.f32 %v3981_v12, %v227_v40 }
  0x8a   :  { %v4312_v3 = vsub.f32 %v3991_v14, %v225_v2  ;;  %v324_v14 = vmul.f32 %v4309_v52, %v4309_v52 }
  0x8b   :  { %376 = vadd.xlane.f32.xlu1 %v375_v39  ;;  %379 = vadd.xlane.f32.xlu2 %v378_v4  ;;  %7047 = vst [vmem:[#allocation8_spill] sm:$0xff] %v4327_v7  ;;  %v4334_v39 = vsub.f32 %v3986_v13, %v226_v51 }
  0x8c   :  { %7045 = vst [vmem:[#allocation6_spill] sm:$0xff] %v4312_v3  ;;  %373 = vadd.xlane.f32.xlu0 %v372_v8  ;;  %v325_v58 = vmul.f32 %v4312_v3, %v4312_v3  ;;  %v384_v27 = vsel %vm68_vm0, %v324_v14, 0.0 }
  0x8d   :  { %7049 = vst [vmem:[#allocation10_spill] sm:$0xff] %v4334_v39  ;;  %v326_v13 = vmul.f32 %v4334_v39, %v4334_v39 }
  0x8e   :  { %v104_v35 = vpop.xlane.xlu2 %103  ;;  %v101_v6 = vpop.xlane.xlu1 %100  ;;  %v387_v0 = vsel %vm68_vm0, %v325_v58, 0.0 }
  0x8f   :  { %v98_v2 = vpop.xlane.xlu0 %97  ;;  %v230_v58 = vmul.f32 0.020408163, %v104_v35  ;;  %v229_v40 = vmul.f32 0.020408163, %v101_v6  ;;  %v390_v6 = vsel %vm68_vm0, %v326_v13, 0.0 }
  0x90   :  { %v228_v1 = vmul.f32 0.020408163, %v98_v2 }
  0x91   :  { %v4345_v28 = vsub.f32 %v4002_v18, %v230_v58 }
  0x92   :  { %v4330_v8 = vsub.f32 %v4012_v20, %v228_v1  ;;  %v327_v20 = vmul.f32 %v4327_v7, %v4327_v7 }
  0x93   :  { %385 = vadd.xlane.f32.xlu1 %v384_v27  ;;  %388 = vadd.xlane.f32.xlu2 %v387_v0  ;;  %7050 = vst [vmem:[#allocation11_spill] sm:$0xff] %v4345_v28  ;;  %v4352_v27 = vsub.f32 %v4007_v19, %v229_v40 }
  0x94   :  { %7048 = vst [vmem:[#allocation9_spill] sm:$0xff] %v4330_v8  ;;  %382 = vadd.xlane.f32.xlu0 %v381_v23  ;;  %v328_v4 = vmul.f32 %v4330_v8, %v4330_v8  ;;  %v393_v35 = vsel %vm68_vm0, %v327_v20, 0.0 }
  0x95   :  { %7052 = vst [vmem:[#allocation13_spill] sm:$0xff] %v4352_v27  ;;  %v329_v19 = vmul.f32 %v4352_v27, %v4352_v27 }
  0x96   :  { %v113_v2 = vpop.xlane.xlu2 %112  ;;  %v110_v12 = vpop.xlane.xlu1 %109  ;;  %v396_v51 = vsel %vm68_vm0, %v328_v4, 0.0 }
  0x97   :  { %v107_v1 = vpop.xlane.xlu0 %106  ;;  %v233_v4 = vmul.f32 0.020408163, %v113_v2  ;;  %v232_v58 = vmul.f32 0.020408163, %v110_v12  ;;  %v399_v12 = vsel %vm68_vm0, %v329_v19, 0.0 }
  0x98   :  { %v231_v14 = vmul.f32 0.020408163, %v107_v1 }
  0x99   :  { %v4363_v13 = vsub.f32 %v4023_v24, %v233_v4 }
  0x9a   :  { %v4348_v0 = vsub.f32 %v4033_v26, %v231_v14  ;;  %v330_v26 = vmul.f32 %v4345_v28, %v4345_v28  ;;  %v570_v28 = vld [vmem:[%s6985_s2 + $0x8] sm:$0xff] }
  0x9b   :  { %394 = vadd.xlane.f32.xlu1 %v393_v35  ;;  %397 = vadd.xlane.f32.xlu2 %v396_v51  ;;  %7053 = vst [vmem:[#allocation14_spill] sm:$0xff] %v4363_v13  ;;  %v4370_v35 = vsub.f32 %v4028_v25, %v232_v58 }
  0x9c   :  { %7051 = vst [vmem:[#allocation12_spill] sm:$0xff] %v4348_v0  ;;  %391 = vadd.xlane.f32.xlu0 %v390_v6  ;;  %v331_v23 = vmul.f32 %v4348_v0, %v4348_v0  ;;  %v402_v2 = vsel %vm68_vm0, %v330_v26, 0.0 }
  0x9d   :  { %7055 = vst [vmem:[#allocation16_spill] sm:$0xff] %v4370_v35  ;;  %v332_v25 = vmul.f32 %v4370_v35, %v4370_v35 }
  0x9e   :  { %v122_v1 = vpop.xlane.xlu2 %121  ;;  %v119_v18 = vpop.xlane.xlu1 %118  ;;  %v405_v40 = vsel %vm68_vm0, %v331_v23, 0.0 }
  0x9f   :  { %v116_v14 = vpop.xlane.xlu0 %115  ;;  %v236_v23 = vmul.f32 0.020408163, %v122_v1  ;;  %v235_v4 = vmul.f32 0.020408163, %v119_v18  ;;  %v408_v18 = vsel %vm68_vm0, %v332_v25, 0.0 }
  0xa0   :  { %v234_v20 = vmul.f32 0.020408163, %v116_v14 }
  0xa1   :  { %v4381_v19 = vsub.f32 %v4044_v30, %v236_v23 }
  0xa2   :  { %v4366_v51 = vsub.f32 %v4054_v32, %v234_v20  ;;  %v333_v32 = vmul.f32 %v4363_v13, %v4363_v13 }
  0xa3   :  { %403 = vadd.xlane.f32.xlu1 %v402_v2  ;;  %406 = vadd.xlane.f32.xlu2 %v405_v40  ;;  %v4388_v2 = vsub.f32 %v4049_v31, %v235_v4 }
  0xa4   :  { %7054 = vst [vmem:[#allocation15_spill] sm:$0xff] %v4366_v51  ;;  %400 = vadd.xlane.f32.xlu0 %v399_v12  ;;  %v334_v6 = vmul.f32 %v4366_v51, %v4366_v51  ;;  %v411_v1 = vsel %vm68_vm0, %v333_v32, 0.0 }
  0xa5   :  { %v335_v31 = vmul.f32 %v4388_v2, %v4388_v2 }
  0xa6   :  { %v131_v14 = vpop.xlane.xlu2 %130  ;;  %v128_v24 = vpop.xlane.xlu1 %127  ;;  %v414_v58 = vsel %vm68_vm0, %v334_v6, 0.0 }
  0xa7   :  { %v125_v20 = vpop.xlane.xlu0 %124  ;;  %v239_v6 = vmul.f32 0.020408163, %v131_v14  ;;  %v238_v23 = vmul.f32 0.020408163, %v128_v24  ;;  %v417_v24 = vsel %vm68_vm0, %v335_v31, 0.0 }
  0xa8   :  { %v237_v26 = vmul.f32 0.020408163, %v125_v20 }
  0xa9   :  { %v4399_v25 = vsub.f32 %v4065_v36, %v239_v6 }
  0xaa   :  { %v4384_v40 = vsub.f32 %v4075_v38, %v237_v26  ;;  %v336_v38 = vmul.f32 %v4381_v19, %v4381_v19 }
  0xab   :  { %412 = vadd.xlane.f32.xlu1 %v411_v1  ;;  %415 = vadd.xlane.f32.xlu2 %v414_v58  ;;  %7057 = vst [vmem:[#allocation18_spill] sm:$0xff] %v4399_v25  ;;  %v4406_v1 = vsub.f32 %v4070_v37, %v238_v23 }
  0xac   :  { %7056 = vst [vmem:[#allocation17_spill] sm:$0xff] %v4384_v40  ;;  %409 = vadd.xlane.f32.xlu0 %v408_v18  ;;  %v337_v12 = vmul.f32 %v4384_v40, %v4384_v40  ;;  %v420_v14 = vsel %vm68_vm0, %v336_v38, 0.0 }
  0xad   :  { %7059 = vst [vmem:[#allocation20_spill] sm:$0xff] %v4406_v1  ;;  %v338_v37 = vmul.f32 %v4406_v1, %v4406_v1 }
  0xae   :  { %v140_v20 = vpop.xlane.xlu2 %139  ;;  %v137_v30 = vpop.xlane.xlu1 %136  ;;  %v423_v4 = vsel %vm68_vm0, %v337_v12, 0.0 }
  0xaf   :  { %v134_v26 = vpop.xlane.xlu0 %133  ;;  %v242_v12 = vmul.f32 0.020408163, %v140_v20  ;;  %v241_v6 = vmul.f32 0.020408163, %v137_v30  ;;  %v426_v30 = vsel %vm68_vm0, %v338_v37, 0.0 }
  0xb0   :  { %v240_v32 = vmul.f32 0.020408163, %v134_v26 }
  0xb1   :  { %v4417_v31 = vsub.f32 %v4086_v42, %v242_v12 }
  0xb2   :  { %v4402_v58 = vsub.f32 %v4096_v44, %v240_v32  ;;  %v339_v44 = vmul.f32 %v4399_v25, %v4399_v25 }
  0xb3   :  { %421 = vadd.xlane.f32.xlu1 %v420_v14  ;;  %424 = vadd.xlane.f32.xlu2 %v423_v4  ;;  %7060 = vst [vmem:[#allocation21_spill] sm:$0xff] %v4417_v31  ;;  %v4424_v14 = vsub.f32 %v4091_v43, %v241_v6 }
  0xb4   :  { %7058 = vst [vmem:[#allocation19_spill] sm:$0xff] %v4402_v58  ;;  %418 = vadd.xlane.f32.xlu0 %v417_v24  ;;  %v340_v18 = vmul.f32 %v4402_v58, %v4402_v58  ;;  %v429_v20 = vsel %vm68_vm0, %v339_v44, 0.0 }
  0xb5   :  { %7062 = vst [vmem:[#allocation23_spill] sm:$0xff] %v4424_v14  ;;  %v341_v43 = vmul.f32 %v4424_v14, %v4424_v14 }
  0xb6   :  { %v149_v26 = vpop.xlane.xlu2 %148  ;;  %v146_v36 = vpop.xlane.xlu1 %145  ;;  %v432_v23 = vsel %vm68_vm0, %v340_v18, 0.0 }
  0xb7   :  { %v143_v32 = vpop.xlane.xlu0 %142  ;;  %v245_v18 = vmul.f32 0.020408163, %v149_v26  ;;  %v244_v12 = vmul.f32 0.020408163, %v146_v36  ;;  %v435_v36 = vsel %vm68_vm0, %v341_v43, 0.0 }
  0xb8   :  { %v243_v38 = vmul.f32 0.020408163, %v143_v32 }
  0xb9   :  { %v4435_v37 = vsub.f32 %v4107_v48, %v245_v18 }
  0xba   :  { %v4420_v4 = vsub.f32 %v4117_v50, %v243_v38  ;;  %v342_v50 = vmul.f32 %v4417_v31, %v4417_v31 }
  0xbb   :  { %430 = vadd.xlane.f32.xlu1 %v429_v20  ;;  %433 = vadd.xlane.f32.xlu2 %v432_v23  ;;  %7063 = vst [vmem:[#allocation24_spill] sm:$0xff] %v4435_v37  ;;  %v4442_v20 = vsub.f32 %v4112_v49, %v244_v12 }
  0xbc   :  { %7061 = vst [vmem:[#allocation22_spill] sm:$0xff] %v4420_v4  ;;  %427 = vadd.xlane.f32.xlu0 %v426_v30  ;;  %v343_v24 = vmul.f32 %v4420_v4, %v4420_v4  ;;  %v438_v26 = vsel %vm68_vm0, %v342_v50, 0.0 }
  0xbd   :  { %7065 = vst [vmem:[#allocation26_spill] sm:$0xff] %v4442_v20  ;;  %v344_v49 = vmul.f32 %v4442_v20, %v4442_v20 }
  0xbe   :  { %v158_v32 = vpop.xlane.xlu2 %157  ;;  %v155_v42 = vpop.xlane.xlu1 %154  ;;  %v441_v6 = vsel %vm68_vm0, %v343_v24, 0.0 }
  0xbf   :  { %v152_v38 = vpop.xlane.xlu0 %151  ;;  %v248_v24 = vmul.f32 0.020408163, %v158_v32  ;;  %v247_v18 = vmul.f32 0.020408163, %v155_v42  ;;  %v444_v42 = vsel %vm68_vm0, %v344_v49, 0.0 }
  0xc0   :  { %v246_v44 = vmul.f32 0.020408163, %v152_v38 }
  0xc1   :  { %v4453_v43 = vsub.f32 %v4128_v54, %v248_v24 }
  0xc2   :  { %v4438_v23 = vsub.f32 %v4138_v56, %v246_v44  ;;  %v345_v56 = vmul.f32 %v4435_v37, %v4435_v37 }
  0xc3   :  { %439 = vadd.xlane.f32.xlu1 %v438_v26  ;;  %442 = vadd.xlane.f32.xlu2 %v441_v6  ;;  %7066 = vst [vmem:[#allocation27_spill] sm:$0xff] %v4453_v43  ;;  %v4460_v26 = vsub.f32 %v4133_v55, %v247_v18 }
  0xc4   :  { %7064 = vst [vmem:[#allocation25_spill] sm:$0xff] %v4438_v23  ;;  %436 = vadd.xlane.f32.xlu0 %v435_v36  ;;  %v346_v30 = vmul.f32 %v4438_v23, %v4438_v23  ;;  %v447_v32 = vsel %vm68_vm0, %v345_v56, 0.0 }
  0xc5   :  { %7068 = vst [vmem:[#allocation29_spill] sm:$0xff] %v4460_v26  ;;  %v347_v55 = vmul.f32 %v4460_v26, %v4460_v26 }
  0xc6   :  { %v167_v38 = vpop.xlane.xlu2 %166  ;;  %v164_v48 = vpop.xlane.xlu1 %163  ;;  %v450_v12 = vsel %vm68_vm0, %v346_v30, 0.0 }
  0xc7   :  { %v161_v44 = vpop.xlane.xlu0 %160  ;;  %v251_v30 = vmul.f32 0.020408163, %v167_v38  ;;  %v250_v24 = vmul.f32 0.020408163, %v164_v48  ;;  %v453_v48 = vsel %vm68_vm0, %v347_v55, 0.0 }
  0xc8   :  { %v249_v50 = vmul.f32 0.020408163, %v161_v44 }
  0xc9   :  { %v4471_v49 = vsub.f32 %v4149_v60, %v251_v30 }
  0xca   :  { %v4456_v6 = vsub.f32 %v4159_v62, %v249_v50  ;;  %v348_v62 = vmul.f32 %v4453_v43, %v4453_v43 }
  0xcb   :  { %448 = vadd.xlane.f32.xlu1 %v447_v32  ;;  %451 = vadd.xlane.f32.xlu2 %v450_v12  ;;  %v4478_v32 = vsub.f32 %v4154_v61, %v250_v24 }
  0xcc   :  { %7067 = vst [vmem:[#allocation28_spill] sm:$0xff] %v4456_v6  ;;  %445 = vadd.xlane.f32.xlu0 %v444_v42  ;;  %v349_v36 = vmul.f32 %v4456_v6, %v4456_v6  ;;  %v456_v38 = vsel %vm68_vm0, %v348_v62, 0.0 }
  0xcd   :  { %7069 = vst [vmem:[#allocation30_spill] sm:$0xff] %v4478_v32  ;;  %v350_v61 = vmul.f32 %v4478_v32, %v4478_v32 }
  0xce   :  { %v176_v44 = vpop.xlane.xlu2 %175  ;;  %v173_v54 = vpop.xlane.xlu1 %172  ;;  %v459_v18 = vsel %vm68_vm0, %v349_v36, 0.0 }
  0xcf   :  { %v170_v50 = vpop.xlane.xlu0 %169  ;;  %v254_v36 = vmul.f32 0.020408163, %v176_v44  ;;  %v253_v30 = vmul.f32 0.020408163, %v173_v54  ;;  %v462_v54 = vsel %vm68_vm0, %v350_v61, 0.0 }
  0xd0   :  { %v252_v56 = vmul.f32 0.020408163, %v170_v50 }
  0xd1   :  { %v4489_v55 = vsub.f32 %v4170_v5, %v254_v36 }
  0xd2   :  { %v4474_v12 = vsub.f32 %v4180_v10, %v252_v56  ;;  %v351_v10 = vmul.f32 %v4471_v49, %v4471_v49 }
  0xd3   :  { %457 = vadd.xlane.f32.xlu1 %v456_v38  ;;  %460 = vadd.xlane.f32.xlu2 %v459_v18  ;;  %7070 = vst [vmem:[#allocation31_spill] sm:$0xff] %v4489_v55  ;;  %v4496_v38 = vsub.f32 %v4175_v9, %v253_v30 }
  0xd4   :  { %454 = vadd.xlane.f32.xlu0 %v453_v48  ;;  %v352_v42 = vmul.f32 %v4474_v12, %v4474_v12  ;;  %v465_v44 = vsel %vm68_vm0, %v351_v10, 0.0 }
  0xd5   :  { %7072 = vst [vmem:[#allocation33_spill] sm:$0xff] %v4496_v38  ;;  %v353_v9 = vmul.f32 %v4496_v38, %v4496_v38 }
  0xd6   :  { %v185_v50 = vpop.xlane.xlu2 %184  ;;  %v182_v60 = vpop.xlane.xlu1 %181  ;;  %v468_v24 = vsel %vm68_vm0, %v352_v42, 0.0 }
  0xd7   :  { %v179_v56 = vpop.xlane.xlu0 %178  ;;  %v257_v42 = vmul.f32 0.020408163, %v185_v50  ;;  %v256_v36 = vmul.f32 0.020408163, %v182_v60  ;;  %v471_v60 = vsel %vm68_vm0, %v353_v9, 0.0 }
  0xd8   :  { %v255_v62 = vmul.f32 0.020408163, %v179_v56 }
  0xd9   :  { %v4507_v61 = vsub.f32 %v4191_v17, %v257_v42 }
  0xda   :  { %v4492_v18 = vsub.f32 %v4201_v22, %v255_v62  ;;  %v354_v22 = vmul.f32 %v4489_v55, %v4489_v55 }
  0xdb   :  { %466 = vadd.xlane.f32.xlu1 %v465_v44  ;;  %469 = vadd.xlane.f32.xlu2 %v468_v24  ;;  %7073 = vst [vmem:[#allocation34_spill] sm:$0xff] %v4507_v61  ;;  %v4514_v44 = vsub.f32 %v4196_v21, %v256_v36 }
  0xdc   :  { %7071 = vst [vmem:[#allocation32_spill] sm:$0xff] %v4492_v18  ;;  %463 = vadd.xlane.f32.xlu0 %v462_v54  ;;  %v355_v48 = vmul.f32 %v4492_v18, %v4492_v18  ;;  %v474_v50 = vsel %vm68_vm0, %v354_v22, 0.0 }
  0xdd   :  { %7075 = vst [vmem:[#allocation36_spill] sm:$0xff] %v4514_v44  ;;  %v356_v21 = vmul.f32 %v4514_v44, %v4514_v44 }
  0xde   :  { %v194_v56 = vpop.xlane.xlu2 %193  ;;  %v191_v5 = vpop.xlane.xlu1 %190  ;;  %v477_v30 = vsel %vm68_vm0, %v355_v48, 0.0 }
  0xdf   :  { %v188_v62 = vpop.xlane.xlu0 %187  ;;  %v260_v48 = vmul.f32 0.020408163, %v194_v56  ;;  %v259_v42 = vmul.f32 0.020408163, %v191_v5  ;;  %v480_v5 = vsel %vm68_vm0, %v356_v21, 0.0 }
  0xe0   :  { %v258_v10 = vmul.f32 0.020408163, %v188_v62 }
  0xe1   :  { %v4525_v9 = vsub.f32 %v4212_v29, %v260_v48 }
  0xe2   :  { %v4510_v24 = vsub.f32 %v4222_v34, %v258_v10  ;;  %v357_v34 = vmul.f32 %v4507_v61, %v4507_v61 }
  0xe3   :  { %475 = vadd.xlane.f32.xlu1 %v474_v50  ;;  %478 = vadd.xlane.f32.xlu2 %v477_v30  ;;  %7076 = vst [vmem:[#allocation37_spill] sm:$0xff] %v4525_v9  ;;  %v4532_v50 = vsub.f32 %v4217_v33, %v259_v42 }
  0xe4   :  { %7074 = vst [vmem:[#allocation35_spill] sm:$0xff] %v4510_v24  ;;  %472 = vadd.xlane.f32.xlu0 %v471_v60  ;;  %v358_v54 = vmul.f32 %v4510_v24, %v4510_v24  ;;  %v483_v56 = vsel %vm68_vm0, %v357_v34, 0.0 }
  0xe5   :  { %7078 = vst [vmem:[#allocation39_spill] sm:$0xff] %v4532_v50  ;;  %v359_v33 = vmul.f32 %v4532_v50, %v4532_v50 }
  0xe6   :  { %v203_v62 = vpop.xlane.xlu2 %202  ;;  %v200_v17 = vpop.xlane.xlu1 %199  ;;  %v486_v36 = vsel %vm68_vm0, %v358_v54, 0.0 }
  0xe7   :  { %v197_v10 = vpop.xlane.xlu0 %196  ;;  %v263_v54 = vmul.f32 0.020408163, %v203_v62  ;;  %v262_v48 = vmul.f32 0.020408163, %v200_v17  ;;  %v489_v17 = vsel %vm68_vm0, %v359_v33, 0.0 }
  0xe8   :  { %v261_v22 = vmul.f32 0.020408163, %v197_v10 }
  0xe9   :  { %v4543_v21 = vsub.f32 %v4233_v41, %v263_v54 }
  0xea   :  { %v4528_v30 = vsub.f32 %v4243_v46, %v261_v22  ;;  %v360_v46 = vmul.f32 %v4525_v9, %v4525_v9 }
  0xeb   :  { %484 = vadd.xlane.f32.xlu1 %v483_v56  ;;  %487 = vadd.xlane.f32.xlu2 %v486_v36  ;;  %7079 = vst [vmem:[#allocation40_spill] sm:$0xff] %v4543_v21  ;;  %v4550_v56 = vsub.f32 %v4238_v45, %v262_v48 }
  0xec   :  { %7077 = vst [vmem:[#allocation38_spill] sm:$0xff] %v4528_v30  ;;  %481 = vadd.xlane.f32.xlu0 %v480_v5  ;;  %v361_v60 = vmul.f32 %v4528_v30, %v4528_v30  ;;  %v492_v62 = vsel %vm68_vm0, %v360_v46, 0.0 }
  0xed   :  { %7081 = vst [vmem:[#allocation42_spill] sm:$0xff] %v4550_v56  ;;  %v362_v45 = vmul.f32 %v4550_v56, %v4550_v56 }
  0xee   :  { %v212_v10 = vpop.xlane.xlu2 %211  ;;  %v209_v29 = vpop.xlane.xlu1 %208  ;;  %v495_v42 = vsel %vm68_vm0, %v361_v60, 0.0 }
  0xef   :  { %v206_v22 = vpop.xlane.xlu0 %205  ;;  %v266_v60 = vmul.f32 0.020408163, %v212_v10  ;;  %v265_v54 = vmul.f32 0.020408163, %v209_v29 }
  0xf0   :  { %v264_v34 = vmul.f32 0.020408163, %v206_v22 }
  0xf1   :  { %v4570_v29 = vsub.f32 %v4259_v57, %v265_v54 }
  0xf2   :  { %v4546_v36 = vsub.f32 %v4264_v63, %v264_v34  ;;  %v363_v63 = vmul.f32 %v4543_v21, %v4543_v21 }
  0xf3   :  { %493 = vadd.xlane.f32.xlu1 %v492_v62  ;;  %496 = vadd.xlane.f32.xlu2 %v495_v42  ;;  %v4563_v62 = vsub.f32 %v4254_v53, %v266_v60  ;;  %7084 = vst [vmem:[#allocation45_spill] sm:$0xff] %v4570_v29  ;;  %v6991_v53 = vmov 0  }
  0xf4   :  { %7080 = vst [vmem:[#allocation41_spill] sm:$0xff] %v4546_v36  ;;  %490 = vadd.xlane.f32.xlu0 %v489_v17  ;;  %v364_v5 = vmul.f32 %v4546_v36, %v4546_v36  ;;  %v501_v17 = vsel %vm68_vm0, %v363_v63, 0.0  ;;  %3764 = vset.pattern.permute.xlu2 %v6991_v53 }
  0xf5   :  { %7082 = vst [vmem:[#allocation43_spill] sm:$0xff] %v4563_v62  ;;  %3763 = vset.pattern.permute.xlu1 %v6991_v53  ;;  %3765 = vset.pattern.permute.xlu0 %v6991_v53  ;;  %v366_v60 = vmul.f32 %v4563_v62, %v4563_v62 }
  0xf6   :  { %v218_v22 = vpop.xlane.xlu1 %217  ;;  %v371_v41 = vpop.xlane.xlu2 %370  ;;  %v504_v33 = vsel %vm68_vm0, %v364_v5, 0.0 }
  0xf7   :  { %v519_v34 = vmul.f32 0.020408163, %v371_v41  ;;  %v215_v46 = vpop.xlane.xlu0 %214  ;;  %v498_v41 = vsel %vm68_vm0, %v362_v45, 0.0  ;;  %v268_v63 = vmul.f32 0.020408163, %v218_v22  ;;  %v365_v45 = vmul.f32 %v4570_v29, %v4570_v29 }
  0xf8   :  { %v267_v48 = vmul.f32 0.020408163, %v215_v46  ;;  %v510_v22 = vsel %vm68_vm0, %v366_v60, 0.0 }
  0xf9   :  { %v4560_v42 = vadd.f32 1e-05, %v519_v34 }
  0xfa   :  { %v4566_v10 = vsub.f32 %v4285_v47, %v267_v48 }
  0xfb   :  { %3789 = vrsqrt.f32 %v4560_v42  ;;  %502 = vadd.xlane.f32.xlu1 %v501_v17  ;;  %505 = vadd.xlane.f32.xlu2 %v504_v33  ;;  %vm675_vm2 = vweird.f32 %v4560_v42 }
  0xfc   :  { %7083 = vst [vmem:[#allocation44_spill] sm:$0xff] %v4566_v10  ;;  %499 = vadd.xlane.f32.xlu0 %v498_v41  ;;  %v367_v5 = vmul.f32 %v4566_v10, %v4566_v10 }
  0xfe   :  { %v377_v47 = vpop.xlane.xlu1 %376  ;;  %v380_v57 = vpop.xlane.xlu2 %379  ;;  %v513_v33 = vsel %vm68_vm0, %v367_v5, 0.0  ;;  %v507_v5 = vsel %vm68_vm0, %v365_v45, 0.0 }
  0xff   :  { %v521_v54 = vmul.f32 0.020408163, %v377_v47  ;;  %v522_v34 = vmul.f32 0.020408163, %v380_v57  ;;  %v374_v46 = vpop.xlane.xlu0 %373  ;;  %v7085_v47 = vld [vmem:[#allocation3_spill] sm:$0xff] }
 0x100   :  { %v520_v48 = vmul.f32 0.020408163, %v374_v46  ;;  %v4596_v57 = vsub.f32 %v7085_v47, %v268_v63 }
 0x101   :  { %v4584_v17 = vpop.eup %3789  ;;  %v4586_v41 = vadd.f32 1e-05, %v521_v54  ;;  %v4588_v53 = vadd.f32 1e-05, %v522_v34 }
 0x102   :  { %v670_v32 = vmul.f32 %v4584_v17, %v4560_v42  ;;  %v4592_v6 = vadd.f32 1e-05, %v520_v48  ;;  %7086 = vst [vmem:[#allocation3_spill] sm:$0xff] %v4596_v57  ;;  %v368_v63 = vmul.f32 %v4596_v57, %v4596_v57  ;;  %vm676_vm1 = vweird.f32 %v4584_v17 }
 0x103   :  { %3791 = vrsqrt.f32 %v4586_v41  ;;  %511 = vadd.xlane.f32.xlu1 %v510_v22  ;;  %514 = vadd.xlane.f32.xlu2 %v513_v33  ;;  %vm4638_vm4 = vmor %vm675_vm2, %vm676_vm1  ;;  %vm695_vm8 = vweird.f32 %v4586_v41  ;;  %vm705_vm11 = vweird.f32 %v4588_v53 }
 0x104   :  { %3793 = vrsqrt.f32 %v4588_v53  ;;  %508 = vadd.xlane.f32.xlu0 %v507_v5  ;;  %v671_v54 = vmul.f32 %v4584_v17, %v670_v32  ;;  %v516_v57 = vsel %vm68_vm0, %v368_v63, 0.0  ;;  %vm685_vm5 = vweird.f32 %v4592_v6 }
 0x105   :  { %3795 = vrsqrt.f32 %v4592_v6 }
 0x106   :  { %v386_v34 = vpop.xlane.xlu1 %385  ;;  %v389_v46 = vpop.xlane.xlu2 %388  ;;  %v672_v22 = vmul.f32 0.5, %v671_v54 }
 0x107   :  { %v524_v48 = vmul.f32 0.020408163, %v386_v34  ;;  %v383_v60 = vpop.xlane.xlu0 %382  ;;  %v525_v10 = vmul.f32 0.020408163, %v389_v46 }
 0x108   :  { %v523_v47 = vmul.f32 0.020408163, %v383_v60 }
 0x109   :  { %v4605_v13 = vpop.eup %3791  ;;  %v4607_v45 = vadd.f32 1e-05, %v524_v48  ;;  %v673_v48 = vsub.f32 1.5, %v672_v22  ;;  %v4623_v62 = vadd.f32 1e-05, %v525_v10 }
 0x10a   :  { %v4609_v33 = vpop.eup %3793  ;;  %v690_v32 = vmul.f32 %v4605_v13, %v4586_v41  ;;  %v4613_v5 = vadd.f32 1e-05, %v523_v47  ;;  %vm696_vm7 = vweird.f32 %v4605_v13 }
 0x10b   :  { %v3796_v51 = vpop.eup %3795  ;;  %v700_v34 = vmul.f32 %v4609_v33, %v4588_v53  ;;  %3797 = vrsqrt.f32 %v4607_v45  ;;  %v674_v23 = vmul.f32 %v4584_v17, %v673_v48  ;;  %vm706_vm9 = vweird.f32 %v4609_v33  ;;  %vm4678_vm10 = vmor %vm695_vm8, %vm696_vm7 }
 0x10c   :  { %v691_v60 = vmul.f32 %v4605_v13, %v690_v32  ;;  %v680_v54 = vmul.f32 %v3796_v51, %v4592_v6  ;;  %517 = vadd.xlane.f32.xlu0 %v516_v57  ;;  %3799 = vrsqrt.f32 %v4613_v5  ;;  %vm686_vm3 = vweird.f32 %v3796_v51  ;;  %vm4702_vm14 = vmor %vm705_vm11, %vm706_vm9 }
 0x10d   :  { %v701_v47 = vmul.f32 %v4609_v33, %v700_v34  ;;  %3801 = vrsqrt.f32 %v4623_v62  ;;  %v678_v48 = vsel %vm4638_vm4, %v4584_v17, %v674_v23  ;;  %vm4649_vm6 = vmor %vm685_vm5, %vm686_vm3  ;;  %vm715_vm13 = vweird.f32 %v4613_v5 }
 0x10e   :  { %v681_v43 = vmul.f32 %v3796_v51, %v680_v54  ;;  %v395_v26 = vpop.xlane.xlu1 %394  ;;  %v398_v35 = vpop.xlane.xlu2 %397  ;;  %v692_v0 = vmul.f32 0.5, %v691_v60  ;;  %vm725_vm4 = vweird.f32 %v4607_v45 }
 0x10f   :  { %v528_v46 = vmul.f32 0.020408163, %v398_v35  ;;  %v392_v63 = vpop.xlane.xlu0 %391  ;;  %v702_v22 = vmul.f32 0.5, %v701_v47  ;;  %v527_v42 = vmul.f32 0.020408163, %v395_v26 }
 0x110   :  { %v682_v29 = vmul.f32 0.5, %v681_v43  ;;  %v693_v60 = vsub.f32 1.5, %v692_v0  ;;  %v526_v35 = vmul.f32 0.020408163, %v392_v63  ;;  %v569_v0 = vld [vmem:[%s6985_s2] sm:$0xff] }
 0x111   :  { %v4625_v32 = vadd.f32 1e-05, %v528_v46  ;;  %v4629_v57 = vpop.eup %3797  ;;  %v703_v47 = vsub.f32 1.5, %v702_v22  ;;  %v1169_v56 = vmul.f32 %v678_v48, %v569_v0  ;;  %v4668_v21 = vadd.f32 1e-05, %v527_v42  ;;  %v571_v0 = vld [vmem:[%s6985_s2 + $0x10] sm:$0xff] }
 0x112   :  { %v683_v34 = vsub.f32 1.5, %v682_v29  ;;  %v4632_v54 = vpop.eup %3799  ;;  %v720_v63 = vmul.f32 %v4629_v57, %v4607_v45  ;;  %v4660_v10 = vadd.f32 1e-05, %v526_v35  ;;  %v694_v27 = vmul.f32 %v4605_v13, %v693_v60  ;;  %v574_v45 = vld [vmem:[%s6985_s2 + $0x28] sm:$0xff] }
 0x113   :  { %v710_v43 = vmul.f32 %v4632_v54, %v4613_v5  ;;  %3803 = vrsqrt.f32 %v4625_v32  ;;  %v4666_v36 = vpop.eup %3801  ;;  %v704_v60 = vmul.f32 %v4609_v33, %v703_v47  ;;  %vm716_vm12 = vweird.f32 %v4632_v54 }
 0x114   :  { %v684_v29 = vmul.f32 %v3796_v51, %v683_v34  ;;  %v721_v46 = vmul.f32 %v4629_v57, %v720_v63  ;;  %3805 = vrsqrt.f32 %v4660_v10  ;;  %v698_v48 = vsel %vm4678_vm10, %v4605_v13, %v694_v27  ;;  %vm717_vm15 = vmor %vm715_vm13, %vm716_vm12 }
 0x115   :  { %v711_v6 = vmul.f32 %v4632_v54, %v710_v43  ;;  %v730_v47 = vmul.f32 %v4666_v36, %v4623_v62  ;;  %v708_v5 = vsel %vm4702_vm14, %v4609_v33, %v704_v60  ;;  %vm765_vm1 = vweird.f32 %v4625_v32 }
 0x116   :  { %v404_v26 = vpop.xlane.xlu1 %403  ;;  %v407_v34 = vpop.xlane.xlu2 %406  ;;  %v688_v22 = vsel %vm4649_vm6, %v3796_v51, %v684_v29  ;;  %vm726_vm3 = vweird.f32 %v4629_v57  ;;  %vm735_vm6 = vweird.f32 %v4623_v62  ;;  %vm736_vm7 = vweird.f32 %v4666_v36 }
 0x117   :  { %v531_v23 = vmul.f32 0.020408163, %v407_v34  ;;  %v401_v17 = vpop.xlane.xlu0 %400  ;;  %v712_v43 = vmul.f32 0.5, %v711_v6  ;;  %v1170_v4 = vmul.f32 %v688_v22, %v570_v28  ;;  %v530_v29 = vmul.f32 0.020408163, %v404_v26  ;;  %v573_v26 = vld [vmem:[%s6985_s2 + $0x20] sm:$0xff]  ;;  %vm4763_vm5 = vmor %vm725_vm4, %vm726_vm3 }
 0x118   :  { %v529_v28 = vmul.f32 0.020408163, %v401_v17  ;;  %v1171_v6 = vmul.f32 %v698_v48, %v571_v0  ;;  %v731_v41 = vmul.f32 %v4666_v36, %v730_v47  ;;  %vm737_vm8 = vmor %vm735_vm6, %vm736_vm7  ;;  %vm755_vm9 = vweird.f32 %v4668_v21 }
 0x119   :  { %v4670_v30 = vadd.f32 1e-05, %v531_v23  ;;  %v4673_v35 = vpop.eup %3803  ;;  %v713_v51 = vsub.f32 1.5, %v712_v43  ;;  %v4706_v13 = vadd.f32 1e-05, %v530_v29  ;;  %v722_v23 = vmul.f32 0.5, %v721_v46 }
 0x11a   :  { %v760_v42 = vmul.f32 %v4673_v35, %v4625_v32  ;;  %v4720_v22 = vadd.f32 1e-05, %v529_v28  ;;  %v4724_v60 = vpop.eup %3805  ;;  %vm766_vm0 = vweird.f32 %v4673_v35  ;;  %vm745_vm11 = vweird.f32 %v4660_v10 }
 0x11b   :  { %1226 = vperm.xlu2 %3764, %v1170_v4   ;;  %3807 = vrsqrt.f32 %v4670_v30  ;;  %v714_v34 = vmul.f32 %v4632_v54, %v713_v51  ;;  %vm767_vm2 = vmor %vm765_vm1, %vm766_vm0  ;;  %vm795_vm12 = vweird.f32 %v4670_v30  ;;  %vm746_vm13 = vweird.f32 %v4724_v60 }
 0x11c   :  { %1221 = vperm.xlu1 %3763, %v1169_v56   ;;  %3809 = vrsqrt.f32 %v4668_v21  ;;  %v761_v4 = vmul.f32 %v4673_v35, %v760_v42  ;;  %v572_v56 = vld [vmem:[%s6985_s2 + $0x18] sm:$0xff]  ;;  %vm785_vm3 = vweird.f32 %v4706_v13  ;;  %vm775_vm4 = vweird.f32 %v4720_v22 }
 0x11d   :  { %v718_v33 = vsel %vm717_vm15, %v4632_v54, %v714_v34  ;;  %v1172_v51 = vmul.f32 %v708_v5, %v572_v56  ;;  %3811 = vrsqrt.f32 %v4706_v13  ;;  %v732_v54 = vmul.f32 0.5, %v731_v41  ;;  %vm747_vm15 = vmor %vm745_vm11, %vm746_vm13 }
 0x11e   :  { %v413_v53 = vpop.xlane.xlu1 %412  ;;  %v416_v63 = vpop.xlane.xlu2 %415  ;;  %v762_v17 = vmul.f32 0.5, %v761_v4  ;;  %v1173_v48 = vmul.f32 %v718_v33, %v573_v26  ;;  %v723_v4 = vsub.f32 1.5, %v722_v23  ;;  %3813 = vrsqrt.f32 %v4720_v22 }
 0x11f   :  { %v534_v43 = vmul.f32 0.020408163, %v416_v63  ;;  %v410_v29 = vpop.xlane.xlu0 %409  ;;  %v740_v63 = vmul.f32 %v4724_v60, %v4660_v10  ;;  %v533_v34 = vmul.f32 0.020408163, %v413_v53 }
 0x120   :  { %1231 = vperm.xlu0 %3765, %v1171_v6   ;;  %v763_v42 = vsub.f32 1.5, %v762_v17  ;;  %v532_v27 = vmul.f32 0.020408163, %v410_v29  ;;  %v578_v6 = vld [vmem:[%s6985_s2 + $0x48] sm:$0xff]  ;;  %v724_v41 = vmul.f32 %v4629_v57, %v723_v4 }
 0x121   :  { %v4726_v0 = vadd.f32 1e-05, %v534_v43  ;;  %v4728_v46 = vpop.eup %3807  ;;  %v741_v53 = vmul.f32 %v4724_v60, %v740_v63 }
 0x122   :  { %v4731_v28 = vpop.eup %3809  ;;  %v790_v47 = vmul.f32 %v4728_v46, %v4670_v30  ;;  %v764_v56 = vmul.f32 %v4673_v35, %v763_v42  ;;  %v733_v42 = vsub.f32 1.5, %v732_v54  ;;  %v728_v63 = vsel %vm4763_vm5, %v4629_v57, %v724_v41  ;;  %v575_v41 = vld [vmem:[%s6985_s2 + $0x30] sm:$0xff] }
 0x123   :  { %1236 = vperm.xlu2 %3764, %v1172_v51   ;;  %3815 = vrsqrt.f32 %v4726_v0  ;;  %v750_v5 = vmul.f32 %v4731_v28, %v4668_v21  ;;  %v4751_v33 = vpop.eup %3811  ;;  %v4753_v51 = vadd.f32 1e-05, %v532_v27  ;;  %v4768_v27 = vadd.f32 1e-05, %v533_v34 }
 0x124   :  { %1241 = vperm.xlu1 %3763, %v1173_v48   ;;  %v791_v26 = vmul.f32 %v4728_v46, %v790_v47  ;;  %v768_v29 = vsel %vm767_vm2, %v4673_v35, %v764_v56  ;;  %v4755_v37 = vpop.eup %3813  ;;  %v780_v56 = vmul.f32 %v4751_v33, %v4706_v13  ;;  %v1174_v57 = vmul.f32 %v728_v63, %v574_v45 }
 0x125   :  { %v1178_v48 = vmul.f32 %v768_v29, %v578_v6  ;;  %v751_v54 = vmul.f32 %v4731_v28, %v750_v5  ;;  %3817 = vrsqrt.f32 %v4753_v51  ;;  %v734_v5 = vmul.f32 %v4666_v36, %v733_v42 }
 0x126   :  { %v422_v23 = vpop.xlane.xlu1 %421  ;;  %v425_v17 = vpop.xlane.xlu2 %424  ;;  %v792_v35 = vmul.f32 0.5, %v791_v26  ;;  %v742_v26 = vmul.f32 0.5, %v741_v53  ;;  %v770_v34 = vmul.f32 %v4755_v37, %v4720_v22  ;;  %vm796_vm10 = vweird.f32 %v4728_v46 }
 0x127   :  { %v537_v43 = vmul.f32 0.020408163, %v425_v17  ;;  %v419_v32 = vpop.xlane.xlu0 %418  ;;  %v752_v42 = vmul.f32 0.5, %v751_v54  ;;  %v738_v45 = vsel %vm737_vm8, %v4666_v36, %v734_v5  ;;  %vm797_vm14 = vmor %vm795_vm12, %vm796_vm10  ;;  %vm756_vm0 = vweird.f32 %v4731_v28 }
 0x128   :  { %1266 = vperm.xlu0 %3765, %v1178_v48   ;;  %v793_v29 = vsub.f32 1.5, %v792_v35  ;;  %v781_v35 = vmul.f32 %v4751_v33, %v780_v56  ;;  %v771_v63 = vmul.f32 %v4755_v37, %v770_v34  ;;  %v1175_v54 = vmul.f32 %v738_v45, %v575_v41  ;;  %vm757_vm1 = vmor %vm755_vm9, %vm756_vm0 }
 0x129   :  { %v4759_v47 = vadd.f32 1e-05, %v537_v43  ;;  %v4761_v17 = vpop.eup %3815  ;;  %v536_v43 = vmul.f32 0.020408163, %v422_v23  ;;  %v743_v50 = vsub.f32 1.5, %v742_v26  ;;  %vm825_vm5 = vweird.f32 %v4726_v0 }
 0x12a   :  { %v820_v6 = vmul.f32 %v4761_v17, %v4726_v0  ;;  %v794_v62 = vmul.f32 %v4728_v46, %v793_v29  ;;  %v4811_v5 = vmul.f32 0.5, %v781_v35  ;;  %v772_v30 = vmul.f32 0.5, %v771_v63 }
 0x12b   :  { %3819 = vrsqrt.f32 %v4759_v47  ;;  %1246 = vperm.xlu2 %3764, %v1174_v57   ;;  %v4798_v9 = vadd.f32 1e-05, %v536_v43  ;;  %v4800_v7 = vpop.eup %3817  ;;  %v581_v43 = vld [vmem:[%s6985_s2 + $0x60] sm:$0xff]  ;;  %v744_v35 = vmul.f32 %v4724_v60, %v743_v50  ;;  %vm826_vm2 = vweird.f32 %v4761_v17 }
 0x12c   :  { %v821_v48 = vmul.f32 %v4761_v17, %v820_v6  ;;  %3821 = vrsqrt.f32 %v4768_v27  ;;  %v535_v6 = vmul.f32 0.020408163, %v419_v32  ;;  %v753_v32 = vsub.f32 1.5, %v752_v42  ;;  %1251 = vperm.xlu1 %3763, %v1175_v54   ;;  %vm827_vm7 = vmor %vm825_vm5, %vm826_vm2 }
 0x12d   :  { %3823 = vrsqrt.f32 %v4798_v9  ;;  %v748_v10 = vsel %vm747_vm15, %v4724_v60, %v744_v35  ;;  %v773_v21 = vsub.f32 1.5, %v772_v30  ;;  %v783_v30 = vsub.f32 1.5, %v4811_v5 }
 0x12e   :  { %v431_v4 = vpop.xlane.xlu1 %430  ;;  %v434_v20 = vpop.xlane.xlu2 %433  ;;  %v4813_v26 = vadd.f32 1e-05, %v535_v6  ;;  %v754_v63 = vmul.f32 %v4731_v28, %v753_v32  ;;  %vm786_vm6 = vweird.f32 %v4751_v33  ;;  %vm776_vm8 = vweird.f32 %v4755_v37 }
 0x12f   :  { %v540_v23 = vmul.f32 0.020408163, %v434_v20  ;;  %v428_v53 = vpop.xlane.xlu0 %427  ;;  %v822_v20 = vmul.f32 0.5, %v821_v48  ;;  %v800_v48 = vmul.f32 %v4800_v7, %v4753_v51  ;;  %v539_v57 = vmul.f32 0.020408163, %v431_v4  ;;  %vm777_vm11 = vmor %vm775_vm4, %vm776_vm8 }
 0x130   :  { %v538_v34 = vmul.f32 0.020408163, %v428_v53  ;;  %v576_v53 = vld [vmem:[%s6985_s2 + $0x38] sm:$0xff]  ;;  %v758_v32 = vsel %vm757_vm1, %v4731_v28, %v754_v63  ;;  %vm805_vm10 = vweird.f32 %v4753_v51  ;;  %vm815_vm12 = vweird.f32 %v4768_v27  ;;  %vm787_vm13 = vmor %vm785_vm3, %vm786_vm6 }
 0x131   :  { %v4804_v56 = vpop.eup %3819  ;;  %v4808_v36 = vadd.f32 1e-05, %v540_v23  ;;  %v823_v41 = vsub.f32 1.5, %v822_v20  ;;  %v798_v23 = vsel %vm797_vm14, %v4728_v46, %v794_v62  ;;  %v577_v46 = vld [vmem:[%s6985_s2 + $0x40] sm:$0xff]  ;;  %v801_v62 = vmul.f32 %v4800_v7, %v800_v48 }
 0x132   :  { %v4818_v29 = vpop.eup %3821  ;;  %v850_v42 = vmul.f32 %v4804_v56, %v4759_v47  ;;  %v1181_v4 = vmul.f32 %v798_v23, %v581_v43  ;;  %v4845_v20 = vadd.f32 1e-05, %v538_v34  ;;  %v1176_v43 = vmul.f32 %v748_v10, %v576_v53 }
 0x133   :  { %3825 = vrsqrt.f32 %v4808_v36  ;;  %v810_v50 = vmul.f32 %v4818_v29, %v4768_v27  ;;  %v4854_v14 = vadd.f32 1e-05, %v539_v57  ;;  %v1177_v34 = vmul.f32 %v758_v32, %v577_v46  ;;  %v4856_v31 = vpop.eup %3823  ;;  %v584_v57 = vld [vmem:[%s6985_s2 + $0x78] sm:$0xff] }
 0x134   :  { %3827 = vrsqrt.f32 %v4813_v26  ;;  %1281 = vperm.xlu0 %3765, %v1181_v4   ;;  %v851_v8 = vmul.f32 %v4804_v56, %v850_v42  ;;  %1256 = vperm.xlu2 %3764, %v1176_v43   ;;  %v824_v48 = vmul.f32 %v4761_v17, %v823_v41  ;;  %v4875_v41 = vmul.f32 0.5, %v801_v62 }
 0x135   :  { %v811_v28 = vmul.f32 %v4818_v29, %v810_v50  ;;  %3829 = vrsqrt.f32 %v4845_v20  ;;  %1261 = vperm.xlu1 %3763, %v1177_v34   ;;  %v840_v53 = vmul.f32 %v4856_v31, %v4798_v9  ;;  %v579_v50 = vld [vmem:[%s6985_s2 + $0x50] sm:$0xff]  ;;  %v774_v10 = vmul.f32 %v4755_v37, %v773_v21 }
 0x136   :  { %v440_v6 = vpop.xlane.xlu1 %439  ;;  %v443_v45 = vpop.xlane.xlu2 %442  ;;  %v852_v35 = vmul.f32 0.5, %v851_v8  ;;  %vm816_vm9 = vweird.f32 %v4818_v29  ;;  %v784_v34 = vmul.f32 %v4751_v33, %v783_v30  ;;  %vm806_vm14 = vweird.f32 %v4800_v7 }
 0x137   :  { %v437_v54 = vpop.xlane.xlu0 %436  ;;  %v543_v23 = vmul.f32 0.020408163, %v443_v45  ;;  %v828_v45 = vsel %vm827_vm7, %v4761_v17, %v824_v48  ;;  %v812_v43 = vmul.f32 0.5, %v811_v28  ;;  %v778_v32 = vsel %vm777_vm11, %v4755_v37, %v774_v10  ;;  %v587_v10 = vld [vmem:[%s6985_s2 + $0x90] sm:$0xff]  ;;  %vm807_vm3 = vmor %vm805_vm10, %vm806_vm14 }
 0x138   :  { %v541_v46 = vmul.f32 0.020408163, %v437_v54  ;;  %v1184_v63 = vmul.f32 %v828_v45, %v584_v57  ;;  %v542_v54 = vmul.f32 0.020408163, %v440_v6  ;;  %v853_v22 = vsub.f32 1.5, %v852_v35  ;;  %vm817_vm4 = vmor %vm815_vm12, %vm816_vm9 }
 0x139   :  { %v4859_v60 = vadd.f32 1e-05, %v543_v23  ;;  %v4869_v42 = vpop.eup %3825  ;;  %v580_v23 = vld [vmem:[%s6985_s2 + $0x58] sm:$0xff]  ;;  %v1179_v6 = vmul.f32 %v778_v32, %v579_v50  ;;  %v803_v37 = vsub.f32 1.5, %v4875_v41  ;;  %v841_v57 = vmul.f32 %v4856_v31, %v840_v53 }
 0x13a   :  { %v4878_v0 = vpop.eup %3827  ;;  %v880_v8 = vmul.f32 %v4869_v42, %v4808_v36  ;;  %v4916_v45 = vadd.f32 1e-05, %v541_v46  ;;  %v788_v30 = vsel %vm787_vm13, %v4751_v33, %v784_v34  ;;  %vm856_vm15 = vweird.f32 %v4804_v56 }
 0x13b   :  { %3831 = vrsqrt.f32 %v4859_v60  ;;  %v830_v17 = vmul.f32 %v4878_v0, %v4813_v26  ;;  %v4905_v21 = vpop.eup %3829  ;;  %v1180_v35 = vmul.f32 %v788_v30, %v580_v23  ;;  %vm855_vm0 = vweird.f32 %v4759_v47 }
 0x13c   :  { %3833 = vrsqrt.f32 %v4854_v14  ;;  %1296 = vperm.xlu0 %3765, %v1184_v63   ;;  %v881_v13 = vmul.f32 %v4869_v42, %v880_v8  ;;  %1271 = vperm.xlu2 %3764, %v1179_v6   ;;  %v4927_v53 = vadd.f32 1e-05, %v542_v54  ;;  %v860_v33 = vmul.f32 %v4905_v21, %v4845_v20  ;;  %vm857_vm2 = vmor %vm855_vm0, %vm856_vm15 }
 0x13d   :  { %v831_v41 = vmul.f32 %v4878_v0, %v830_v17  ;;  %1276 = vperm.xlu1 %3763, %v1180_v35   ;;  %v4938_v8 = vmul.f32 0.5, %v841_v57  ;;  %vm845_vm1 = vweird.f32 %v4798_v9  ;;  %vm835_vm5 = vweird.f32 %v4813_v26 }
 0x13e   :  { %v4884_v5 = vpop.xlane.xlu1 %448  ;;  %v452_v4 = vpop.xlane.xlu2 %451  ;;  %v882_v23 = vmul.f32 0.5, %v881_v13  ;;  %vm846_vm6 = vweird.f32 %v4856_v31  ;;  %vm836_vm7 = vweird.f32 %v4878_v0  ;;  %vm885_vm8 = vweird.f32 %v4808_v36 }
 0x13f   :  { %v446_v62 = vpop.xlane.xlu0 %445  ;;  %v546_v48 = vmul.f32 0.020408163, %v452_v4  ;;  %v813_v4 = vsub.f32 1.5, %v812_v43  ;;  %v854_v43 = vmul.f32 %v4804_v56, %v853_v22  ;;  %v582_v22 = vld [vmem:[%s6985_s2 + $0x68] sm:$0xff]  ;;  %v832_v57 = vmul.f32 0.5, %v831_v41  ;;  %vm4996_vm9 = vmor %vm845_vm1, %vm846_vm6 }
 0x140   :  { %v544_v34 = vmul.f32 0.020408163, %v446_v62  ;;  %v583_v62 = vld [vmem:[%s6985_s2 + $0x70] sm:$0xff]  ;;  %v545_v27 = vmul.f32 0.020408163, %v4884_v5  ;;  %vm5010_vm10 = vmor %vm835_vm5, %vm836_vm7  ;;  %vm886_vm11 = vweird.f32 %v4869_v42  ;;  %vm915_vm14 = vweird.f32 %v4859_v60 }
 0x141   :  { %v4912_v28 = vpop.eup %3831  ;;  %v4923_v50 = vadd.f32 1e-05, %v546_v48  ;;  %v858_v6 = vsel %vm857_vm2, %v4804_v56, %v854_v43  ;;  %v804_v48 = vmul.f32 %v4800_v7, %v803_v37  ;;  %v814_v56 = vmul.f32 %v4818_v29, %v813_v4  ;;  %vm887_vm12 = vmor %vm885_vm8, %vm886_vm11 }
 0x142   :  { %v4919_v63 = vpop.eup %3833  ;;  %v910_v46 = vmul.f32 %v4912_v28, %v4859_v60  ;;  %v1187_v30 = vmul.f32 %v858_v6, %v587_v10  ;;  %v861_v37 = vmul.f32 %v4905_v21, %v860_v33  ;;  %v883_v6 = vsub.f32 1.5, %v882_v23  ;;  %v5108_v60 = vld [vmem:[%s6985_s2 + $0xa0] sm:$0xff] }
 0x143   :  { %3835 = vrsqrt.f32 %v4923_v50  ;;  %v870_v17 = vmul.f32 %v4919_v63, %v4854_v14  ;;  %v808_v13 = vsel %vm807_vm3, %v4800_v7, %v804_v48  ;;  %v818_v4 = vsel %vm817_vm4, %v4818_v29, %v814_v56 }
 0x144   :  { %3837 = vrsqrt.f32 %v4916_v45  ;;  %v911_v51 = vmul.f32 %v4912_v28, %v910_v46  ;;  %1311 = vperm.xlu0 %3765, %v1187_v30   ;;  %v1182_v10 = vmul.f32 %v808_v13, %v582_v22  ;;  %v4973_v24 = vadd.f32 1e-05, %v544_v34  ;;  %v5023_v13 = vld [vmem:[%s6985_s2 + $0x80] sm:$0xff] }
 0x145   :  { %3839 = vrsqrt.f32 %v4927_v53  ;;  %v871_v41 = vmul.f32 %v4919_v63, %v870_v17  ;;  %v1183_v33 = vmul.f32 %v818_v4, %v583_v62  ;;  %v843_v7 = vsub.f32 1.5, %v4938_v8 }
 0x146   :  { %v461_v47 = vpop.xlane.xlu2 %460  ;;  %v458_v54 = vpop.xlane.xlu1 %457  ;;  %1286 = vperm.xlu2 %3764, %v1182_v10   ;;  %v862_v29 = vmul.f32 0.5, %v861_v37  ;;  %v912_v22 = vmul.f32 0.5, %v911_v51  ;;  %v5002_v56 = vadd.f32 1e-05, %v545_v27  ;;  %v884_v37 = vmul.f32 %v4869_v42, %v883_v6  ;;  %v5017_v51 = vld [vmem:[%s6985_s2 + $0xa8] sm:$0xff] }
 0x147   :  { %v455_v32 = vpop.xlane.xlu0 %454  ;;  %v549_v35 = vmul.f32 0.020408163, %v461_v47  ;;  %v833_v47 = vsub.f32 1.5, %v832_v57  ;;  %1291 = vperm.xlu1 %3763, %v1183_v33   ;;  %v4986_v48 = vmul.f32 0.5, %v871_v41  ;;  %v548_v9 = vmul.f32 0.020408163, %v458_v54 }
 0x148   :  { %v547_v8 = vmul.f32 0.020408163, %v455_v32  ;;  %v844_v26 = vmul.f32 %v4856_v31, %v843_v7  ;;  %v863_v10 = vsub.f32 1.5, %v862_v29  ;;  %v913_v4 = vsub.f32 1.5, %v912_v22  ;;  %v5035_v27 = vld [vmem:[%s6985_s2 + $0x88] sm:$0xff] }
 0x149   :  { %v4970_v43 = vpop.eup %3835  ;;  %v4979_v17 = vadd.f32 1e-05, %v549_v35  ;;  %v834_v35 = vmul.f32 %v4878_v0, %v833_v47  ;;  %v888_v7 = vsel %vm887_vm12, %v4869_v42, %v884_v37  ;;  %vm916_vm13 = vweird.f32 %v4912_v28 }
 0x14a   :  { %v4975_v46 = vpop.eup %3837  ;;  %v940_v5 = vmul.f32 %v4970_v43, %v4923_v50  ;;  %v5037_v33 = vadd.f32 1e-05, %v547_v8  ;;  %v848_v29 = vsel %vm4996_vm9, %v4856_v31, %v844_v26  ;;  %v1190_v22 = vmul.f32 %v888_v7, %v5017_v51  ;;  %vm5072_vm0 = vmor %vm915_vm14, %vm916_vm13 }
 0x14b   :  { %v4984_v34 = vpop.eup %3839  ;;  %3841 = vrsqrt.f32 %v4979_v17  ;;  %v890_v62 = vmul.f32 %v4975_v46, %v4916_v45  ;;  %v838_v47 = vsel %vm5010_vm10, %v4878_v0, %v834_v35  ;;  %v5053_v42 = vadd.f32 1e-05, %v548_v9 }
 0x14c   :  { %3843 = vrsqrt.f32 %v4973_v24  ;;  %v900_v54 = vmul.f32 %v4984_v34, %v4927_v53  ;;  %v941_v6 = vmul.f32 %v4970_v43, %v940_v5  ;;  %v1185_v5 = vmul.f32 %v838_v47, %v5023_v13  ;;  %1326 = vperm.xlu0 %3765, %v1190_v22  }
 0x14d   :  { %v891_v36 = vmul.f32 %v4975_v46, %v890_v62  ;;  %3845 = vrsqrt.f32 %v5002_v56  ;;  %v1186_v0 = vmul.f32 %v848_v29, %v5035_v27  ;;  %v873_v31 = vsub.f32 1.5, %v4986_v48 }
 0x14e   :  { %v470_v23 = vpop.xlane.xlu2 %469  ;;  %v467_v41 = vpop.xlane.xlu1 %466  ;;  %v942_v30 = vmul.f32 0.5, %v941_v6  ;;  %1301 = vperm.xlu2 %3764, %v1185_v5   ;;  %v914_v62 = vmul.f32 %v4912_v28, %v913_v4  ;;  %v901_v26 = vmul.f32 %v4984_v34, %v900_v54  ;;  %3847 = vrsqrt.f32 %v5037_v33  ;;  %v5083_v4 = vld [vmem:[%s6985_s2 + $0xc0] sm:$0xff] }
 0x14f   :  { %v4990_v57 = vpop.xlane.xlu0 %463  ;;  %v552_v37 = vmul.f32 0.020408163, %v470_v23  ;;  %1306 = vperm.xlu1 %3763, %v1186_v0   ;;  %vm866_vm15 = vweird.f32 %v4905_v21  ;;  %v892_v48 = vmul.f32 0.5, %v891_v36  ;;  %v864_v54 = vmul.f32 %v4905_v21, %v863_v10 }
 0x150   :  { %vm875_vm1 = vweird.f32 %v4854_v14  ;;  %vm865_vm2 = vweird.f32 %v4845_v20  ;;  %3849 = vrsqrt.f32 %v5053_v42  ;;  %v918_v6 = vsel %vm5072_vm0, %v4912_v28, %v914_v62  ;;  %v5096_v20 = vld [vmem:[%s6985_s2 + $0x98] sm:$0xff] }
 0x151   :  { %v5050_v8 = vpop.eup %3841  ;;  %v5065_v23 = vadd.f32 1e-05, %v552_v37  ;;  %v943_v29 = vsub.f32 1.5, %v942_v30  ;;  %v874_v36 = vmul.f32 %v4919_v63, %v873_v31  ;;  %vm867_vm3 = vmor %vm865_vm2, %vm866_vm15  ;;  %v902_v22 = vmul.f32 0.5, %v901_v26 }
 0x152   :  { %v5056_v32 = vpop.eup %3843  ;;  %v970_v9 = vmul.f32 %v5050_v8, %v4979_v17  ;;  %vm945_vm4 = vweird.f32 %v4923_v50  ;;  %v551_v5 = vmul.f32 0.020408163, %v467_v41  ;;  %v893_v37 = vsub.f32 1.5, %v892_v48  ;;  %v5153_v50 = vld [vmem:[%s6985_s2 + $0xd8] sm:$0xff] }
 0x153   :  { %v5088_v47 = vpop.eup %3845  ;;  %v920_v10 = vmul.f32 %v5056_v32, %v4973_v24  ;;  %3851 = vrsqrt.f32 %v5065_v23  ;;  %v1193_v30 = vmul.f32 %v918_v6, %v5083_v4  ;;  %v868_v62 = vsel %vm867_vm3, %v4905_v21, %v864_v54 }
 0x154   :  { %v971_v28 = vmul.f32 %v5050_v8, %v970_v9  ;;  %vm876_vm5 = vweird.f32 %v4919_v63  ;;  %v5111_v31 = vpop.eup %3847  ;;  %v930_v26 = vmul.f32 %v5088_v47, %v5002_v56  ;;  %vm946_vm6 = vweird.f32 %v4970_v43 }
 0x155   :  { %v1188_v41 = vmul.f32 %v868_v62, %v5096_v20  ;;  %vm877_vm7 = vmor %vm875_vm1, %vm876_vm5  ;;  %v921_v9 = vmul.f32 %v5056_v32, %v920_v10  ;;  %v550_v48 = vmul.f32 0.020408163, %v4990_v57  ;;  %1341 = vperm.xlu0 %3765, %v1193_v30   ;;  %v944_v6 = vmul.f32 %v4970_v43, %v943_v29 }
 0x156   :  { %v479_v35 = vpop.xlane.xlu2 %478  ;;  %v476_v0 = vpop.xlane.xlu1 %475  ;;  %v878_v54 = vsel %vm877_vm7, %v4919_v63, %v874_v36  ;;  %v972_v39 = vmul.f32 0.5, %v971_v28  ;;  %v5125_v25 = vadd.f32 1e-05, %v551_v5  ;;  %vm905_vm8 = vweird.f32 %v4927_v53  ;;  %vm5140_vm10 = vmor %vm945_vm4, %vm946_vm6 }
 0x157   :  { %v5067_v7 = vpop.xlane.xlu0 %472  ;;  %v555_v21 = vmul.f32 0.020408163, %v479_v35  ;;  %v5123_v61 = vpop.eup %3849  ;;  %1316 = vperm.xlu2 %3764, %v1188_v41   ;;  %v1189_v14 = vmul.f32 %v878_v54, %v5108_v60  ;;  %vm896_vm9 = vweird.f32 %v4975_v46  ;;  %v950_v57 = vmul.f32 %v5111_v31, %v5037_v33 }
 0x158   :  { %v894_v29 = vmul.f32 %v4975_v46, %v893_v37  ;;  %v903_v36 = vsub.f32 1.5, %v902_v22  ;;  %vm895_vm11 = vweird.f32 %v4916_v45  ;;  %v948_v5 = vsel %vm5140_vm10, %v4970_v43, %v944_v6  ;;  %v5166_v45 = vld [vmem:[%s6985_s2 + $0xb0] sm:$0xff] }
 0x159   :  { %v5128_v62 = vadd.f32 1e-05, %v555_v21  ;;  %v5132_v10 = vpop.eup %3851  ;;  %1321 = vperm.xlu1 %3763, %v1189_v14   ;;  %vm906_vm12 = vweird.f32 %v4984_v34  ;;  %v931_v37 = vmul.f32 %v5088_v47, %v930_v26  ;;  %v5160_v22 = vadd.f32 1e-05, %v550_v48  ;;  %vm897_vm13 = vmor %vm895_vm11, %vm896_vm9 }
 0x15a   :  { %v1000_v28 = vmul.f32 %v5132_v10, %v5065_v23  ;;  %v922_v30 = vmul.f32 0.5, %v921_v9  ;;  %v960_v43 = vmul.f32 %v5123_v61, %v5053_v42  ;;  %v973_v41 = vsub.f32 1.5, %v972_v39  ;;  %v5182_v9 = vld [vmem:[%s6985_s2 + $0xb8] sm:$0xff]  ;;  %vm5189_vm14 = vmor %vm905_vm8, %vm906_vm12 }
 0x15b   :  { %3853 = vrsqrt.f32 %v5128_v62  ;;  %v951_v26 = vmul.f32 %v5111_v31, %v950_v57  ;;  %v554_v21 = vmul.f32 0.020408163, %v476_v0  ;;  %v1196_v48 = vmul.f32 %v948_v5, %v5153_v50 }
 0x15c   :  { %3855 = vrsqrt.f32 %v5125_v25  ;;  %v898_v54 = vsel %vm897_vm13, %v4975_v46, %v894_v29  ;;  %v1001_v6 = vmul.f32 %v5132_v10, %v1000_v28  ;;  %v553_v14 = vmul.f32 0.020408163, %v5067_v7 }
 0x15d   :  { %v1191_v63 = vmul.f32 %v898_v54, %v5166_v45  ;;  %v904_v39 = vmul.f32 %v4984_v34, %v903_v36  ;;  %v932_v0 = vmul.f32 0.5, %v931_v37  ;;  %vm935_vm15 = vweird.f32 %v5002_v56  ;;  %1356 = vperm.xlu0 %3765, %v1196_v48  }
 0x15e   :  { %v488_v3 = vpop.xlane.xlu2 %487  ;;  %v485_v58 = vpop.xlane.xlu1 %484  ;;  %vm925_vm0 = vweird.f32 %v4973_v24  ;;  %3857 = vrsqrt.f32 %v5160_v22  ;;  %v923_v29 = vsub.f32 1.5, %v922_v30  ;;  %vm976_vm1 = vweird.f32 %v5050_v8 }
 0x15f   :  { %v5130_v35 = vpop.xlane.xlu0 %481  ;;  %v558_v7 = vmul.f32 0.020408163, %v488_v3  ;;  %1331 = vperm.xlu2 %3764, %v1191_v63   ;;  %v908_v53 = vsel %vm5189_vm14, %v4984_v34, %v904_v39  ;;  %v974_v36 = vmul.f32 %v5050_v8, %v973_v41  ;;  %v961_v5 = vmul.f32 %v5123_v61, %v960_v43 }
 0x160   :  { %v952_v37 = vmul.f32 0.5, %v951_v26  ;;  %v5204_v54 = vadd.f32 1e-05, %v554_v21  ;;  %v1192_v3 = vmul.f32 %v908_v53, %v5182_v9  ;;  %vm975_vm2 = vweird.f32 %v4979_v17  ;;  %v599_v17 = vld [vmem:[%s6985_s2 + $0xf0] sm:$0xff] }
 0x161   :  { %v5201_v28 = vpop.eup %3853  ;;  %v1002_v63 = vmul.f32 0.5, %v1001_v6  ;;  %v5212_v39 = vadd.f32 1e-05, %v553_v14  ;;  %v933_v41 = vsub.f32 1.5, %v932_v0  ;;  %vm926_vm3 = vweird.f32 %v5056_v32  ;;  %vm5217_vm4 = vmor %vm975_vm2, %vm976_vm1 }
 0x162   :  { %v5207_v30 = vpop.eup %3855  ;;  %v1030_v34 = vmul.f32 %v5201_v28, %v5128_v62  ;;  %1336 = vperm.xlu1 %3763, %v1192_v3   ;;  %v557_v26 = vmul.f32 0.020408163, %v485_v58  ;;  %v5221_v21 = vadd.f32 1e-05, %v558_v7  ;;  %vm936_vm5 = vweird.f32 %v5088_v47  ;;  %v5240_v3 = vld [vmem:[%s6985_s2 + $0xc8] sm:$0xff]  ;;  %vm5246_vm6 = vmor %vm925_vm0, %vm926_vm3 }
 0x163   :  { %v556_v6 = vmul.f32 0.020408163, %v5130_v35  ;;  %v978_v14 = vsel %vm5217_vm4, %v5050_v8, %v974_v36  ;;  %v924_v46 = vmul.f32 %v5056_v32, %v923_v29  ;;  %v962_v53 = vmul.f32 0.5, %v961_v5  ;;  %vm937_vm8 = vmor %vm935_vm15, %vm936_vm5 }
 0x164   :  { %v5232_v0 = vpop.eup %3857  ;;  %v953_v58 = vsub.f32 1.5, %v952_v37  ;;  %v990_v7 = vmul.f32 %v5207_v30, %v5125_v25  ;;  %3859 = vrsqrt.f32 %v5204_v54  ;;  %v1003_v35 = vsub.f32 1.5, %v1002_v63  ;;  %v5262_v37 = vld [vmem:[%s6985_s2 + $0xd0] sm:$0xff] }
 0x165   :  { %v1031_v29 = vmul.f32 %v5201_v28, %v1030_v34  ;;  %3861 = vrsqrt.f32 %v5212_v39  ;;  %v1199_v36 = vmul.f32 %v978_v14, %v599_v17  ;;  %vm965_vm7 = vweird.f32 %v5053_v42 }
 0x166   :  { %v497_v57 = vpop.xlane.xlu2 %496  ;;  %v5253_v5 = vadd.f32 1e-05, %v557_v26  ;;  %3863 = vrsqrt.f32 %v5221_v21  ;;  %v928_v24 = vsel %vm5246_vm6, %v5056_v32, %v924_v46  ;;  %v934_v63 = vmul.f32 %v5088_v47, %v933_v41  ;;  %v494_v17 = vpop.xlane.xlu1 %493 }
 0x167   :  { %v491_v48 = vpop.xlane.xlu0 %490  ;;  %v980_v43 = vmul.f32 %v5232_v0, %v5160_v22  ;;  %v5271_v26 = vadd.f32 1e-05, %v556_v6  ;;  %1371 = vperm.xlu0 %3765, %v1199_v36   ;;  %v1194_v32 = vmul.f32 %v928_v24, %v5240_v3  ;;  %v561_v14 = vmul.f32 0.020408163, %v497_v57 }
 0x168   :  { %v963_v46 = vsub.f32 1.5, %v962_v53  ;;  %vm956_vm9 = vweird.f32 %v5111_v31  ;;  %vm1006_vm10 = vweird.f32 %v5132_v10  ;;  %v938_v41 = vsel %vm937_vm8, %v5088_v47, %v934_v63 }
 0x169   :  { %v991_v56 = vmul.f32 %v5207_v30, %v990_v7  ;;  %v1032_v8 = vmul.f32 0.5, %v1031_v29  ;;  %1346 = vperm.xlu2 %3764, %v1194_v32   ;;  %v1195_v44 = vmul.f32 %v938_v41, %v5262_v37  ;;  %v5279_v6 = vadd.f32 1e-05, %v561_v14  ;;  %v5294_v29 = vld [vmem:[%s6985_s2 + $0x108] sm:$0xff] }
 0x16a   :  { %v5281_v36 = vpop.eup %3859  ;;  %3865 = vrsqrt.f32 %v5253_v5  ;;  %v559_v57 = vmul.f32 0.020408163, %v491_v48  ;;  %v1004_v53 = vmul.f32 %v5132_v10, %v1003_v35  ;;  %v954_v24 = vmul.f32 %v5111_v31, %v953_v58 }
 0x16b   :  { %v5286_v18 = vpop.eup %3861  ;;  %vm1005_vm11 = vweird.f32 %v5065_v23  ;;  %v981_v47 = vmul.f32 %v5232_v0, %v980_v43  ;;  %3867 = vrsqrt.f32 %v5271_v26  ;;  %1351 = vperm.xlu1 %3763, %v1195_v44   ;;  %v560_v7 = vmul.f32 0.020408163, %v494_v17  ;;  %v5306_v44 = vld [vmem:[%s6985_s2 + $0xe0] sm:$0xff] }
 0x16c   :  { %v5296_v48 = vpop.eup %3863  ;;  %vm966_vm12 = vweird.f32 %v5123_v61  ;;  %vm955_vm13 = vweird.f32 %v5037_v33  ;;  %vm1007_vm14 = vmor %vm1005_vm11, %vm1006_vm10  ;;  %3869 = vrsqrt.f32 %v5279_v6  ;;  %7111 = vst [vmem:[#allocation46_spill] sm:$0xff] %v5306_v44  ;;  %v964_v23 = vmul.f32 %v5123_v61, %v963_v46  ;;  %v5323_v46 = vld [vmem:[%s6985_s2 + $0xe8] sm:$0xff] }
 0x16d   :  { %vm957_vm15 = vmor %vm955_vm13, %vm956_vm9  ;;  %v992_v58 = vmul.f32 0.5, %v991_v56  ;;  %v1020_v35 = vmul.f32 %v5281_v36, %v5204_v54  ;;  %v1033_v33 = vsub.f32 1.5, %v1032_v8  ;;  %v1008_v63 = vsel %vm1007_vm14, %v5132_v10, %v1004_v53  ;;  %7112 = vst [vmem:[#allocation47_spill] sm:$0xff] %v5323_v46 }
 0x16e   :  { %v506_v34 = vpop.xlane.xlu2 %505  ;;  %v1010_v43 = vmul.f32 %v5286_v18, %v5212_v39  ;;  %v5316_v32 = vadd.f32 1e-05, %v559_v57  ;;  %v1202_v17 = vmul.f32 %v1008_v63, %v5294_v29  ;;  %v958_v14 = vsel %vm957_vm15, %v5111_v31, %v954_v24  ;;  %vm967_vm0 = vmor %vm965_vm7, %vm966_vm12  ;;  %v503_v63 = vpop.xlane.xlu1 %502 }
 0x16f   :  { %v500_v11 = vpop.xlane.xlu0 %499  ;;  %v982_v10 = vmul.f32 0.5, %v981_v47  ;;  %v1060_v56 = vmul.f32 %v5296_v48, %v5221_v21  ;;  %v5333_v8 = vadd.f32 1e-05, %v560_v7  ;;  %v1197_v31 = vmul.f32 %v958_v14, %v5306_v44 }
 0x170   :  { %v5336_v57 = vpop.eup %3865  ;;  %vm996_vm1 = vweird.f32 %v5207_v30  ;;  %vm1036_vm2 = vweird.f32 %v5201_v28  ;;  %1386 = vperm.xlu0 %3765, %v1202_v17   ;;  %v968_v53 = vsel %vm967_vm0, %v5123_v61, %v964_v23  ;;  %v564_v24 = vmul.f32 0.020408163, %v506_v34 }
 0x171   :  { %v5341_v42 = vpop.eup %3867  ;;  %v993_v47 = vsub.f32 1.5, %v992_v58  ;;  %vm1035_vm3 = vweird.f32 %v5128_v62  ;;  %1361 = vperm.xlu2 %3764, %v1197_v31   ;;  %v1198_v7 = vmul.f32 %v968_v53, %v5323_v46  ;;  %v1034_v14 = vmul.f32 %v5201_v28, %v1033_v33  ;;  %v5395_v62 = vld [vmem:[%s6985_s2 + $0xf8] sm:$0xff] }
 0x172   :  { %v5346_v52 = vpop.eup %3869  ;;  %v1021_v40 = vmul.f32 %v5281_v36, %v1020_v35  ;;  %v1011_v17 = vmul.f32 %v5286_v18, %v1010_v43  ;;  %3871 = vrsqrt.f32 %v5316_v32  ;;  %v562_v61 = vmul.f32 0.020408163, %v500_v11  ;;  %vm5353_vm4 = vmor %vm1035_vm3, %vm1036_vm2  ;;  %v5368_v43 = vld [vmem:[%s6985_s2 + $0x120] sm:$0xff]  ;;  %7117 = vst [vmem:[#allocation48_spill] sm:$0xff] %v5395_v62 }
 0x173   :  { %v983_v34 = vsub.f32 1.5, %v982_v10  ;;  %v1061_v23 = vmul.f32 %v5296_v48, %v1060_v56  ;;  %3873 = vrsqrt.f32 %v5333_v8  ;;  %1366 = vperm.xlu1 %3763, %v1198_v7   ;;  %v5359_v58 = vadd.f32 1e-05, %v564_v24 }
 0x174   :  { %v1040_v35 = vmul.f32 %v5341_v42, %v5271_v26  ;;  %v1090_v11 = vmul.f32 %v5346_v52, %v5279_v6  ;;  %v563_v33 = vmul.f32 0.020408163, %v503_v63  ;;  %v1038_v10 = vsel %vm5353_vm4, %v5201_v28, %v1034_v14 }
 0x175   :  { %vm995_vm5 = vweird.f32 %v5125_v25  ;;  %vm986_vm6 = vweird.f32 %v5232_v0  ;;  %v1050_v31 = vmul.f32 %v5336_v57, %v5253_v5  ;;  %3875 = vrsqrt.f32 %v5359_v58 }
 0x176   :  { %v5325_v41 = vpop.xlane.xlu2 %514  ;;  %vm985_vm7 = vweird.f32 %v5160_v22  ;;  %v1022_v53 = vmul.f32 0.5, %v1021_v40  ;;  %v1012_v24 = vmul.f32 0.5, %v1011_v17  ;;  %v5381_v7 = vadd.f32 1e-05, %v562_v61  ;;  %vm5387_vm8 = vmor %vm995_vm5, %vm996_vm1  ;;  %v5401_v22 = vld [vmem:[%s6985_s2 + $0x100] sm:$0xff] }
 0x177   :  { %v5373_v56 = vpop.xlane.xlu0 %508  ;;  %v1062_v25 = vmul.f32 0.5, %v1061_v23  ;;  %v1205_v14 = vmul.f32 %v1038_v10, %v5368_v43  ;;  %v984_v40 = vmul.f32 %v5232_v0, %v983_v34  ;;  %v994_v17 = vmul.f32 %v5207_v30, %v993_v47  ;;  %vm987_vm9 = vmor %vm985_vm7, %vm986_vm6 }
 0x178   :  { %v5404_v61 = vpop.eup %3871  ;;  %v1041_v23 = vmul.f32 %v5341_v42, %v1040_v35  ;;  %v1091_v10 = vmul.f32 %v5346_v52, %v1090_v11  ;;  %v5410_v1 = vadd.f32 1e-05, %v563_v33  ;;  %v1051_v34 = vmul.f32 %v5336_v57, %v1050_v31 }
 0x179   :  { %v5412_v46 = vpop.eup %3873  ;;  %1401 = vperm.xlu0 %3765, %v1205_v14   ;;  %v988_v38 = vsel %vm987_vm9, %v5232_v0, %v984_v40  ;;  %v998_v47 = vsel %vm5387_vm8, %v5207_v30, %v994_v17  ;;  %vm1026_vm10 = vweird.f32 %v5281_v36  ;;  %3877 = vrsqrt.f32 %v5381_v7 }
 0x17a   :  { %v1200_v35 = vmul.f32 %v988_v38, %v5395_v62  ;;  %v1201_v11 = vmul.f32 %v998_v47, %v5401_v22  ;;  %v1023_v44 = vsub.f32 1.5, %v1022_v53  ;;  %v1013_v55 = vsub.f32 1.5, %v1012_v24  ;;  %v5471_v62 = vpop.xlane.xlu1 %511 }
 0x17b   :  { %v5423_v33 = vpop.eup %3875  ;;  %v1063_v31 = vsub.f32 1.5, %v1062_v25  ;;  %v1070_v0 = vmul.f32 %v5404_v61, %v5316_v32  ;;  %v1042_v14 = vmul.f32 0.5, %v1041_v23  ;;  %v1092_v40 = vmul.f32 0.5, %v1091_v10 }
 0x17c   :  { %3879 = vrsqrt.f32 %v5410_v1  ;;  %v1120_v30 = vmul.f32 %v5423_v33, %v5359_v58  ;;  %1376 = vperm.xlu2 %3764, %v1200_v35   ;;  %1381 = vperm.xlu1 %3763, %v1201_v11   ;;  %vm1025_vm11 = vweird.f32 %v5204_v54  ;;  %v1052_v38 = vmul.f32 0.5, %v1051_v34  ;;  %v5462_v35 = vld [vmem:[%s6985_s2 + $0x110] sm:$0xff] }
 0x17d   :  { %vm1066_vm12 = vweird.f32 %v5296_v48  ;;  %v1080_v53 = vmul.f32 %v5412_v46, %v5333_v8  ;;  %vm1015_vm13 = vweird.f32 %v5212_v39  ;;  %vm1016_vm14 = vweird.f32 %v5286_v18  ;;  %vm5442_vm0 = vmor %vm1025_vm11, %vm1026_vm10  ;;  %v5501_v54 = vld [vmem:[%s6985_s2 + $0x150] sm:$0xff] }
 0x17e   :  { %v5383_v63 = vpop.permute.xlu2 %1226  ;;  %vm1065_vm15 = vweird.f32 %v5221_v21  ;;  %v1121_v24 = vmul.f32 %v5423_v33, %v1120_v30  ;;  %vm1056_vm1 = vweird.f32 %v5336_v57  ;;  %vm1046_vm2 = vweird.f32 %v5341_v42  ;;  %v5452_v21 = vld [vmem:[%s6985_s2 + $0x138] sm:$0xff]  ;;  %vm1017_vm4 = vmor %vm1015_vm13, %vm1016_vm14 }
 0x17f   :  { %v518_v28 = vpop.xlane.xlu0 %517  ;;  %v1071_v17 = vmul.f32 %v5404_v61, %v1070_v0  ;;  %v1064_v23 = vmul.f32 %v5296_v48, %v1063_v31  ;;  %v5455_v10 = vpop.eup %3877  ;;  %vm1067_vm3 = vmor %vm1065_vm15, %vm1066_vm12  ;;  %v1043_v34 = vsub.f32 1.5, %v1042_v14  ;;  %v1093_v47 = vsub.f32 1.5, %v1092_v40  ;;  %v5477_v40 = vld [vmem:[%s6985_s2 + $0x118] sm:$0xff] }
 0x180   :  { %v1014_v11 = vmul.f32 %v5286_v18, %v1013_v55  ;;  %v1024_v0 = vmul.f32 %v5281_v36, %v1023_v44  ;;  %v1053_v31 = vsub.f32 1.5, %v1052_v38  ;;  %v1081_v30 = vmul.f32 %v5412_v46, %v1080_v53 }
 0x181   :  { %v1068_v14 = vsel %vm1067_vm3, %v5296_v48, %v1064_v23  ;;  %v568_v55 = vmul.f32 0.020408163, %v518_v28  ;;  %v1122_v44 = vmul.f32 0.5, %v1121_v24  ;;  %vm1096_vm5 = vweird.f32 %v5346_v52 }
 0x182   :  { %v5479_v59 = vpop.eup %3879  ;;  %v1018_v39 = vsel %vm1017_vm4, %v5286_v18, %v1014_v11  ;;  %v1028_v38 = vsel %vm5442_vm0, %v5281_v36, %v1024_v0  ;;  %v1072_v48 = vmul.f32 0.5, %v1071_v17  ;;  %v1100_v53 = vmul.f32 %v5455_v10, %v5381_v7 }
 0x183   :  { %v1203_v23 = vmul.f32 %v1018_v39, %v5462_v35  ;;  %v1204_v28 = vmul.f32 %v1028_v38, %v5477_v40  ;;  %v5491_v24 = vadd.f32 1e-05, %v568_v55  ;;  %v1044_v18 = vmul.f32 %v5341_v42, %v1043_v34  ;;  %v5539_v39 = vld [vmem:[%s6985_s2 + $0x130] sm:$0xff] }
 0x184   :  { %v1082_v11 = vmul.f32 0.5, %v1081_v30  ;;  %vm1095_vm6 = vweird.f32 %v5279_v6  ;;  %v1110_v36 = vmul.f32 %v5479_v59, %v5410_v1  ;;  %vm1045_vm7 = vweird.f32 %v5271_v26 }
 0x185   :  { %1391 = vperm.xlu2 %3764, %v1203_v23   ;;  %vm1097_vm8 = vmor %vm1095_vm6, %vm1096_vm5  ;;  %v1123_v17 = vsub.f32 1.5, %v1122_v44  ;;  %1396 = vperm.xlu1 %3763, %v1204_v28   ;;  %3881 = vrsqrt.f32 %v5491_v24  ;;  %vm1055_vm9 = vweird.f32 %v5253_v5  ;;  %v1073_v0 = vsub.f32 1.5, %v1072_v48  ;;  %v5529_v5 = vld [vmem:[%s6985_s2 + $0x128] sm:$0xff] }
 0x186   :  { %v5438_v25 = vpop.permute.xlu2 %1236  ;;  %vm5513_vm10 = vmor %vm1045_vm7, %vm1046_vm2  ;;  %v1083_v55 = vsub.f32 1.5, %v1082_v11  ;;  %v1111_v44 = vmul.f32 %v5479_v59, %v1110_v36  ;;  %vm1126_vm12 = vweird.f32 %v5423_v33  ;;  %vm1086_vm13 = vweird.f32 %v5412_v46  ;;  %v5602_v28 = vld [vmem:[%s6985_s2 + $0x188] sm:$0xff] }
 0x187   :  { %7118 = vst [vmem:[#allocation49_spill] sm:$0xff] %v5438_v25  ;;  %v1208_v25 = vmul.f32 %v1068_v14, %v5452_v21  ;;  %v1094_v14 = vmul.f32 %v5346_v52, %v1093_v47  ;;  %vm5520_vm11 = vmor %vm1055_vm9, %vm1056_vm1  ;;  %vm1125_vm14 = vweird.f32 %v5359_v58  ;;  %vm1076_vm15 = vweird.f32 %v5404_v61  ;;  %v5561_v58 = vld [vmem:[%s6985_s2 + $0x168] sm:$0xff] }
 0x188   :  { %vm5551_vm0 = vmor %vm1125_vm14, %vm1126_vm12  ;;  %v1112_v11 = vmul.f32 0.5, %v1111_v44  ;;  %vm1075_vm1 = vweird.f32 %v5316_v32  ;;  %vm1085_vm2 = vweird.f32 %v5333_v8  ;;  %v5581_v32 = vld [vmem:[%s6985_s2 + $0x140] sm:$0xff]  ;;  %vm1106_vm6 = vweird.f32 %v5455_v10 }
 0x189   :  { %1416 = vperm.xlu0 %3765, %v1208_v25   ;;  %v1054_v25 = vmul.f32 %v5336_v57, %v1053_v31  ;;  %v1098_v47 = vsel %vm1097_vm8, %v5346_v52, %v1094_v14  ;;  %v1101_v31 = vmul.f32 %v5455_v10, %v1100_v53  ;;  %v1048_v52 = vsel %vm5513_vm10, %v5341_v42, %v1044_v18  ;;  %vm1077_vm3 = vmor %vm1075_vm1, %vm1076_vm15 }
 0x18a   :  { %v1211_v30 = vmul.f32 %v1098_v47, %v5501_v54  ;;  %v1124_v53 = vmul.f32 %v5423_v33, %v1123_v17  ;;  %v1206_v42 = vmul.f32 %v1048_v52, %v5529_v5  ;;  %v1074_v18 = vmul.f32 %v5404_v61, %v1073_v0  ;;  %vm1087_vm4 = vmor %vm1085_vm2, %vm1086_vm13  ;;  %v5587_v52 = vld [vmem:[%s6985_s2 + $0x148] sm:$0xff] }
 0x18b   :  { %v1058_v38 = vsel %vm5520_vm11, %v5336_v57, %v1054_v25  ;;  %v3882_v23 = vpop.eup %3881  ;;  %v1102_v14 = vmul.f32 0.5, %v1101_v31  ;;  %v1084_v17 = vmul.f32 %v5412_v46, %v1083_v55  ;;  %v1113_v8 = vsub.f32 1.5, %v1112_v11 }
 0x18c   :  { %v1207_v57 = vmul.f32 %v1058_v38, %v5539_v39  ;;  %v1160_v36 = vmul.f32 %v3882_v23, %v5491_v24  ;;  %v1128_v25 = vsel %vm5551_vm0, %v5423_v33, %v1124_v53  ;;  %v1078_v31 = vsel %vm1077_vm3, %v5404_v61, %v1074_v18  ;;  %v5613_v18 = vld [vmem:[%s6985_s2 + $0x158] sm:$0xff] }
 0x18d   :  { %1406 = vperm.xlu2 %3764, %v1206_v42   ;;  %v1103_v0 = vsub.f32 1.5, %v1102_v14  ;;  %v1214_v33 = vmul.f32 %v1128_v25, %v5561_v58  ;;  %v1088_v55 = vsel %vm1087_vm4, %v5412_v46, %v1084_v17  ;;  %vm1166_vm5 = vweird.f32 %v3882_v23 }
 0x18e   :  { %v5508_v6 = vpop.permute.xlu2 %1246  ;;  %v5544_v48 = vpop.permute.xlu1 %1221  ;;  %1411 = vperm.xlu1 %3763, %v1207_v57   ;;  %v1161_v47 = vmul.f32 %v3882_v23, %v1160_v36  ;;  %v1209_v38 = vmul.f32 %v1078_v31, %v5581_v32  ;;  %v1210_v61 = vmul.f32 %v1088_v55, %v5587_v52  ;;  %vm1116_vm7 = vweird.f32 %v5479_v59  ;;  %v5620_v36 = vld [vmem:[%s6985_s2 + $0x160] sm:$0xff] }
 0x18f   :  { %v1104_v42 = vmul.f32 %v5455_v10, %v1103_v0  ;;  %vm1165_vm8 = vweird.f32 %v5491_v24  ;;  %v1114_v46 = vmul.f32 %v5479_v59, %v1113_v8  ;;  %vm1105_vm9 = vweird.f32 %v5381_v7  ;;  %v3889_v31 = vld [vmem:[%s6985_s2] sm:$0xff] }
 0x190   :  { %vm1167_vm10 = vmor %vm1165_vm8, %vm1166_vm5  ;;  %vm1115_vm11 = vweird.f32 %v5410_v1  ;;  %vm3146_vm8 = vcmask 122880  }
 0x191   :  { %1431 = vperm.xlu0 %3765, %v1211_v30   ;;  %v1162_v30 = vmul.f32 0.5, %v1161_v47  ;;  %vm1107_vm12 = vmor %vm1105_vm9, %vm1106_vm6 }
 0x192   :  { %v5573_v26 = vpop.permute.xlu0 %1231  ;;  %vm1117_vm13 = vmor %vm1115_vm11, %vm1116_vm7  ;;  %v1108_v11 = vsel %vm1107_vm12, %v5455_v10, %v1104_v42  ;;  %v3893_v42 = vld [vmem:[%s6985_s2 + $0x90] sm:$0xff]  ;;  %vm2658_vm7 = vcmask 130048  }
 0x193   :  { %v1163_v44 = vsub.f32 1.5, %v1162_v30  ;;  %v1118_v1 = vsel %vm1117_vm13, %v5479_v59, %v1114_v46 }
 0x194   :  { %v1213_v17 = vmul.f32 %v1118_v1, %v5620_v36 }
 0x195   :  { %1421 = vperm.xlu2 %3764, %v1209_v38   ;;  %v1164_v14 = vmul.f32 %v3882_v23, %v1163_v44  ;;  %v3891_v44 = vld [vmem:[%s6985_s2 + $0x10] sm:$0xff] }
 0x196   :  { %v5568_v34 = vpop.permute.xlu2 %1256  ;;  %v5591_v53 = vpop.permute.xlu1 %1241  ;;  %1426 = vperm.xlu1 %3763, %v1210_v61  }
 0x197   :  { %v1168_v24 = vsel %vm1167_vm10, %v3882_v23, %v1164_v14  ;;  %v1212_v23 = vmul.f32 %v1108_v11, %v5613_v18 }
 0x198   :  { %v1218_v7 = vmul.f32 %v1168_v24, %v5602_v28 }
 0x199   :  { %1446 = vperm.xlu0 %3765, %v1214_v33   ;;  %v7039_v33 = vmov 1  }
 0x19a   :  { %v5623_v25 = vpop.permute.xlu0 %1266 }
 0x19d   :  { %1436 = vperm.xlu2 %3764, %v1212_v23  }
 0x19e   :  { %v5605_v57 = vpop.permute.xlu2 %1271  ;;  %v5627_v47 = vpop.permute.xlu1 %1251  ;;  %1441 = vperm.xlu1 %3763, %v1213_v17  }
 0x1a1   :  { %1466 = vperm.xlu0 %3765, %v1218_v7   ;;  %v3895_v7 = vld [vmem:[%s6985_s2 + $0x28] sm:$0xff] }
 0x1a5   :  { %3766 = vset.pattern.permute.xlu2 %v7039_v33 }
 0x1a6   :  { %v5629_v10 = vpop.permute.xlu2 %1286  ;;  %v5631_v0 = vpop.permute.xlu0 %1281  ;;  %3767 = vset.pattern.permute.xlu1 %v7039_v33  ;;  %1686 = vperm.xlu2 %3766, %v5294_v29  }
 0x1a7   :  { %7127 = vst [vmem:[#allocation50_spill] sm:$0xff] %v5629_v10  ;;  %v5638_v59 = vpop.permute.xlu1 %1261  ;;  %1521 = vperm.xlu1 %3767, %v3889_v31  }
 0x1a8   :  { %7128 = vst [vmem:[#allocation51_spill] sm:$0xff] %v5631_v0 }
 0x1a9   :  { %3770 = vset.pattern.permute.xlu0 %v7039_v33 }
 0x1aa   :  { %1681 = vperm.xlu0 %3770, %v5401_v22   ;;  %v3890_v22 = vld [vmem:[%s6985_s2 + $0x8] sm:$0xff] }
 0x1ae   :  { %v5643_v8 = vpop.permute.xlu2 %1301  ;;  %v5645_v30 = vpop.permute.xlu0 %1296  ;;  %1526 = vperm.xlu2 %3766, %v3890_v22  }
 0x1af   :  { %7129 = vst [vmem:[#allocation52_spill] sm:$0xff] %v5645_v30  ;;  %1601 = vperm.xlu1 %3767, %v5023_v13   ;;  %v5652_v29 = vpop.permute.xlu1 %1276  ;;  %v3892_v13 = vld [vmem:[%s6985_s2 + $0x18] sm:$0xff] }
 0x1b0   :  { %7130 = vst [vmem:[#allocation53_spill] sm:$0xff] %v5652_v29 }
 0x1b2   :  { %1606 = vperm.xlu0 %3770, %v5035_v27  }
 0x1b6   :  { %v5654_v55 = vpop.permute.xlu2 %1316  ;;  %1691 = vperm.xlu2 %3766, %v5462_v35   ;;  %v5660_v38 = vpop.permute.xlu0 %1311 }
 0x1b7   :  { %1696 = vperm.xlu1 %3767, %v5477_v40  }
 0x1b9   :  { %v5663_v27 = vpop.permute.xlu1 %1291 }
 0x1ba   :  { %1531 = vperm.xlu0 %3770, %v3891_v44   ;;  %7131 = vst [vmem:[#allocation54_spill] sm:$0xff] %v5663_v27 }
 0x1be   :  { %v5665_v61 = vpop.permute.xlu2 %1331  ;;  %1536 = vperm.xlu2 %3766, %v3892_v13   ;;  %v5674_v35 = vpop.permute.xlu0 %1326 }
 0x1bf   :  { %1611 = vperm.xlu1 %3767, %v3893_v42   ;;  %v566_v42 = vmul.f32 0.020408163, %v5471_v62 }
 0x1c1   :  { %v5676_v46 = vpop.permute.xlu1 %1306 }
 0x1c2   :  { %1616 = vperm.xlu0 %3770, %v5096_v20   ;;  %v3894_v20 = vld [vmem:[%s6985_s2 + $0x20] sm:$0xff] }
 0x1c6   :  { %v5678_v40 = vpop.permute.xlu2 %1346  ;;  %1701 = vperm.xlu2 %3766, %v5368_v43  }
 0x1c7   :  { %1706 = vperm.xlu1 %3767, %v5529_v5   ;;  %v5685_v14 = vpop.permute.xlu0 %1341  ;;  %v3896_v5 = vld [vmem:[%s6985_s2 + $0x30] sm:$0xff] }
 0x1ca   :  { %1541 = vperm.xlu0 %3770, %v3894_v20   ;;  %v567_v20 = vmul.f32 0.020408163, %v5325_v41 }
 0x1cb   :  { %v5687_v24 = vpop.permute.xlu1 %1321 }
 0x1ce   :  { %v5689_v11 = vpop.permute.xlu2 %1361  ;;  %1546 = vperm.xlu2 %3766, %v3895_v7   ;;  %v666_v7 = vadd.f32 1e-05, %v566_v42 }
 0x1cf   :  { %7132 = vst [vmem:[#allocation55_spill] sm:$0xff] %v5689_v11  ;;  %1621 = vperm.xlu1 %3767, %v5108_v60   ;;  %v5696_v1 = vpop.permute.xlu0 %1356  ;;  %v3897_v60 = vld [vmem:[%s6985_s2 + $0x38] sm:$0xff] }
 0x1d0   :  { %7133 = vst [vmem:[#allocation56_spill] sm:$0xff] %v5696_v1  ;;  %v3902_v11 = vld [vmem:[%s6985_s2 + $0x78] sm:$0xff]  ;;  %vm1145_vm3 = vweird.f32 %v666_v7 }
 0x1d2   :  { %1626 = vperm.xlu0 %3770, %v5017_v51  }
 0x1d4   :  { %v5698_v43 = vpop.permute.xlu1 %1336 }
 0x1d6   :  { %1711 = vperm.xlu2 %3766, %v5539_v39   ;;  %v5704_v23 = vpop.permute.xlu2 %1376 }
 0x1d7   :  { %7134 = vst [vmem:[#allocation57_spill] sm:$0xff] %v5704_v23  ;;  %1716 = vperm.xlu1 %3767, %v5452_v21   ;;  %v3898_v21 = vld [vmem:[%s6985_s2 + $0x40] sm:$0xff] }
 0x1d9   :  { %v5707_v51 = vpop.permute.xlu0 %1371 }
 0x1da   :  { %1551 = vperm.xlu0 %3770, %v3896_v5   ;;  %7135 = vst [vmem:[#allocation58_spill] sm:$0xff] %v5707_v51  ;;  %v667_v5 = vadd.f32 1e-05, %v567_v20  ;;  %v615_v20 = vld [vmem:[%s6985_s2 + $0x170] sm:$0xff] }
 0x1dc   :  { %vm1155_vm5 = vweird.f32 %v667_v5 }
 0x1dd   :  { %v5709_v17 = vpop.permute.xlu1 %1351 }
 0x1de   :  { %1556 = vperm.xlu2 %3766, %v3897_v60  }
 0x1df   :  { %1631 = vperm.xlu1 %3767, %v5166_v45   ;;  %v5716_v31 = vpop.permute.xlu2 %1391 }
 0x1e2   :  { %1636 = vperm.xlu0 %3770, %v5182_v9   ;;  %v5718_v39 = vpop.permute.xlu0 %1386  ;;  %v565_v9 = vmul.f32 0.020408163, %v5373_v56  ;;  %v3899_v56 = vld [vmem:[%s6985_s2 + $0x48] sm:$0xff] }
 0x1e4   :  { %v665_v45 = vadd.f32 1e-05, %v565_v9 }
 0x1e5   :  { %v5720_v22 = vpop.permute.xlu1 %1366 }
 0x1e6   :  { %7136 = vst [vmem:[#allocation59_spill] sm:$0xff] %v5720_v22  ;;  %1721 = vperm.xlu2 %3766, %v5581_v32   ;;  %3883 = vrsqrt.f32 %v665_v45  ;;  %vm1135_vm15 = vweird.f32 %v665_v45 }
 0x1e7   :  { %1726 = vperm.xlu1 %3767, %v5587_v52   ;;  %v5728_v44 = vpop.permute.xlu2 %1406  ;;  %3885 = vrsqrt.f32 %v666_v7 }
 0x1e8   :  { %3887 = vrsqrt.f32 %v667_v5 }
 0x1ea   :  { %1561 = vperm.xlu0 %3770, %v3898_v21  }
 0x1eb   :  { %v5730_v13 = vpop.permute.xlu0 %1401 }
 0x1ec   :  { %v3884_v60 = vpop.eup %3883 }
 0x1ed   :  { %v1130_v41 = vmul.f32 %v3884_v60, %v665_v45  ;;  %vm1136_vm14 = vweird.f32 %v3884_v60  ;;  %v1470_v45 = vmul.f32 %v5383_v63, %v4299_v16  ;;  %v1502_v63 = vmul.f32 %v5718_v39, %v4474_v12 }
 0x1ee   :  { %1566 = vperm.xlu2 %3766, %v3899_v56   ;;  %v5738_v32 = vpop.permute.xlu1 %1381  ;;  %vm1137_vm0 = vmor %vm1135_vm15, %vm1136_vm14  ;;  %v1486_v12 = vmul.f32 %v5676_v46, %v4381_v19 }
 0x1ef   :  { %1641 = vperm.xlu1 %3767, %v5083_v4   ;;  %v5741_v52 = vpop.permute.xlu2 %1421  ;;  %v3886_v4 = vpop.eup %3885  ;;  %v1131_v9 = vmul.f32 %v3884_v60, %v1130_v41  ;;  %v3901_v41 = vld [vmem:[%s6985_s2 + $0x58] sm:$0xff] }
 0x1f0   :  { %v3888_v42 = vpop.eup %3887  ;;  %vm1146_vm1 = vweird.f32 %v3886_v4 }
 0x1f1   :  { %v1132_v33 = vmul.f32 0.5, %v1131_v9  ;;  %vm1156_vm2 = vweird.f32 %v3888_v42  ;;  %vm1147_vm4 = vmor %vm1145_vm3, %vm1146_vm1 }
 0x1f2   :  { %1646 = vperm.xlu0 %3770, %v5240_v3   ;;  %vm1157_vm6 = vmor %vm1155_vm5, %vm1156_vm2 }
 0x1f3   :  { %v1133_v22 = vsub.f32 1.5, %v1132_v33 }
 0x1f5   :  { %v1134_v0 = vmul.f32 %v3884_v60, %v1133_v22 }
 0x1f6   :  { %1731 = vperm.xlu2 %3766, %v5501_v54   ;;  %v3900_v54 = vld [vmem:[%s6985_s2 + $0x50] sm:$0xff] }
 0x1f7   :  { %1736 = vperm.xlu1 %3767, %v5613_v18   ;;  %v5748_v62 = vpop.permute.xlu2 %1436  ;;  %v5750_v21 = vpop.permute.xlu1 %1396  ;;  %v1150_v18 = vmul.f32 %v3888_v42, %v667_v5  ;;  %v1138_v1 = vsel %vm1137_vm0, %v3884_v60, %v1134_v0  ;;  %v5790_v0 = vld [vmem:[%s6985_s2 + $0x180] sm:$0xff] }
 0x1f9   :  { %v1151_v30 = vmul.f32 %v3888_v42, %v1150_v18 }
 0x1fa   :  { %1741 = vperm.xlu0 %3770, %v5620_v36   ;;  %v1140_v36 = vmul.f32 %v3886_v4, %v666_v7 }
 0x1fb   :  { %v5744_v3 = vpop.permute.xlu0 %1416  ;;  %v1152_v9 = vmul.f32 0.5, %v1151_v30  ;;  %v7137_v30 = vmov 0  }
 0x1fc   :  { %v1141_v27 = vmul.f32 %v3886_v4, %v1140_v36 }
 0x1fd   :  { %v1153_v18 = vsub.f32 1.5, %v1152_v9 }
 0x1fe   :  { %1571 = vperm.xlu2 %3766, %v3900_v54   ;;  %v1142_v10 = vmul.f32 0.5, %v1141_v27  ;;  %v1215_v27 = vmul.f32 %v1138_v1, %v615_v20 }
 0x1ff   :  { %1576 = vperm.xlu1 %3767, %v3901_v41  }
 0x200   :  { %v5763_v23 = vpop.permute.xlu1 %1411  ;;  %v1687_v51 = vpop.permute.xlu2 %1686  ;;  %v1143_v33 = vsub.f32 1.5, %v1142_v10  ;;  %v5785_v10 = vld [vmem:[%s6985_s2 + $0x178] sm:$0xff] }
 0x202   :  { %1751 = vperm.xlu0 %3770, %v615_v20   ;;  %v1144_v29 = vmul.f32 %v3886_v4, %v1143_v33  ;;  %v1501_v20 = vmul.f32 %v5738_v32, %v4471_v49 }
 0x203   :  { %v5755_v56 = vpop.permute.xlu0 %1431 }
 0x206   :  { %1651 = vperm.xlu2 %3766, %v5262_v37   ;;  %v1154_v37 = vmul.f32 %v3888_v42, %v1153_v18 }
 0x207   :  { %1656 = vperm.xlu1 %3767, %v5153_v50  }
 0x208   :  { %v5772_v41 = vpop.permute.xlu1 %1426  ;;  %v1527_v36 = vpop.permute.xlu2 %1526  ;;  %v1158_v1 = vsel %vm1157_vm6, %v3888_v42, %v1154_v37  ;;  %v7138_v42 = vld [vmem:[#allocation2_spill] sm:$0xff]  ;;  %v1802_v37 = vadd.f32 %v1687_v51, %v1502_v63  ;;  %v1485_v51 = vmul.f32 %v5643_v8, %v4388_v2  ;;  %v3904_v2 = vld [vmem:[%s6985_s2 + $0x68] sm:$0xff]  ;;  %v7140_v8 = vld [vmem:[#allocation49_spill] sm:$0xff] }
 0x209   :  { %v1770_v60 = vadd.f32 %v1527_v36, %v1470_v45  ;;  %v1217_v5 = vmul.f32 %v1158_v1, %v5790_v0  ;;  %v1469_v9 = vmul.f32 %v5544_v48, %v7138_v42  ;;  %v1819_v36 = vld [vmem:[%s6986_s1] sm:$0xff]  ;;  %v1852_v48 = vld [vmem:[%s6986_s1 + $0x108] sm:$0xff]  ;;  %v1472_v63 = vmul.f32 %v7140_v8, %v4296_v15  ;;  %v1821_v15 = vld [vmem:[%s6986_s1 + $0x10] sm:$0xff] }
 0x20a   :  { %1596 = vperm.xlu0 %3770, %v3902_v11   ;;  %v1902_v45 = vadd.f32 %v1852_v48, %v1802_v37  ;;  %v1835_v42 = vld [vmem:[%s6986_s1 + $0x80] sm:$0xff]  ;;  %v1822_v48 = vld [vmem:[%s6986_s1 + $0x18] sm:$0xff] }
 0x20b   :  { %v5768_v54 = vpop.permute.xlu0 %1446 }
 0x20e   :  { %1746 = vperm.xlu2 %3766, %v5561_v58   ;;  %v1148_v58 = vsel %vm1147_vm4, %v3886_v4, %v1144_v29  ;;  %v1820_v29 = vld [vmem:[%s6986_s1 + $0x8] sm:$0xff] }
 0x20f   :  { %3768 = vset.pattern.permute.xlu1 %v7137_v30  ;;  %v1216_v7 = vmul.f32 %v1148_v58, %v5785_v10  ;;  %v1870_v32 = vadd.f32 %v1820_v29, %v1770_v60  ;;  %v1836_v60 = vld [vmem:[%s6986_s1 + $0x88] sm:$0xff]  ;;  %v3903_v29 = vld [vmem:[%s6985_s2 + $0x60] sm:$0xff] }
 0x210   :  { %v5778_v50 = vpop.permute.xlu1 %1441  ;;  %1451 = vperm.xlu1 %3768, %v1215_v27   ;;  %v5780_v22 = vpop.permute.xlu2 %1691  ;;  %v1851_v27 = vld [vmem:[%s6986_s1 + $0x100] sm:$0xff] }
 0x211   :  { %v1920_v39 = vmax.f32 %v1870_v32, 0.0 }
 0x213   :  { %v5775_v11 = vpop.permute.xlu0 %1466 }
 0x216   :  { %3769 = vset.pattern.permute.xlu2 %v7137_v30 }
 0x217   :  { %1456 = vperm.xlu2 %3769, %v1216_v7   ;;  %v7139_v7 = vmov 1  }
 0x218   :  { %1461 = vperm.xlu1 %3768, %v1217_v5   ;;  %v1537_v16 = vpop.permute.xlu2 %1536 }
 0x219   :  { %v1522_v33 = vpop.permute.xlu1 %1521  ;;  %v1772_v32 = vadd.f32 %v1537_v16, %v1472_v63  ;;  %v7142_v16 = vld [vmem:[#allocation31_spill] sm:$0xff] }
 0x21a   :  { %v1769_v18 = vadd.f32 %v1522_v33, %v1469_v9 }
 0x21c   :  { %v1682_v4 = vpop.permute.xlu0 %1681  ;;  %v1869_v30 = vadd.f32 %v1819_v36, %v1769_v18 }
 0x21d   :  { %v1801_v49 = vadd.f32 %v1682_v4, %v1501_v20 }
 0x21e   :  { %v1919_v1 = vmax.f32 %v1869_v30, 0.0  ;;  %v7141_v30 = vld [vmem:[#allocation4_spill] sm:$0xff] }
 0x21f   :  { %v1901_v58 = vadd.f32 %v1851_v27, %v1801_v49  ;;  %3771 = vset.pattern.permute.xlu2 %v7139_v7  ;;  %v1952_v49 = vmax.f32 %v1902_v45, 0.0  ;;  %v1872_v45 = vadd.f32 %v1822_v48, %v1772_v32  ;;  %v7147_v48 = vld [vmem:[#allocation17_spill] sm:$0xff] }
 0x220   :  { %v1969_v20 = vpack.c.bf16 %v1920_v39, %v1919_v1  ;;  %1581 = vperm.xlu2 %3771, %v3903_v29   ;;  %3772 = vset.pattern.permute.xlu1 %v7139_v7  ;;  %v1702_v46 = vpop.permute.xlu2 %1701  ;;  %v1504_v1 = vmul.f32 %v5750_v21, %v7142_v16  ;;  %v7144_v29 = vld [vmem:[#allocation33_spill] sm:$0xff] }
 0x221   :  { %v1951_v4 = vmax.f32 %v1901_v58, 0.0  ;;  %v1602_v9 = vpop.permute.xlu1 %1601  ;;  %1586 = vperm.xlu1 %3772, %v3904_v2   ;;  %v1471_v58 = vmul.f32 %v5573_v26, %v7141_v30  ;;  %v1503_v26 = vmul.f32 %v5716_v31, %v7144_v29  ;;  %v1853_v2 = vld [vmem:[%s6986_s1 + $0x110] sm:$0xff]  ;;  %v1922_v8 = vmax.f32 %v1872_v45, 0.0 }
 0x222   :  { %v1785_v36 = vadd.f32 %v1602_v9, %v1485_v51 }
 0x223   :  { %v5835_v37 = vpack.c.bf16 %v1952_v49, %v1951_v4  ;;  %v1854_v4 = vld [vmem:[%s6986_s1 + $0x118] sm:$0xff]  ;;  %v1803_v21 = vadd.f32 %v5780_v22, %v1503_v26  ;;  %v1487_v22 = vmul.f32 %v5660_v38, %v7147_v48 }
 0x224   :  { %v1607_v5 = vpop.permute.xlu0 %1606  ;;  %v1885_v18 = vadd.f32 %v1835_v42, %v1785_v36 }
 0x225   :  { %v1786_v19 = vadd.f32 %v1607_v5, %v1486_v12  ;;  %v1903_v32 = vadd.f32 %v1853_v2, %v1803_v21  ;;  %v7151_v21 = vld [vmem:[#allocation36_spill] sm:$0xff] }
 0x226   :  { %v1935_v12 = vmax.f32 %v1885_v18, 0.0  ;;  %v1838_v18 = vld [vmem:[%s6986_s1 + $0x98] sm:$0xff]  ;;  %v1506_v2 = vmul.f32 %v5728_v44, %v7151_v21  ;;  %v7157_v21 = vld [vmem:[#allocation6_spill] sm:$0xff] }
 0x227   :  { %v1886_v33 = vadd.f32 %v1836_v60, %v1786_v19  ;;  %v7143_v60 = vld [vmem:[#allocation46_spill] sm:$0xff] }
 0x228   :  { %1661 = vperm.xlu2 %3771, %v7143_v60   ;;  %v1547_v51 = vpop.permute.xlu2 %1546  ;;  %v1953_v60 = vmax.f32 %v1903_v32, 0.0 }
 0x229   :  { %v1936_v27 = vmax.f32 %v1886_v33, 0.0  ;;  %v1697_v19 = vpop.permute.xlu1 %1696  ;;  %v7146_v33 = vld [vmem:[#allocation20_spill] sm:$0xff] }
 0x22a   :  { %v1804_v42 = vadd.f32 %v1697_v19, %v1504_v1  ;;  %v1488_v31 = vmul.f32 %v5654_v55, %v7146_v33 }
 0x22b   :  { %v5848_v7 = vpack.c.bf16 %v1936_v27, %v1935_v12 }
 0x22c   :  { %3773 = vxpose.binary.xlu0.c.b16.start [1/16] (narrow) %v1969_v20, %v5835_v37, 64  ;;  %v1532_v39 = vpop.permute.xlu0 %1531  ;;  %v7145_v20 = vld [vmem:[#allocation47_spill] sm:$0xff]  ;;  %v1904_v36 = vadd.f32 %v1854_v4, %v1804_v42 }
 0x22d   :  { %v1771_v5 = vadd.f32 %v1532_v39, %v1471_v58  ;;  %1666 = vperm.xlu1 %3772, %v7145_v20   ;;  %v7148_v39 = vld [vmem:[#allocation5_spill] sm:$0xff]  ;;  %v1824_v20 = vld [vmem:[%s6986_s1 + $0x28] sm:$0xff] }
 0x22e   :  { %v1954_v12 = vmax.f32 %v1904_v36, 0.0  ;;  %v1474_v16 = vmul.f32 %v5508_v6, %v7148_v39  ;;  %v7150_v4 = vld [vmem:[#allocation7_spill] sm:$0xff] }
 0x22f   :  { %v1871_v9 = vadd.f32 %v1821_v15, %v1771_v5  ;;  %v1837_v15 = vld [vmem:[%s6986_s1 + $0x90] sm:$0xff]  ;;  %v1856_v36 = vld [vmem:[%s6986_s1 + $0x128] sm:$0xff] }
 0x230   :  { %1756 = vperm.xlu2 %3771, %v5785_v10   ;;  %v1712_v58 = vpop.permute.xlu2 %1711  ;;  %v7149_v5 = vld [vmem:[#allocation32_spill] sm:$0xff]  ;;  %v1774_v10 = vadd.f32 %v1547_v51, %v1474_v16  ;;  %v5877_v19 = vpack.c.bf16 %v1954_v12, %v1953_v60  ;;  %v7153_v16 = vld [vmem:[#allocation18_spill] sm:$0xff] }
 0x231   :  { %v1921_v63 = vmax.f32 %v1871_v9, 0.0  ;;  %v1612_v55 = vpop.permute.xlu1 %1611  ;;  %v1505_v38 = vmul.f32 %v5730_v13, %v7149_v5  ;;  %v1855_v9 = vld [vmem:[%s6986_s1 + $0x120] sm:$0xff]  ;;  %v3906_v60 = vld [vmem:[%s6985_s2 + $0xf0] sm:$0xff] }
 0x232   :  { %v1787_v1 = vadd.f32 %v1612_v55, %v1487_v22  ;;  %v1823_v13 = vld [vmem:[%s6986_s1 + $0x20] sm:$0xff]  ;;  %v7152_v22 = vld [vmem:[#allocation19_spill] sm:$0xff] }
 0x233   :  { %v1970_v49 = vpack.c.bf16 %v1922_v8, %v1921_v63  ;;  %v1805_v42 = vadd.f32 %v1702_v46, %v1505_v38  ;;  %v1874_v8 = vadd.f32 %v1824_v20, %v1774_v10  ;;  %v1840_v55 = vld [vmem:[%s6986_s1 + $0xa8] sm:$0xff]  ;;  %v1839_v38 = vld [vmem:[%s6986_s1 + $0xa0] sm:$0xff] }
 0x234   :  { %v1617_v27 = vpop.permute.xlu0 %1616  ;;  %v1887_v29 = vadd.f32 %v1837_v15, %v1787_v1  ;;  %v1489_v1 = vmul.f32 %v5687_v24, %v7153_v16  ;;  %v1842_v16 = vld [vmem:[%s6986_s1 + $0xb8] sm:$0xff] }
 0x235   :  { %v1788_v30 = vadd.f32 %v1617_v27, %v1488_v31  ;;  %1761 = vperm.xlu1 %3772, %v5790_v0   ;;  %v1473_v0 = vmul.f32 %v5591_v53, %v7150_v4  ;;  %v3905_v31 = vld [vmem:[%s6985_s2 + $0x70] sm:$0xff] }
 0x236   :  { %v1937_v6 = vmax.f32 %v1887_v29, 0.0  ;;  %v7154_v29 = vld [vmem:[#allocation48_spill] sm:$0xff] }
 0x237   :  { %v1888_v45 = vadd.f32 %v1838_v18, %v1788_v30  ;;  %v1924_v18 = vmax.f32 %v1874_v8, 0.0 }
 0x238   :  { %1766 = vperm.xlu2 %3771, %v5602_v28   ;;  %v1557_v46 = vpop.permute.xlu2 %1556  ;;  %v1490_v28 = vmul.f32 %v5674_v35, %v7152_v22 }
 0x239   :  { %v1938_v26 = vmax.f32 %v1888_v45, 0.0  ;;  %v1707_v33 = vpop.permute.xlu1 %1706 }
 0x23a   :  { %v1806_v32 = vadd.f32 %v1707_v33, %v1506_v2  ;;  %v1475_v2 = vmul.f32 %v5627_v47, %v7157_v21  ;;  %v7163_v21 = vld [vmem:[#allocation8_spill] sm:$0xff] }
 0x23b   :  { %v5893_v63 = vpack.c.bf16 %v1938_v26, %v1937_v6  ;;  %v7155_v26 = vld [vmem:[#allocation10_spill] sm:$0xff] }
 0x23c   :  { %3774 = vxpose.binary.xlu0.c.b16.cont [2/16] (narrow) %v1970_v49, %v5877_v19, 64  ;;  %v1542_v51 = vpop.permute.xlu0 %1541  ;;  %v1905_v49 = vadd.f32 %v1855_v9, %v1805_v42  ;;  %v1906_v27 = vadd.f32 %v1856_v36, %v1806_v32  ;;  %v1476_v20 = vmul.f32 %v5568_v34, %v7155_v26  ;;  %v1857_v34 = vld [vmem:[%s6986_s1 + $0x130] sm:$0xff]  ;;  %v7158_v36 = vld [vmem:[#allocation35_spill] sm:$0xff]  ;;  %v1858_v32 = vld [vmem:[%s6986_s1 + $0x138] sm:$0xff] }
 0x23d   :  { %v1773_v53 = vadd.f32 %v1542_v51, %v1473_v0  ;;  %1591 = vperm.xlu1 %3772, %v3905_v31   ;;  %v7156_v0 = vld [vmem:[#allocation34_spill] sm:$0xff]  ;;  %v1826_v51 = vld [vmem:[%s6986_s1 + $0x38] sm:$0xff]  ;;  %v1508_v33 = vmul.f32 %v5744_v3, %v7158_v36  ;;  %v1841_v26 = vld [vmem:[%s6986_s1 + $0xb0] sm:$0xff] }
 0x23e   :  { %v1955_v30 = vmax.f32 %v1905_v49, 0.0  ;;  %v1956_v12 = vmax.f32 %v1906_v27, 0.0  ;;  %v1507_v42 = vmul.f32 %v5763_v23, %v7156_v0  ;;  %v1776_v6 = vadd.f32 %v1557_v46, %v1476_v20  ;;  %v1825_v23 = vld [vmem:[%s6986_s1 + $0x30] sm:$0xff]  ;;  %v7161_v20 = vld [vmem:[#allocation9_spill] sm:$0xff] }
 0x23f   :  { %v1873_v44 = vadd.f32 %v1823_v13, %v1773_v53 }
 0x240   :  { %v5909_v45 = vpack.c.bf16 %v1956_v12, %v1955_v30  ;;  %1671 = vperm.xlu2 %3771, %v3906_v60   ;;  %v1722_v35 = vpop.permute.xlu2 %1721  ;;  %v1807_v8 = vadd.f32 %v1712_v58, %v1507_v42  ;;  %v1876_v31 = vadd.f32 %v1826_v51, %v1776_v6  ;;  %v7159_v12 = vld [vmem:[#allocation21_spill] sm:$0xff]  ;;  %v7160_v60 = vld [vmem:[#allocation23_spill] sm:$0xff] }
 0x241   :  { %v1923_v48 = vmax.f32 %v1873_v44, 0.0  ;;  %v1622_v10 = vpop.permute.xlu1 %1621  ;;  %v7162_v42 = vld [vmem:[#allocation39_spill] sm:$0xff] }
 0x242   :  { %v1789_v24 = vadd.f32 %v1622_v10, %v1489_v1  ;;  %v1926_v22 = vmax.f32 %v1876_v31, 0.0  ;;  %v1509_v6 = vmul.f32 %v5741_v52, %v7162_v42  ;;  %v1828_v51 = vld [vmem:[%s6986_s1 + $0x48] sm:$0xff]  ;;  %v1827_v52 = vld [vmem:[%s6986_s1 + $0x40] sm:$0xff] }
 0x243   :  { %v1971_v15 = vpack.c.bf16 %v1924_v18, %v1923_v48  ;;  %v1907_v18 = vadd.f32 %v1857_v34, %v1807_v8  ;;  %v1860_v31 = vld [vmem:[%s6986_s1 + $0x148] sm:$0xff] }
 0x244   :  { %v1627_v39 = vpop.permute.xlu0 %1626  ;;  %v1889_v9 = vadd.f32 %v1839_v38, %v1789_v24  ;;  %v1478_v24 = vmul.f32 %v5623_v25, %v7161_v20  ;;  %v1809_v8 = vadd.f32 %v1722_v35, %v1509_v6  ;;  %v1859_v25 = vld [vmem:[%s6986_s1 + $0x140] sm:$0xff]  ;;  %v7169_v6 = vld [vmem:[#allocation40_spill] sm:$0xff] }
 0x245   :  { %v1790_v5 = vadd.f32 %v1627_v39, %v1490_v28  ;;  %1676 = vperm.xlu1 %3772, %v7154_v29   ;;  %v1957_v3 = vmax.f32 %v1907_v18, 0.0 }
 0x246   :  { %v1939_v53 = vmax.f32 %v1889_v9, 0.0 }
 0x247   :  { %v1890_v4 = vadd.f32 %v1840_v55, %v1790_v5  ;;  %v1491_v5 = vmul.f32 %v5665_v61, %v7160_v60 }
 0x248   :  { %v1567_v58 = vpop.permute.xlu2 %1566 }
 0x249   :  { %v1940_v13 = vmax.f32 %v1890_v4, 0.0  ;;  %v1717_v44 = vpop.permute.xlu1 %1716  ;;  %v1778_v9 = vadd.f32 %v1567_v58, %v1478_v24  ;;  %v1909_v58 = vadd.f32 %v1859_v25, %v1809_v8  ;;  %v7168_v24 = vld [vmem:[#allocation38_spill] sm:$0xff] }
 0x24a   :  { %v1808_v27 = vadd.f32 %v1717_v44, %v1508_v33  ;;  %v7171_v8 = vld [vmem:[#allocation42_spill] sm:$0xff] }
 0x24b   :  { %v5936_v49 = vpack.c.bf16 %v1940_v13, %v1939_v53  ;;  %v1878_v36 = vadd.f32 %v1828_v51, %v1778_v9 }
 0x24c   :  { %3775 = vxpose.binary.xlu0.c.b16.cont [3/16] (narrow) %v1971_v15, %v5909_v45, 64  ;;  %v1552_v46 = vpop.permute.xlu0 %1551  ;;  %v1908_v28 = vadd.f32 %v1858_v32, %v1808_v27  ;;  %v1492_v15 = vmul.f32 %v5698_v43, %v7159_v12 }
 0x24d   :  { %v1775_v47 = vadd.f32 %v1552_v46, %v1475_v2  ;;  %v1477_v2 = vmul.f32 %v5638_v59, %v7163_v21  ;;  %v1928_v18 = vmax.f32 %v1878_v36, 0.0  ;;  %v1861_v21 = vld [vmem:[%s6986_s1 + $0x150] sm:$0xff] }
 0x24e   :  { %v1958_v55 = vmax.f32 %v1908_v28, 0.0 }
 0x24f   :  { %v1875_v48 = vadd.f32 %v1825_v23, %v1775_v47  ;;  %v7164_v23 = vld [vmem:[#allocation37_spill] sm:$0xff] }
 0x250   :  { %v5948_v38 = vpack.c.bf16 %v1958_v55, %v1957_v3  ;;  %v1732_v29 = vpop.permute.xlu2 %1731  ;;  %v1510_v46 = vmul.f32 %v5772_v41, %v7164_v23  ;;  %v1959_v41 = vmax.f32 %v1909_v58, 0.0  ;;  %v1844_v55 = vld [vmem:[%s6986_s1 + $0xc8] sm:$0xff] }
 0x251   :  { %v1925_v30 = vmax.f32 %v1875_v48, 0.0  ;;  %v1632_v43 = vpop.permute.xlu1 %1631 }
 0x252   :  { %v1791_v4 = vadd.f32 %v1632_v43, %v1491_v5 }
 0x253   :  { %v1972_v39 = vpack.c.bf16 %v1926_v22, %v1925_v30  ;;  %v7165_v22 = vld [vmem:[#allocation26_spill] sm:$0xff] }
 0x254   :  { %v1637_v1 = vpop.permute.xlu0 %1636  ;;  %v1891_v13 = vadd.f32 %v1841_v26, %v1791_v4  ;;  %v1494_v28 = vmul.f32 %v5678_v40, %v7165_v22  ;;  %v1843_v40 = vld [vmem:[%s6986_s1 + $0xc0] sm:$0xff]  ;;  %v1511_v4 = vmul.f32 %v5755_v56, %v7168_v24  ;;  %v1829_v22 = vld [vmem:[%s6986_s1 + $0x50] sm:$0xff]  ;;  %v1846_v24 = vld [vmem:[%s6986_s1 + $0xd8] sm:$0xff] }
 0x255   :  { %v1792_v10 = vadd.f32 %v1637_v1, %v1492_v15  ;;  %v7166_v15 = vld [vmem:[#allocation24_spill] sm:$0xff]  ;;  %v1863_v56 = vld [vmem:[%s6986_s1 + $0x160] sm:$0xff] }
 0x256   :  { %v1941_v53 = vmax.f32 %v1891_v13, 0.0  ;;  %v1495_v3 = vmul.f32 %v5709_v17, %v7166_v15  ;;  %v1811_v9 = vadd.f32 %v1732_v29, %v1511_v4 }
 0x257   :  { %v1892_v0 = vadd.f32 %v1842_v16, %v1792_v10  ;;  %v7167_v16 = vld [vmem:[#allocation22_spill] sm:$0xff] }
 0x258   :  { %v1572_v35 = vpop.permute.xlu2 %1571  ;;  %v1493_v1 = vmul.f32 %v5685_v14, %v7167_v16  ;;  %v1513_v14 = vmul.f32 %v5778_v50, %v7169_v6 }
 0x259   :  { %v1942_v61 = vmax.f32 %v1892_v0, 0.0  ;;  %v1727_v47 = vpop.permute.xlu1 %1726 }
 0x25a   :  { %v1810_v32 = vadd.f32 %v1727_v47, %v1510_v46  ;;  %v1911_v46 = vadd.f32 %v1861_v21, %v1811_v9  ;;  %v7172_v47 = vld [vmem:[#allocation13_spill] sm:$0xff] }
 0x25b   :  { %v5971_v33 = vpack.c.bf16 %v1942_v61, %v1941_v53  ;;  %v7170_v61 = vld [vmem:[#allocation41_spill] sm:$0xff]  ;;  %v1512_v53 = vmul.f32 %v5748_v62, %v7171_v8  ;;  %v1479_v62 = vmul.f32 %v5605_v57, %v7172_v47 }
 0x25c   :  { %3776 = vxpose.binary.xlu0.c.b16.cont [4/16] (narrow) %v1972_v39, %v5948_v38, 64  ;;  %v1562_v34 = vpop.permute.xlu0 %1561  ;;  %v1910_v27 = vadd.f32 %v1860_v31, %v1810_v32  ;;  %v1514_v51 = vmul.f32 %v5768_v54, %v7170_v61  ;;  %v1864_v54 = vld [vmem:[%s6986_s1 + $0x168] sm:$0xff]  ;;  %v1830_v57 = vld [vmem:[%s6986_s1 + $0x58] sm:$0xff] }
 0x25d   :  { %v1777_v59 = vadd.f32 %v1562_v34, %v1477_v2 }
 0x25e   :  { %v1960_v30 = vmax.f32 %v1910_v27, 0.0  ;;  %v1779_v27 = vadd.f32 %v1572_v35, %v1479_v62 }
 0x25f   :  { %v1877_v44 = vadd.f32 %v1827_v52, %v1777_v59  ;;  %v1862_v52 = vld [vmem:[%s6986_s1 + $0x158] sm:$0xff] }
 0x260   :  { %v5985_v60 = vpack.c.bf16 %v1960_v30, %v1959_v41  ;;  %v1652_v10 = vpop.permute.xlu2 %1651  ;;  %v7173_v41 = vld [vmem:[#allocation11_spill] sm:$0xff]  ;;  %v7174_v30 = vld [vmem:[#allocation53_spill] sm:$0xff] }
 0x261   :  { %v1927_v48 = vmax.f32 %v1877_v44, 0.0  ;;  %v1642_v26 = vpop.permute.xlu1 %1641  ;;  %v1795_v43 = vadd.f32 %v1652_v10, %v1495_v3  ;;  %v1845_v10 = vld [vmem:[%s6986_s1 + $0xd0] sm:$0xff] }
 0x262   :  { %v1793_v20 = vadd.f32 %v1642_v26, %v1493_v1  ;;  %v7176_v26 = vld [vmem:[#allocation56_spill] sm:$0xff] }
 0x263   :  { %v1973_v12 = vpack.c.bf16 %v1928_v18, %v1927_v48  ;;  %v1961_v18 = vmax.f32 %v1911_v46, 0.0 }
 0x264   :  { %v1647_v39 = vpop.permute.xlu0 %1646  ;;  %v1893_v0 = vadd.f32 %v1843_v40, %v1793_v20  ;;  %v7175_v40 = vld [vmem:[#allocation25_spill] sm:$0xff] }
 0x265   :  { %v1794_v5 = vadd.f32 %v1647_v39, %v1494_v28  ;;  %v1879_v39 = vadd.f32 %v1829_v22, %v1779_v27  ;;  %v1496_v20 = vmul.f32 %v7176_v26, %v7175_v40  ;;  %v7181_v27 = vld [vmem:[#allocation16_spill] sm:$0xff]  ;;  %v7185_v40 = vld [vmem:[#allocation27_spill] sm:$0xff] }
 0x266   :  { %v1943_v13 = vmax.f32 %v1893_v0, 0.0  ;;  %v1895_v0 = vadd.f32 %v1845_v10, %v1795_v43  ;;  %v1865_v43 = vld [vmem:[%s6986_s1 + $0x170] sm:$0xff]  ;;  %v1847_v10 = vld [vmem:[%s6986_s1 + $0xe0] sm:$0xff]  ;;  %v7186_v26 = vld [vmem:[#allocation59_spill] sm:$0xff] }
 0x267   :  { %v1894_v17 = vadd.f32 %v1844_v55, %v1794_v5  ;;  %v1929_v1 = vmax.f32 %v1879_v39, 0.0 }
 0x268   :  { %v1747_v25 = vpop.permute.xlu2 %1746  ;;  %v1945_v9 = vmax.f32 %v1895_v0, 0.0 }
 0x269   :  { %v1944_v42 = vmax.f32 %v1894_v17, 0.0  ;;  %v1737_v34 = vpop.permute.xlu1 %1736  ;;  %v1814_v23 = vadd.f32 %v1747_v25, %v1514_v51 }
 0x26a   :  { %v1812_v36 = vadd.f32 %v1737_v34, %v1512_v53 }
 0x26b   :  { %v6005_v50 = vpack.c.bf16 %v1944_v42, %v1943_v13  ;;  %v1914_v31 = vadd.f32 %v1864_v54, %v1814_v23 }
 0x26c   :  { %3777 = vxpose.binary.xlu0.c.b16.cont [5/16] (narrow) %v1973_v12, %v5985_v60, 64  ;;  %v1742_v2 = vpop.permute.xlu0 %1741  ;;  %v1912_v58 = vadd.f32 %v1862_v52, %v1812_v36  ;;  %v1480_v12 = vmul.f32 %v7174_v30, %v7173_v41  ;;  %v1866_v52 = vld [vmem:[%s6986_s1 + $0x178] sm:$0xff]  ;;  %v1832_v41 = vld [vmem:[%s6986_s1 + $0x68] sm:$0xff] }
 0x26d   :  { %v1813_v29 = vadd.f32 %v1742_v2, %v1513_v14  ;;  %v1964_v44 = vmax.f32 %v1914_v31, 0.0  ;;  %v7180_v31 = vld [vmem:[#allocation51_spill] sm:$0xff] }
 0x26e   :  { %v1962_v48 = vmax.f32 %v1912_v58, 0.0 }
 0x26f   :  { %v1913_v59 = vadd.f32 %v1863_v56, %v1813_v29  ;;  %v7177_v56 = vld [vmem:[#allocation45_spill] sm:$0xff]  ;;  %v7178_v29 = vld [vmem:[#allocation43_spill] sm:$0xff] }
 0x270   :  { %v1990_v15 = vpack.c.bf16 %v1962_v48, %v1961_v18  ;;  %v7182_v48 = vld [vmem:[#allocation50_spill] sm:$0xff] }
 0x271   :  { %v1963_v32 = vmax.f32 %v1913_v59, 0.0  ;;  %v1577_v3 = vpop.permute.xlu1 %1576  ;;  %v1457_v55 = vpop.permute.xlu2 %1456  ;;  %v7179_v59 = vld [vmem:[#allocation12_spill] sm:$0xff]  ;;  %v1482_v22 = vmul.f32 %v7182_v48, %v7181_v27 }
 0x272   :  { %v1780_v16 = vadd.f32 %v1577_v3, %v1480_v12  ;;  %v1516_v54 = vmul.f32 %v1457_v55, %v7178_v29  ;;  %v1481_v47 = vmul.f32 %v7180_v31, %v7179_v59  ;;  %v7183_v3 = vld [vmem:[#allocation29_spill] sm:$0xff]  ;;  %v7184_v55 = vld [vmem:[#allocation55_spill] sm:$0xff]  ;;  %v7191_v31 = vld [vmem:[#allocation14_spill] sm:$0xff] }
 0x273   :  { %v6018_v28 = vpack.c.bf16 %v1964_v44, %v1963_v32  ;;  %v1831_v44 = vld [vmem:[%s6986_s1 + $0x60] sm:$0xff]  ;;  %v1497_v39 = vmul.f32 %v7184_v55, %v7183_v3  ;;  %v1834_v59 = vld [vmem:[%s6986_s1 + $0x78] sm:$0xff]  ;;  %v7193_v48 = vld [vmem:[#allocation28_spill] sm:$0xff] }
 0x274   :  { %v1880_v35 = vadd.f32 %v1830_v57, %v1780_v16  ;;  %v1752_v8 = vpop.permute.xlu0 %1751  ;;  %v1849_v55 = vld [vmem:[%s6986_s1 + $0xf0] sm:$0xff] }
 0x276   :  { %v1930_v5 = vmax.f32 %v1880_v35, 0.0 }
 0x278   :  { %v1974_v17 = vpack.c.bf16 %v1930_v5, %v1929_v1 }
 0x279   :  { %v1657_v4 = vpop.permute.xlu1 %1656 }
 0x27a   :  { %2110 = vxpose.xlu1.c.b16.start [1/8] (narrow) %v5848_v7, 64  ;;  %v1796_v42 = vadd.f32 %v1657_v4, %v1496_v20  ;;  %v1582_v6 = vpop.permute.xlu2 %1581  ;;  %v1498_v20 = vmul.f32 %v7186_v26, %v7185_v40 }
 0x27b   :  { %v1781_v32 = vadd.f32 %v1582_v6, %v1481_v47 }
 0x27c   :  { %3778 = vxpose.binary.xlu0.c.b16.cont [6/16] (narrow) %v1974_v17, %v1990_v15, 64  ;;  %v1896_v14 = vadd.f32 %v1846_v24, %v1796_v42  ;;  %v1848_v24 = vld [vmem:[%s6986_s1 + $0xe8] sm:$0xff]  ;;  %v1597_v29 = vpop.permute.xlu0 %1596 }
 0x27d   :  { %v1881_v12 = vadd.f32 %v1831_v44, %v1781_v32 }
 0x27e   :  { %v1946_v13 = vmax.f32 %v1896_v14, 0.0  ;;  %v7187_v14 = vld [vmem:[#allocation3_spill] sm:$0xff] }
 0x27f   :  { %v1931_v35 = vmax.f32 %v1881_v12, 0.0 }
 0x280   :  { %v6034_v61 = vpack.c.bf16 %v1946_v13, %v1945_v9  ;;  %v1518_v9 = vmul.f32 %v5775_v11, %v7187_v14  ;;  %v3654_v14 = vld [vmem:[%s6987_s3 + $0x2ac] sm:$0xf0] }
 0x282   :  { %v1452_v51 = vpop.permute.xlu1 %1451  ;;  %v1662_v21 = vpop.permute.xlu2 %1661 }
 0x283   :  { %v1515_v2 = vmul.f32 %v1452_v51, %v7177_v56  ;;  %v1797_v1 = vadd.f32 %v1662_v21, %v1497_v39  ;;  %v7195_v39 = vld [vmem:[#allocation30_spill] sm:$0xff] }
 0x285   :  { %v1815_v53 = vadd.f32 %v1752_v8, %v1515_v2  ;;  %v1897_v0 = vadd.f32 %v1847_v10, %v1797_v1  ;;  %v1868_v2 = vld [vmem:[%s6986_s1 + $0x188] sm:$0xff]  ;;  %v7188_v8 = vld [vmem:[#allocation44_spill] sm:$0xff]  ;;  %v1850_v1 = vld [vmem:[%s6986_s1 + $0xf8] sm:$0xff] }
 0x287   :  { %v1915_v46 = vadd.f32 %v1865_v43, %v1815_v53  ;;  %v1947_v51 = vmax.f32 %v1897_v0, 0.0  ;;  %v3506_v0 = vld [vmem:[%s6987_s3 + $0x2c0] sm:$0xf] }
 0x289   :  { %v1965_v58 = vmax.f32 %v1915_v46, 0.0 }
 0x28a   :  { %2111 = vxpose.xlu1.c.b16.cont [2/8] (narrow) %v5893_v63, 64  ;;  %v1462_v25 = vpop.permute.xlu1 %1461  ;;  %v1757_v34 = vpop.permute.xlu2 %1756 }
 0x28b   :  { %v1816_v23 = vadd.f32 %v1757_v34, %v1516_v54  ;;  %v7189_v54 = vld [vmem:[#allocation15_spill] sm:$0xff] }
 0x28d   :  { %v1916_v36 = vadd.f32 %v1866_v52, %v1816_v23  ;;  %v7190_v52 = vld [vmem:[#allocation52_spill] sm:$0xff] }
 0x28e   :  { %v1484_v34 = vmul.f32 %v7190_v52, %v7189_v54  ;;  %v3630_v52 = vld [vmem:[%s6987_s3 + $0x1ec] sm:$0xf0] }
 0x28f   :  { %v1966_v62 = vmax.f32 %v1916_v36, 0.0 }
 0x291   :  { %v6050_v18 = vpack.c.bf16 %v1966_v62, %v1965_v58  ;;  %v1833_v58 = vld [vmem:[%s6986_s1 + $0x70] sm:$0xff] }
 0x292   :  { %v1767_v6 = vpop.permute.xlu2 %1766 }
 0x293   :  { %v1587_v30 = vpop.permute.xlu1 %1586  ;;  %3725 = vmatpush.lsf.bf16.msrb.mxu1 %v6050_v18  ;;  %v1818_v21 = vadd.f32 %v1767_v6, %v1518_v9  ;;  %v3490_v6 = vld [vmem:[%s6987_s3 + $0x2a0] sm:$0xf] }
 0x294   :  { %v1782_v57 = vadd.f32 %v1587_v30, %v1482_v22  ;;  %v7194_v22 = vld [vmem:[#allocation58_spill] sm:$0xff]  ;;  %v3491_v9 = vor.u32 %v3654_v14, %v3490_v6 }
 0x295   :  { %v1918_v11 = vadd.f32 %v1868_v2, %v1818_v21  ;;  %v3458_v21 = vld [vmem:[%s6987_s3 + $0x260] sm:$0xf]  ;;  %v3642_v2 = vld [vmem:[%s6987_s3 + $0x24c] sm:$0xf0] }
 0x296   :  { %v1882_v16 = vadd.f32 %v1832_v41, %v1782_v57  ;;  %v1499_v41 = vmul.f32 %v7194_v22, %v7193_v48  ;;  %v3346_v22 = vld [vmem:[%s6987_s3 + $0x180] sm:$0xf] }
 0x297   :  { %3726 = vmatpush.lsf.bf16.msrb.mxu1 %v6018_v28  ;;  %v1968_v46 = vmax.f32 %v1918_v11, 0.0  ;;  %v3266_v11 = vld [vmem:[%s6987_s3 + $0xe0] sm:$0xf] }
 0x298   :  { %v1932_v5 = vmax.f32 %v1882_v16, 0.0  ;;  %v3282_v14 = vld [vmem:[%s6987_s3 + $0x100] sm:$0xf] }
 0x29a   :  { %2112 = vxpose.xlu1.c.b16.cont [3/8] (narrow) %v5936_v49, 64  ;;  %v1975_v17 = vpack.c.bf16 %v1932_v5, %v1931_v35  ;;  %v1672_v27 = vpop.permute.xlu2 %1671 }
 0x29b   :  { %3727 = vmatpush.lsf.bf16.msrb.mxu1 %v1990_v15  ;;  %v1517_v15 = vmul.f32 %v1462_v25, %v7188_v8  ;;  %v1784_v25 = vadd.f32 %v1597_v29, %v1484_v34  ;;  %v1799_v57 = vadd.f32 %v1672_v27, %v1499_v41  ;;  %v3394_v29 = vld [vmem:[%s6987_s3 + $0x1e0] sm:$0xf]  ;;  %v3586_v27 = vld [vmem:[%s6987_s3 + $0x8c] sm:$0xf0] }
 0x29c   :  { %3779 = vxpose.binary.xlu0.c.b16.cont [7/16] (narrow) %v1975_v17, %v6018_v28, 64  ;;  %v1867_v28 = vld [vmem:[%s6986_s1 + $0x180] sm:$0xff]  ;;  %v3618_v41 = vld [vmem:[%s6987_s3 + $0x18c] sm:$0xf0] }
 0x29d   :  { %v1884_v44 = vadd.f32 %v1834_v59, %v1784_v25  ;;  %v1899_v10 = vadd.f32 %v1849_v55, %v1799_v57  ;;  %v3250_v34 = vld [vmem:[%s6987_s3 + $0xc0] sm:$0xf]  ;;  %v3395_v25 = vor.u32 %v3630_v52, %v3394_v29  ;;  %v3582_v55 = vld [vmem:[%s6987_s3 + $0x6c] sm:$0xf0]  ;;  %v3396_v29 = vld [vmem:[%s6987_s3 + $0x1f0] sm:$0xf0] }
 0x29e   :  { %v3524_v52 = vld [vmem:[%s6987_s3 + $0x2f0] sm:$0xf0] }
 0x29f   :  { %v1667_v4 = vpop.permute.xlu1 %1666  ;;  %3728 = vmatpush.lsf.bf16.msrb.mxu1 %v5985_v60  ;;  %v1934_v12 = vmax.f32 %v1884_v44, 0.0  ;;  %v1949_v26 = vmax.f32 %v1899_v10, 0.0  ;;  %v3622_v44 = vld [vmem:[%s6987_s3 + $0x1ac] sm:$0xf0]  ;;  %v3314_v10 = vld [vmem:[%s6987_s3 + $0x140] sm:$0xf] }
 0x2a0   :  { %v1798_v42 = vadd.f32 %v1667_v4, %v1498_v20 }
 0x2a2   :  { %v1898_v13 = vadd.f32 %v1848_v24, %v1798_v42  ;;  %v3522_v24 = vld [vmem:[%s6987_s3 + $0x2e0] sm:$0xf]  ;;  %v3658_v42 = vld [vmem:[%s6987_s3 + $0x2cc] sm:$0xf0] }
 0x2a3   :  { %3729 = vmatpush.lsf.bf16.msrb.mxu1 %v5948_v38  ;;  %v7192_v38 = vld [vmem:[#allocation54_spill] sm:$0xff] }
 0x2a4   :  { %v1948_v56 = vmax.f32 %v1898_v13, 0.0  ;;  %v1483_v47 = vmul.f32 %v7192_v38, %v7191_v31  ;;  %v3474_v13 = vld [vmem:[%s6987_s3 + $0x280] sm:$0xf] }
 0x2a6   :  { %v6078_v53 = vpack.c.bf16 %v1948_v56, %v1947_v51 }
 0x2a7   :  { %v1762_v43 = vpop.permute.xlu1 %1761  ;;  %3730 = vmatpush.lsf.bf16.msrb.mxu1 %v5909_v45 }
 0x2a8   :  { %v1817_v60 = vadd.f32 %v1762_v43, %v1517_v15  ;;  %v3638_v15 = vld [vmem:[%s6987_s3 + $0x22c] sm:$0xf0] }
 0x2aa   :  { %v1917_v23 = vadd.f32 %v1867_v28, %v1817_v60  ;;  %2113 = vxpose.xlu1.c.b16.cont [4/8] (narrow) %v5971_v33, 64  ;;  %v3410_v28 = vld [vmem:[%s6987_s3 + $0x200] sm:$0xf]  ;;  %v3598_v60 = vld [vmem:[%s6987_s3 + $0xec] sm:$0xf0] }
 0x2ab   :  { %3731 = vmatpush.lsf.bf16.msrb.mxu1 %v5877_v19  ;;  %v7196_v19 = vld [vmem:[#allocation57_spill] sm:$0xff]  ;;  %v3267_v54 = vor.u32 %v3598_v60, %v3266_v11  ;;  %v3628_v11 = vld [vmem:[%s6987_s3 + $0x1e4] sm:$0xf] }
 0x2ac   :  { %v1967_v36 = vmax.f32 %v1917_v23, 0.0  ;;  %v1500_v16 = vmul.f32 %v7196_v19, %v7195_v39  ;;  %v3594_v23 = vld [vmem:[%s6987_s3 + $0xcc] sm:$0xf0]  ;;  %v3330_v39 = vld [vmem:[%s6987_s3 + $0x160] sm:$0xf] }
 0x2ad   :  { %v3251_v59 = vor.u32 %v3594_v23, %v3250_v34  ;;  %v3399_v34 = vor.u32 %v3628_v11, %v3396_v29  ;;  %v3636_v29 = vld [vmem:[%s6987_s3 + $0x224] sm:$0xf] }
 0x2ae   :  { %v1993_v62 = vpack.c.bf16 %v1968_v46, %v1967_v36  ;;  %v3378_v46 = vld [vmem:[%s6987_s3 + $0x1c0] sm:$0xf]  ;;  %v3626_v36 = vld [vmem:[%s6987_s3 + $0x1cc] sm:$0xf0] }
 0x2af   :  { %v1592_v32 = vpop.permute.xlu1 %1591  ;;  %3732 = vmatpush.lsf.bf16.msrb.mxu1 %v5835_v37  ;;  %v3379_v31 = vor.u32 %v3626_v36, %v3378_v46  ;;  %v3252_v46 = vld [vmem:[%s6987_s3 + $0xd0] sm:$0xf0]  ;;  %v3624_v36 = vld [vmem:[%s6987_s3 + $0x1c4] sm:$0xf] }
 0x2b0   :  { %v1783_v45 = vadd.f32 %v1592_v32, %v1483_v47  ;;  %2142 = vxpose.xlu2.c.b16.start.end [1/1] (short) (narrow) %v1993_v62, 64  ;;  %v3234_v47 = vld [vmem:[%s6987_s3 + $0xa0] sm:$0xf]  ;;  %v3590_v62 = vld [vmem:[%s6987_s3 + $0xac] sm:$0xf0] }
 0x2b1   :  { %3733 = vllmr.8.mxu1  ;;  %v3235_v32 = vor.u32 %v3590_v62, %v3234_v47  ;;  %v3508_v47 = vld [vmem:[%s6987_s3 + $0x2d0] sm:$0xf0] }
 0x2b2   :  { %v1883_v30 = vadd.f32 %v1833_v58, %v1783_v45  ;;  %v3362_v58 = vld [vmem:[%s6987_s3 + $0x1a0] sm:$0xf] }
 0x2b3   :  { %2699 = vmatpush.bf16.msra.mxu1 %v3395_v25  ;;  %v3218_v45 = vld [vmem:[%s6987_s3 + $0x80] sm:$0xf]  ;;  %v3363_v48 = vor.u32 %v3622_v44, %v3362_v58  ;;  %v3592_v25 = vld [vmem:[%s6987_s3 + $0xc4] sm:$0xf] }
 0x2b4   :  { %v1933_v3 = vmax.f32 %v1883_v30, 0.0  ;;  %v3219_v30 = vor.u32 %v3586_v27, %v3218_v45  ;;  %v3588_v44 = vld [vmem:[%s6987_s3 + $0xa4] sm:$0xf]  ;;  %v3236_v45 = vld [vmem:[%s6987_s3 + $0xb0] sm:$0xf0] }
 0x2b5   :  { %v3620_v27 = vld [vmem:[%s6987_s3 + $0x1a4] sm:$0xf] }
 0x2b6   :  { %v1976_v35 = vpack.c.bf16 %v1934_v12, %v1933_v3  ;;  %v3347_v12 = vor.u32 %v3618_v41, %v3346_v22  ;;  %v3202_v3 = vld [vmem:[%s6987_s3 + $0x60] sm:$0xf]  ;;  %v3364_v22 = vld [vmem:[%s6987_s3 + $0x1b0] sm:$0xf0]  ;;  %v3652_v41 = vld [vmem:[%s6987_s3 + $0x2a4] sm:$0xf] }
 0x2b7   :  { %v1677_v5 = vpop.permute.xlu1 %1676  ;;  %2700 = vmatpush.bf16.msra.mxu1 %v3379_v31  ;;  %v3203_v19 = vor.u32 %v3582_v55, %v3202_v3  ;;  %v3380_v31 = vld [vmem:[%s6987_s3 + $0x1d0] sm:$0xf0]  ;;  %v3584_v55 = vld [vmem:[%s6987_s3 + $0x84] sm:$0xf] }
 0x2b8   :  { %v1800_v40 = vadd.f32 %v1677_v5, %v1500_v16  ;;  %3780 = vxpose.binary.xlu0.c.b16.end [8/16] (narrow) %v1976_v35, %v6050_v18, 64  ;;  %v3662_v18 = vld [vmem:[%s6987_s3 + $0x2ec] sm:$0xf0]  ;;  %v3186_v35 = vld [vmem:[%s6987_s3 + $0x40] sm:$0xf]  ;;  %v3383_v58 = vor.u32 %v3624_v36, %v3380_v31 }
 0x2b9   :  { %v3523_v4 = vor.u32 %v3662_v18, %v3522_v24  ;;  %v3614_v16 = vld [vmem:[%s6987_s3 + $0x16c] sm:$0xf0]  ;;  %v3298_v18 = vld [vmem:[%s6987_s3 + $0x120] sm:$0xf]  ;;  %v3600_v31 = vld [vmem:[%s6987_s3 + $0x104] sm:$0xf] }
 0x2ba   :  { %v1900_v37 = vadd.f32 %v1850_v1, %v1800_v40  ;;  %2114 = vxpose.xlu1.c.b16.cont [5/8] (narrow) %v6005_v50, 64  ;;  %v3578_v1 = vld [vmem:[%s6987_s3 + $0x4c] sm:$0xf0]  ;;  %v3331_v5 = vor.u32 %v3614_v16, %v3330_v39  ;;  %v3220_v39 = vld [vmem:[%s6987_s3 + $0x90] sm:$0xf0] }
 0x2bb   :  { %2727 = vmatpush.bf16.msra.mxu2 %v3523_v4  ;;  %2701 = vmatpush.bf16.msra.mxu1 %v3363_v48  ;;  %v3610_v40 = vld [vmem:[%s6987_s3 + $0x14c] sm:$0xf0]  ;;  %v3239_v48 = vor.u32 %v3588_v44, %v3236_v45  ;;  %v3223_v16 = vor.u32 %v3584_v55, %v3220_v39 }
 0x2bc   :  { %v1950_v20 = vmax.f32 %v1900_v37, 0.0  ;;  %v3187_v37 = vor.u32 %v3578_v1, %v3186_v35  ;;  %v3574_v24 = vld [vmem:[%s6987_s3 + $0x2c] sm:$0xf0]  ;;  %v3348_v35 = vld [vmem:[%s6987_s3 + $0x190] sm:$0xf0] }
 0x2bd   :  { %v3648_v1 = vld [vmem:[%s6987_s3 + $0x284] sm:$0xf] }
 0x2be   :  { %v1984_v17 = vpack.c.bf16 %v1950_v20, %v1949_v26  ;;  %v3315_v26 = vor.u32 %v3610_v40, %v3314_v10 }
 0x2bf   :  { %2702 = vmatpush.bf16.msra.mxu1 %v3347_v12  ;;  %v3367_v12 = vor.u32 %v3620_v27, %v3364_v22  ;;  %v3274_v27 = vld [vmem:[%s6987_s3 + $0xe8] sm:$0xf] }
 0x2c0   :  { %3680 = vmatpush.lsf.bf16.msrb.mxu0 %v1984_v17  ;;  %v3402_v22 = vld [vmem:[%s6987_s3 + $0x1e8] sm:$0xf] }
 0x2c3   :  { %2703 = vmatpush.bf16.msra.mxu1 %v3331_v5  ;;  %v3476_v5 = vld [vmem:[%s6987_s3 + $0x290] sm:$0xf0] }
 0x2c4   :  { %3681 = vmatpush.lsf.bf16.msrb.mxu0 %v6078_v53 }
 0x2c7   :  { %2704 = vmatpush.bf16.msra.mxu1 %v3315_v26 }
 0x2c8   :  { %3682 = vmatpush.lsf.bf16.msrb.mxu0 %v6034_v61 }
 0x2ca   :  { %2115 = vxpose.xlu1.c.b16.cont [6/8] (narrow) %v6034_v61, 64  ;;  %v3507_v61 = vor.u32 %v3658_v42, %v3506_v0  ;;  %v3606_v0 = vld [vmem:[%s6987_s3 + $0x12c] sm:$0xf0]  ;;  %v3154_v42 = vld [vmem:[%s6987_s3] sm:$0xf] }
 0x2cb   :  { %v3299_v6 = vor.u32 %v3606_v0, %v3298_v18  ;;  %v3332_v0 = vld [vmem:[%s6987_s3 + $0x170] sm:$0xf0] }
 0x2cc   :  { %3683 = vmatpush.lsf.bf16.msrb.mxu0 %v6005_v50  ;;  %2728 = vmatpush.bf16.msra.mxu2 %v3507_v61  ;;  %v3650_v50 = vld [vmem:[%s6987_s3 + $0x28c] sm:$0xf0] }
 0x2cd   :  { %v3475_v51 = vor.u32 %v3650_v50, %v3474_v13  ;;  %v3570_v61 = vld [vmem:[%s6987_s3 + $0xc] sm:$0xf0]  ;;  %v3538_v13 = vld [vmem:[%s6987_s3 + $0x300] sm:$0xf]  ;;  %2705 = vmatpush.bf16.msra.mxu1 %v3299_v6 }
 0x2ce   :  { %v3155_v50 = vor.u32 %v3570_v61, %v3154_v42  ;;  %v3644_v42 = vld [vmem:[%s6987_s3 + $0x264] sm:$0xf]  ;;  %v3460_v61 = vld [vmem:[%s6987_s3 + $0x270] sm:$0xf0] }
 0x2d0   :  { %3684 = vmatpush.lsf.bf16.msrb.mxu0 %v5971_v33  ;;  %2729 = vmatpush.bf16.msra.mxu2 %v3491_v9  ;;  %v3646_v33 = vld [vmem:[%s6987_s3 + $0x26c] sm:$0xf0] }
 0x2d1   :  { %v3459_v56 = vor.u32 %v3646_v33, %v3458_v21  ;;  %v3602_v9 = vld [vmem:[%s6987_s3 + $0x10c] sm:$0xf0]  ;;  %v3664_v21 = vld [vmem:[%s6987_s3 + $0x304] sm:$0xf]  ;;  %v3540_v33 = vld [vmem:[%s6987_s3 + $0x310] sm:$0xf0] }
 0x2d4   :  { %3685 = vmatpush.lsf.bf16.msrb.mxu0 %v5936_v49  ;;  %2730 = vmatpush.bf16.msra.mxu2 %v3475_v51  ;;  %v3442_v49 = vld [vmem:[%s6987_s3 + $0x240] sm:$0xf]  ;;  %v3666_v51 = vld [vmem:[%s6987_s3 + $0x30c] sm:$0xf0] }
 0x2d5   :  { %v3443_v8 = vor.u32 %v3642_v2, %v3442_v49  ;;  %v3539_v49 = vor.u32 %v3666_v51, %v3538_v13  ;;  %v3543_v2 = vor.u32 %v3664_v21, %v3540_v33  ;;  %v3188_v13 = vld [vmem:[%s6987_s3 + $0x50] sm:$0xf0]  ;;  %v3640_v33 = vld [vmem:[%s6987_s3 + $0x244] sm:$0xf] }
 0x2d6   :  { %v3316_v21 = vld [vmem:[%s6987_s3 + $0x150] sm:$0xf0] }
 0x2d7   :  { %2762 = vmatpush.bf16.msra.mxu3 %v3539_v49 }
 0x2d8   :  { %3686 = vmatpush.lsf.bf16.msrb.mxu0 %v5893_v63  ;;  %2731 = vmatpush.bf16.msra.mxu2 %v3459_v56  ;;  %v3426_v63 = vld [vmem:[%s6987_s3 + $0x220] sm:$0xf]  ;;  %v3283_v56 = vor.u32 %v3602_v9, %v3282_v14  ;;  %v3463_v14 = vor.u32 %v3644_v42, %v3460_v61  ;;  %v3576_v9 = vld [vmem:[%s6987_s3 + $0x44] sm:$0xf]  ;;  %v3591_v42 = vld [vmem:[%s6987_s3 + $0xb4] sm:$0xf0] }
 0x2d9   :  { %v3191_v51 = vor.u32 %v3576_v9, %v3188_v13  ;;  %v3370_v61 = vld [vmem:[%s6987_s3 + $0x1a8] sm:$0xf]  ;;  %v3655_v13 = vld [vmem:[%s6987_s3 + $0x2b4] sm:$0xf0] }
 0x2da   :  { %2116 = vxpose.xlu1.c.b16.cont [7/8] (narrow) %v6078_v53, 64  ;;  %v3427_v53 = vor.u32 %v3638_v15, %v3426_v63  ;;  %2706 = vmatpush.bf16.msra.mxu1 %v3283_v56  ;;  %v3444_v56 = vld [vmem:[%s6987_s3 + $0x250] sm:$0xf0]  ;;  %v3498_v9 = vld [vmem:[%s6987_s3 + $0x2a8] sm:$0xf] }
 0x2dc   :  { %3687 = vmatpush.lsf.bf16.msrb.mxu0 %v5848_v7  ;;  %2732 = vmatpush.bf16.msra.mxu2 %v3443_v8  ;;  %v3634_v7 = vld [vmem:[%s6987_s3 + $0x20c] sm:$0xf0] }
 0x2dd   :  { %v3411_v43 = vor.u32 %v3634_v7, %v3410_v28  ;;  %v3596_v7 = vld [vmem:[%s6987_s3 + $0xe4] sm:$0xf] }
 0x2de   :  { %3688 = vllmr.8.mxu0 }
 0x2e0   :  { %2733 = vmatpush.bf16.msra.mxu2 %v3427_v53  ;;  %2671 = vmatpush.bf16.msra.mxu0 %v3267_v54  ;;  %v3660_v54 = vld [vmem:[%s6987_s3 + $0x2e4] sm:$0xf] }
 0x2e1   :  { %v3527_v23 = vor.u32 %v3660_v54, %v3524_v52  ;;  %v3428_v54 = vld [vmem:[%s6987_s3 + $0x230] sm:$0xf0] }
 0x2e4   :  { %2734 = vmatpush.bf16.msra.mxu2 %v3411_v43  ;;  %2672 = vmatpush.bf16.msra.mxu0 %v3251_v59  ;;  %v3268_v43 = vld [vmem:[%s6987_s3 + $0xf0] sm:$0xf0]  ;;  %v3255_v59 = vor.u32 %v3592_v25, %v3252_v46  ;;  %v3546_v46 = vld [vmem:[%s6987_s3 + $0x308] sm:$0xf] }
 0x2e5   :  { %v3271_v60 = vor.u32 %v3596_v7, %v3268_v43  ;;  %v3172_v7 = vld [vmem:[%s6987_s3 + $0x30] sm:$0xf0]  ;;  %v3604_v43 = vld [vmem:[%s6987_s3 + $0x124] sm:$0xf] }
 0x2e6   :  { %v3156_v25 = vld [vmem:[%s6987_s3 + $0x10] sm:$0xf0] }
 0x2e7   :  { %2783 = vmatpush.bf16.msrb.mxu3 %v3271_v60  ;;  %v3300_v60 = vld [vmem:[%s6987_s3 + $0x130] sm:$0xf0] }
 0x2e8   :  { %2673 = vmatpush.bf16.msra.mxu0 %v3235_v32  ;;  %2874 = vmatpush.bf16.msrb.mxu2 %v3543_v2  ;;  %v3303_v52 = vor.u32 %v3604_v43, %v3300_v60 }
 0x2ea   :  { %2117 = vxpose.xlu1.c.b16.end [8/8] (narrow) %v1984_v17, 64  ;;  %v3170_v17 = vld [vmem:[%s6987_s3 + $0x20] sm:$0xf] }
 0x2eb   :  { %v3171_v4 = vor.u32 %v3574_v24, %v3170_v17  ;;  %2784 = vmatpush.bf16.msrb.mxu3 %v3255_v59  ;;  %v3204_v17 = vld [vmem:[%s6987_s3 + $0x70] sm:$0xf0]  ;;  %v3612_v24 = vld [vmem:[%s6987_s3 + $0x164] sm:$0xf]  ;;  %v3667_v59 = vld [vmem:[%s6987_s3 + $0x314] sm:$0xf0] }
 0x2ec   :  { %2674 = vmatpush.bf16.msra.mxu0 %v3219_v30  ;;  %v3492_v30 = vld [vmem:[%s6987_s3 + $0x2b0] sm:$0xf0]  ;;  %v3335_v6 = vor.u32 %v3612_v24, %v3332_v0  ;;  %v3242_v0 = vld [vmem:[%s6987_s3 + $0xa8] sm:$0xf] }
 0x2ed   :  { %v3495_v3 = vor.u32 %v3652_v41, %v3492_v30  ;;  %v3631_v30 = vld [vmem:[%s6987_s3 + $0x1f4] sm:$0xf0] }
 0x2ee   :  { %v3403_v55 = vor.u32 %v3631_v30, %v3402_v22  ;;  %v3178_v30 = vld [vmem:[%s6987_s3 + $0x28] sm:$0xf] }
 0x2ef   :  { %2785 = vmatpush.bf16.msrb.mxu3 %v3239_v48  ;;  %v3599_v48 = vld [vmem:[%s6987_s3 + $0xf4] sm:$0xf0] }
 0x2f0   :  { %2675 = vmatpush.bf16.msra.mxu0 %v3203_v19  ;;  %v3616_v19 = vld [vmem:[%s6987_s3 + $0x184] sm:$0xf]  ;;  %v3275_v41 = vor.u32 %v3599_v48, %v3274_v27 }
 0x2f1   :  { %v3351_v40 = vor.u32 %v3616_v19, %v3348_v35  ;;  %v3258_v19 = vld [vmem:[%s6987_s3 + $0xc8] sm:$0xf] }
 0x2f2   :  { %v3386_v35 = vld [vmem:[%s6987_s3 + $0x1c8] sm:$0xf] }
 0x2f3   :  { %2786 = vmatpush.bf16.msrb.mxu3 %v3223_v16  ;;  %v3595_v16 = vld [vmem:[%s6987_s3 + $0xd4] sm:$0xf0] }
 0x2f4   :  { %v3781_v38 = vpop.trf.xlu0  ;;  %2676 = vmatpush.bf16.msra.mxu0 %v3187_v37  ;;  %v3479_v37 = vor.u32 %v3648_v1, %v3476_v5  ;;  %v3259_v1 = vor.u32 %v3595_v16, %v3258_v19  ;;  %v3627_v5 = vld [vmem:[%s6987_s3 + $0x1d4] sm:$0xf0]  ;;  %v3434_v19 = vld [vmem:[%s6987_s3 + $0x228] sm:$0xf] }
 0x2f5   :  { %2735 = vmatmul.bf16.vlgmr.msra.gmra.mxu2 %v3781_v38  ;;  %v3656_v38 = vld [vmem:[%s6987_s3 + $0x2c4] sm:$0xf]  ;;  %v3639_v16 = vld [vmem:[%s6987_s3 + $0x234] sm:$0xf0] }
 0x2f6   :  { %v3511_v32 = vor.u32 %v3656_v38, %v3508_v47  ;;  %v3284_v38 = vld [vmem:[%s6987_s3 + $0x110] sm:$0xf0]  ;;  %v3547_v47 = vor.u32 %v3667_v59, %v3546_v46  ;;  %v3647_v46 = vld [vmem:[%s6987_s3 + $0x274] sm:$0xf0] }
 0x2f8   :  { %2677 = vmatpush.bf16.msra.mxu0 %v3171_v4  ;;  %2986 = vmatpush.bf16.msra.mxu2 %v3547_v47  ;;  %v3322_v47 = vld [vmem:[%s6987_s3 + $0x148] sm:$0xf] }
 0x2fc   :  { %v6215_v57 = vpop.trf.xlu0  ;;  %2678 = vmatpush.bf16.msra.mxu0 %v3155_v50  ;;  %v3608_v50 = vld [vmem:[%s6987_s3 + $0x144] sm:$0xf] }
 0x2fd   :  { %v3319_v2 = vor.u32 %v3608_v50, %v3316_v21  ;;  %v3226_v21 = vld [vmem:[%s6987_s3 + $0x88] sm:$0xf] }
 0x2ff   :  { %2679 = vmatmul.bf16.vlgmr.msra.gmra.mxu0 %v6215_v57 }
 0x300   :  { %2811 = vmatpush.bf16.msra.mxu0 %v3399_v34  ;;  %v3431_v34 = vor.u32 %v3636_v29, %v3428_v54  ;;  %v3210_v29 = vld [vmem:[%s6987_s3 + $0x68] sm:$0xf]  ;;  %v3583_v54 = vld [vmem:[%s6987_s3 + $0x74] sm:$0xf0] }
 0x304   :  { %v3783_v20 = vpop.trf.xlu0  ;;  %2812 = vmatpush.bf16.msra.mxu0 %v3383_v58  ;;  %v3632_v58 = vld [vmem:[%s6987_s3 + $0x204] sm:$0xf] }
 0x305   :  { %2740 = vmatmul.bf16.gmra.mxu2 %v3783_v20  ;;  %v3580_v20 = vld [vmem:[%s6987_s3 + $0x64] sm:$0xf] }
 0x306   :  { %v3207_v4 = vor.u32 %v3580_v20, %v3204_v17 }
 0x308   :  { %2813 = vmatpush.bf16.msra.mxu0 %v3367_v12  ;;  %2787 = vmatpush.bf16.msrb.mxu3 %v3207_v4  ;;  %v3530_v12 = vld [vmem:[%s6987_s3 + $0x2e8] sm:$0xf] }
 0x30c   :  { %v6277_v8 = vpop.trf.xlu0  ;;  %2814 = vmatpush.bf16.msra.mxu0 %v3351_v40  ;;  %2788 = vmatpush.bf16.msrb.mxu3 %v3191_v51  ;;  %v3659_v40 = vld [vmem:[%s6987_s3 + $0x2d4] sm:$0xf0]  ;;  %v3499_v51 = vor.u32 %v3655_v13, %v3498_v9  ;;  %v3418_v13 = vld [vmem:[%s6987_s3 + $0x208] sm:$0xf] }
 0x30f   :  { %2684 = vmatmul.bf16.gmra.mxu0 %v6277_v8 }
 0x310   :  { %2815 = vmatpush.bf16.msra.mxu0 %v3335_v6  ;;  %v3243_v6 = vor.u32 %v3591_v42, %v3242_v0  ;;  %v3548_v42 = vld [vmem:[%s6987_s3 + $0x318] sm:$0xf0] }
 0x314   :  { %v3785_v63 = vpop.trf.xlu0  ;;  %2816 = vmatpush.bf16.msra.mxu0 %v3319_v2  ;;  %v3619_v2 = vld [vmem:[%s6987_s3 + $0x194] sm:$0xf0] }
 0x315   :  { %2745 = vmatmul.bf16.gmra.mxu2 %v3785_v63  ;;  %v3447_v63 = vor.u32 %v3640_v33, %v3444_v56  ;;  %v3587_v33 = vld [vmem:[%s6987_s3 + $0x94] sm:$0xf0]  ;;  %v3354_v56 = vld [vmem:[%s6987_s3 + $0x188] sm:$0xf] }
 0x318   :  { %2817 = vmatpush.bf16.msra.mxu0 %v3303_v52  ;;  %v3338_v52 = vld [vmem:[%s6987_s3 + $0x168] sm:$0xf] }
 0x31c   :  { %v6280_v15 = vpop.trf.xlu0 }
 0x31f   :  { %2689 = vmatmul.bf16.gmra.mxu0 %v6280_v15 }
 0x324   :  { %v3787_v53 = vpop.trf.xlu0 }
 0x325   :  { %2750 = vmatmul.bf16.gmra.mxu2 %v3787_v53 }
 0x326   :  { %v2118_v28 = vpop.trf.xlu1 }
 0x327   :  { %2707 = vmatmul.bf16.vlgmr.msra.gmra.mxu1 %v2118_v28  ;;  %v3572_v28 = vld [vmem:[%s6987_s3 + $0x24] sm:$0xf] }
 0x328   :  { %2839 = vmatpush.bf16.msra.mxu1 %v3527_v23  ;;  %v3175_v11 = vor.u32 %v3572_v28, %v3172_v7  ;;  %v3568_v23 = vld [vmem:[%s6987_s3 + $0x4] sm:$0xf]  ;;  %v3651_v28 = vld [vmem:[%s6987_s3 + $0x294] sm:$0xf0]  ;;  %v3355_v7 = vor.u32 %v3619_v2, %v3354_v56  ;;  %v3597_v2 = vld [vmem:[%s6987_s3 + $0xec] sm:$0xf] }
 0x329   :  { %v3159_v36 = vor.u32 %v3568_v23, %v3156_v25  ;;  %v3615_v23 = vld [vmem:[%s6987_s3 + $0x174] sm:$0xf0]  ;;  %v3466_v25 = vld [vmem:[%s6987_s3 + $0x268] sm:$0xf] }
 0x32a   :  { %2789 = vmatpush.bf16.msrb.mxu3 %v3175_v11  ;;  %v3467_v59 = vor.u32 %v3647_v46, %v3466_v25  ;;  %v3593_v25 = vld [vmem:[%s6987_s3 + $0xcc] sm:$0xf]  ;;  %v3260_v46 = vld [vmem:[%s6987_s3 + $0xd8] sm:$0xf0] }
 0x32c   :  { %2840 = vmatpush.bf16.msra.mxu1 %v3511_v32  ;;  %v6371_v18 = vpop.trf.xlu0  ;;  %v3412_v32 = vld [vmem:[%s6987_s3 + $0x210] sm:$0xf0] }
 0x32d   :  { %v3415_v44 = vor.u32 %v3632_v58, %v3412_v32  ;;  %v3611_v58 = vld [vmem:[%s6987_s3 + $0x154] sm:$0xf0]  ;;  %v3450_v32 = vld [vmem:[%s6987_s3 + $0x248] sm:$0xf] }
 0x32e   :  { %2790 = vmatpush.bf16.msrb.mxu3 %v3159_v36  ;;  %v3339_v36 = vor.u32 %v3615_v23, %v3338_v52  ;;  %v3323_v27 = vor.u32 %v3611_v58, %v3322_v47  ;;  %v3532_v23 = vld [vmem:[%s6987_s3 + $0x2f8] sm:$0xf0]  ;;  %v3657_v47 = vld [vmem:[%s6987_s3 + $0x2cc] sm:$0xf] }
 0x32f   :  { %2694 = vmatmul.bf16.gmra.mxu0 %v6371_v18 }
 0x330   :  { %2841 = vmatpush.bf16.msra.mxu1 %v3495_v3  ;;  %v3663_v3 = vld [vmem:[%s6987_s3 + $0x2f4] sm:$0xf0] }
 0x331   :  { %v3531_v39 = vor.u32 %v3663_v3, %v3530_v12  ;;  %v3575_v12 = vld [vmem:[%s6987_s3 + $0x34] sm:$0xf0]  ;;  %v3306_v3 = vld [vmem:[%s6987_s3 + $0x128] sm:$0xf] }
 0x334   :  { %2842 = vmatpush.bf16.msra.mxu1 %v3479_v37  ;;  %v3387_v37 = vor.u32 %v3627_v5, %v3386_v35 }
 0x336   :  { %v2119_v62 = vpop.trf.xlu1 }
 0x337   :  { %2712 = vmatmul.bf16.gmra.mxu1 %v2119_v62  ;;  %v3287_v62 = vor.u32 %v3600_v31, %v3284_v38  ;;  %v3194_v31 = vld [vmem:[%s6987_s3 + $0x48] sm:$0xf]  ;;  %v3579_v38 = vld [vmem:[%s6987_s3 + $0x54] sm:$0xf0] }
 0x338   :  { %2843 = vmatpush.bf16.msra.mxu1 %v3463_v14  ;;  %v3623_v14 = vld [vmem:[%s6987_s3 + $0x1b4] sm:$0xf0] }
 0x339   :  { %2818 = vmatpush.bf16.msra.mxu0 %v3287_v62  ;;  %v3371_v50 = vor.u32 %v3623_v14, %v3370_v61  ;;  %v3195_v62 = vor.u32 %v3579_v38, %v3194_v31  ;;  %v3290_v61 = vld [vmem:[%s6987_s3 + $0x108] sm:$0xf]  ;;  %v3625_v31 = vld [vmem:[%s6987_s3 + $0x1cc] sm:$0xf]  ;;  %v3388_v38 = vld [vmem:[%s6987_s3 + $0x1d8] sm:$0xf0] }
 0x33c   :  { %2844 = vmatpush.bf16.msra.mxu1 %v3447_v63  ;;  %v3482_v63 = vld [vmem:[%s6987_s3 + $0x288] sm:$0xf] }
 0x33d   :  { %v3483_v43 = vor.u32 %v3651_v28, %v3482_v63  ;;  %v3276_v63 = vld [vmem:[%s6987_s3 + $0xf8] sm:$0xf0] }
 0x33e   :  { %v3279_v28 = vor.u32 %v3597_v2, %v3276_v63  ;;  %v3212_v2 = vld [vmem:[%s6987_s3 + $0x78] sm:$0xf0] }
 0x33f   :  { %3689 = vmatmul.lmr.bf16.vlgmr.msra.gmra.8.mxu0 }
 0x340   :  { %2845 = vmatpush.bf16.msra.mxu1 %v3431_v34  ;;  %2923 = vmatpush.bf16.msra.mxu0 %v3403_v55  ;;  %v3211_v34 = vor.u32 %v3583_v54, %v3210_v29  ;;  %v3179_v55 = vor.u32 %v3575_v12, %v3178_v30  ;;  %v3661_v29 = vld [vmem:[%s6987_s3 + $0x2ec] sm:$0xf]  ;;  %v3244_v30 = vld [vmem:[%s6987_s3 + $0xb8] sm:$0xf0] }
 0x344   :  { %2846 = vmatpush.bf16.msra.mxu1 %v3415_v44  ;;  %2924 = vmatpush.bf16.msra.mxu0 %v3387_v37  ;;  %v3643_v44 = vld [vmem:[%s6987_s3 + $0x254] sm:$0xf0] }
 0x345   :  { %v3451_v48 = vor.u32 %v3643_v44, %v3450_v32  ;;  %v3571_v37 = vld [vmem:[%s6987_s3 + $0x14] sm:$0xf0]  ;;  %v3391_v32 = vor.u32 %v3625_v31, %v3388_v38  ;;  %v3516_v44 = vld [vmem:[%s6987_s3 + $0x2d8] sm:$0xf0] }
 0x346   :  { %v2120_v10 = vpop.trf.xlu1 }
 0x347   :  { %2717 = vmatmul.bf16.gmra.mxu1 %v2120_v10  ;;  %3690 = vmatmul.lmr.bf16.gmra.8.mxu0  ;;  %v3514_v10 = vld [vmem:[%s6987_s3 + $0x2c8] sm:$0xf] }
 0x348   :  { %v3515_v20 = vor.u32 %v3659_v40, %v3514_v10  ;;  %2925 = vmatpush.bf16.msra.mxu0 %v3371_v50  ;;  %v3162_v40 = vld [vmem:[%s6987_s3 + $0x8] sm:$0xf]  ;;  %v3635_v50 = vld [vmem:[%s6987_s3 + $0x214] sm:$0xf0] }
 0x349   :  { %v3163_v0 = vor.u32 %v3571_v37, %v3162_v40  ;;  %v3585_v40 = vld [vmem:[%s6987_s3 + $0x8c] sm:$0xf]  ;;  %v3228_v37 = vld [vmem:[%s6987_s3 + $0x98] sm:$0xf0] }
 0x34c   :  { %2926 = vmatpush.bf16.msra.mxu0 %v3355_v7  ;;  %v3629_v7 = vld [vmem:[%s6987_s3 + $0x1ec] sm:$0xf] }
 0x34f   :  { %3691 = vmatmul.lmr.bf16.gmra.8.mxu0 }
 0x350   :  { %2927 = vmatpush.bf16.msra.mxu0 %v3339_v36  ;;  %v3535_v36 = vor.u32 %v3661_v29, %v3532_v23  ;;  %v3340_v29 = vld [vmem:[%s6987_s3 + $0x178] sm:$0xf0] }
 0x351   :  { %v6356_v26 = vpop.trf.xlu2 }
 0x352   :  { %3552 = vmatmul.msk.bf16.vlgmr.msra.gmra.mxu3 %vm2658_vm7, %v6356_v26  ;;  %3556 = vmatmul.msk.bf16.vlgmr.msrb.gmra.mxu2 %vm2658_vm7, %v6356_v26 }
 0x353   :  { %2895 = vmatpush.bf16.msra.mxu3 %v3275_v41 }
 0x354   :  { %2928 = vmatpush.bf16.msra.mxu0 %v3323_v27  ;;  %v3519_v27 = vor.u32 %v3657_v47, %v3516_v44 }
 0x356   :  { %v2121_v49 = vpop.trf.xlu1 }
 0x357   :  { %2722 = vmatmul.bf16.gmra.mxu1 %v2121_v49  ;;  %2896 = vmatpush.bf16.msra.mxu3 %v3259_v1  ;;  %v3227_v49 = vor.u32 %v3587_v33, %v3226_v21  ;;  %v3435_v1 = vor.u32 %v3639_v16, %v3434_v19 }
 0x358   :  { %3692 = vmatmul.lmr.bf16.gmra.8.mxu0 }
 0x35b   :  { %2897 = vmatpush.bf16.msra.mxu3 %v3243_v6  ;;  %v3603_v6 = vld [vmem:[%s6987_s3 + $0x114] sm:$0xf0] }
 0x35c   :  { %v3291_v9 = vor.u32 %v3603_v6, %v3290_v61  ;;  %v3617_v61 = vld [vmem:[%s6987_s3 + $0x18c] sm:$0xf]  ;;  %v3356_v6 = vld [vmem:[%s6987_s3 + $0x198] sm:$0xf0] }
 0x35f   :  { %2898 = vmatpush.bf16.msra.mxu3 %v3227_v49 }
 0x360   :  { %3693 = vmatmul.lmr.bf16.gmra.8.mxu0 }
 0x361   :  { %v6401_v53 = vpop.trf.xlu2 }
 0x362   :  { %3553 = vmatmul.msk.bf16.gmra.mxu3 %vm2658_vm7, %v6401_v53  ;;  %3557 = vmatmul.msk.bf16.gmra.mxu2 %vm2658_vm7, %v6401_v53 }
 0x363   :  { %2899 = vmatpush.bf16.msra.mxu3 %v3211_v34 }
 0x367   :  { %3734 = vmatmul.lmr.bf16.vlgmr.msra.gmra.8.mxu1  ;;  %2900 = vmatpush.bf16.msra.mxu3 %v3195_v62 }
 0x368   :  { %2951 = vmatpush.bf16.msra.mxu1 %v3531_v39  ;;  %3694 = vmatmul.lmr.bf16.gmra.8.mxu0  ;;  %v3607_v39 = vld [vmem:[%s6987_s3 + $0x134] sm:$0xf0] }
 0x369   :  { %v3307_v35 = vor.u32 %v3607_v39, %v3306_v3  ;;  %v3621_v3 = vld [vmem:[%s6987_s3 + $0x1ac] sm:$0xf] }
 0x36a   :  { %v3653_v39 = vld [vmem:[%s6987_s3 + $0x2ac] sm:$0xf] }
 0x36b   :  { %2901 = vmatpush.bf16.msra.mxu3 %v3179_v55  ;;  %2929 = vmatpush.bf16.msra.mxu0 %v3307_v35  ;;  %v3372_v55 = vld [vmem:[%s6987_s3 + $0x1b8] sm:$0xf0] }
 0x36c   :  { %2952 = vmatpush.bf16.msra.mxu1 %v3515_v20  ;;  %v3665_v20 = vld [vmem:[%s6987_s3 + $0x30c] sm:$0xf]  ;;  %v3375_v35 = vor.u32 %v3621_v3, %v3372_v55 }
 0x36d   :  { %v3551_v14 = vor.u32 %v3665_v20, %v3548_v42 }
 0x36f   :  { %3735 = vmatmul.lmr.bf16.gmra.8.mxu1  ;;  %3098 = vmatpush.bf16.msrb.mxu2 %v3551_v14  ;;  %v3649_v14 = vld [vmem:[%s6987_s3 + $0x28c] sm:$0xf] }
 0x370   :  { %2953 = vmatpush.bf16.msra.mxu1 %v3499_v51  ;;  %3695 = vmatmul.lmr.bf16.gmra.8.mxu0  ;;  %v3419_v51 = vor.u32 %v3635_v50, %v3418_v13  ;;  %v3359_v50 = vor.u32 %v3617_v61, %v3356_v6  ;;  %v3637_v6 = vld [vmem:[%s6987_s3 + $0x22c] sm:$0xf] }
 0x371   :  { %v6449_v45 = vpop.trf.xlu2  ;;  %2902 = vmatpush.bf16.msra.mxu3 %v3163_v0  ;;  %2930 = vmatpush.bf16.msra.mxu0 %v3291_v9  ;;  %v3231_v0 = vor.u32 %v3585_v40, %v3228_v37 }
 0x372   :  { %3554 = vmatmul.msk.bf16.gmra.mxu3 %vm2658_vm7, %v6449_v45  ;;  %3558 = vmatmul.msk.bf16.gmra.mxu2 %vm2658_vm7, %v6449_v45 }
 0x374   :  { %2954 = vmatpush.bf16.msra.mxu1 %v3483_v43  ;;  %v3404_v43 = vld [vmem:[%s6987_s3 + $0x1f8] sm:$0xf0] }
 0x375   :  { %v3407_v34 = vor.u32 %v3629_v7, %v3404_v43  ;;  %v3613_v43 = vld [vmem:[%s6987_s3 + $0x16c] sm:$0xf] }
 0x377   :  { %3736 = vmatmul.lmr.bf16.gmra.8.mxu1 }
 0x378   :  { %v6491_v17 = vpop.f32.mrf.mxu2  ;;  %2955 = vmatpush.bf16.msra.mxu1 %v3467_v59  ;;  %3696 = vmatmul.lmr.bf16.gmra.8.mxu0  ;;  %v3263_v59 = vor.u32 %v3593_v25, %v3260_v46  ;;  %v3577_v46 = vld [vmem:[%s6987_s3 + $0x4c] sm:$0xf] }
 0x37c   :  { %2956 = vmatpush.bf16.msra.mxu1 %v3451_v48  ;;  %v6605_v5 = vpop.f32.mrf.mxu0  ;;  %v3589_v48 = vld [vmem:[%s6987_s3 + $0xac] sm:$0xf] }
 0x37d   :  { %v3247_v12 = vor.u32 %v3589_v48, %v3244_v30  ;;  %v3609_v48 = vld [vmem:[%s6987_s3 + $0x14c] sm:$0xf] }
 0x37f   :  { %3737 = vmatmul.lmr.bf16.gmra.8.mxu1 }
 0x380   :  { %v6493_v24 = vpop.f32.mrf.mxu2  ;;  %2957 = vmatpush.bf16.msra.mxu1 %v3435_v1  ;;  %3697 = vmatmul.lmr.bf16.vlgmr.msra.gmra.8.mxu0  ;;  %v3500_v1 = vld [vmem:[%s6987_s3 + $0x2b8] sm:$0xf0] }
 0x381   :  { %v6495_v4 = vpop.trf.xlu2  ;;  %3035 = vmatpush.bf16.msra.mxu0 %v3407_v34  ;;  %v3503_v20 = vor.u32 %v3653_v39, %v3500_v1  ;;  %v3645_v34 = vld [vmem:[%s6987_s3 + $0x26c] sm:$0xf]  ;;  %v3180_v1 = vld [vmem:[%s6987_s3 + $0x38] sm:$0xf0] }
 0x382   :  { %3555 = vmatmul.msk.bf16.gmra.mxu3 %vm2658_vm7, %v6495_v4  ;;  %3559 = vmatmul.msk.bf16.gmra.mxu2 %vm2658_vm7, %v6495_v4 }
 0x384   :  { %2958 = vmatpush.bf16.msra.mxu1 %v3419_v51  ;;  %v6635_v33 = vpop.f32.mrf.mxu0 }
 0x385   :  { %3036 = vmatpush.bf16.msra.mxu0 %v3391_v32 }
 0x387   :  { %3738 = vmatmul.lmr.bf16.gmra.8.mxu1 }
 0x388   :  { %v6537_v11 = vpop.f32.mrf.mxu2  ;;  %3698 = vmatmul.lmr.bf16.gmra.8.mxu0 }
 0x389   :  { %3037 = vmatpush.bf16.msra.mxu0 %v3375_v35  ;;  %v3573_v35 = vld [vmem:[%s6987_s3 + $0x2c] sm:$0xf] }
 0x38a   :  { %v3183_v40 = vor.u32 %v3573_v35, %v3180_v1 }
 0x38c   :  { %v6657_v54 = vpop.f32.mrf.mxu0 }
 0x38d   :  { %3038 = vmatpush.bf16.msra.mxu0 %v3359_v50  ;;  %v3164_v50 = vld [vmem:[%s6987_s3 + $0x18] sm:$0xf0] }
 0x38f   :  { %3739 = vmatmul.lmr.bf16.gmra.8.mxu1 }
 0x390   :  { %v6539_v60 = vpop.f32.mrf.mxu2  ;;  %3699 = vmatmul.lmr.bf16.gmra.8.mxu0 }
 0x392   :  { %2791 = vmatmul.bf16.vlgmr.msrb.gmra.mxu3 %v6215_v57  ;;  %3560 = vmatmul.msk.bf16.vlgmr.msra.gmra.mxu2 %vm2658_vm7, %v6356_v26 }
 0x393   :  { %3007 = vmatpush.bf16.msrb.mxu3 %v3279_v28 }
 0x394   :  { %v6679_v62 = vpop.f32.mrf.mxu0 }
 0x397   :  { %3740 = vmatmul.lmr.bf16.gmra.8.mxu1  ;;  %3008 = vmatpush.bf16.msrb.mxu3 %v3263_v59 }
 0x398   :  { %v6580_v22 = vpop.f32.mrf.mxu2  ;;  %3700 = vmatmul.lmr.bf16.gmra.8.mxu0 }
 0x39b   :  { %3009 = vmatpush.bf16.msrb.mxu3 %v3247_v12 }
 0x39c   :  { %v6704_v19 = vpop.f32.mrf.mxu0 }
 0x39f   :  { %3741 = vmatmul.lmr.bf16.gmra.8.mxu1  ;;  %3010 = vmatpush.bf16.msrb.mxu3 %v3231_v0  ;;  %v3605_v0 = vld [vmem:[%s6987_s3 + $0x12c] sm:$0xf] }
 0x3a0   :  { %v6582_v41 = vpop.f32.mrf.mxu2  ;;  %3701 = vmatmul.lmr.bf16.gmra.8.mxu0 }
 0x3a2   :  { %2796 = vmatmul.bf16.gmra.mxu3 %v6277_v8  ;;  %3561 = vmatmul.msk.bf16.gmra.mxu2 %vm2658_vm7, %v6401_v53 }
 0x3a4   :  { %v6607_v10 = vpop.f32.mrf.mxu1  ;;  %v6728_v9 = vpop.f32.mrf.mxu0 }
 0x3a5   :  { %v2709_v42 = vadd.f32 %v6607_v10, %v6605_v5  ;;  %v3484_v5 = vld [vmem:[%s6987_s3 + $0x298] sm:$0xf0] }
 0x3a6   :  { %v3487_v51 = vor.u32 %v3649_v14, %v3484_v5 }
 0x3a7   :  { %3742 = vmatmul.lmr.bf16.vlgmr.msra.gmra.8.mxu1  ;;  %v2737_v10 = vadd.f32 %v6491_v17, %v2709_v42  ;;  %v3308_v42 = vld [vmem:[%s6987_s3 + $0x138] sm:$0xf0] }
 0x3a8   :  { %v6633_v21 = vpop.f32.mrf.mxu2  ;;  %3063 = vmatpush.bf16.msra.mxu1 %v3535_v36  ;;  %3702 = vmatmul.lmr.bf16.gmra.8.mxu0  ;;  %v3196_v36 = vld [vmem:[%s6987_s3 + $0x58] sm:$0xf0]  ;;  %v3311_v61 = vor.u32 %v3605_v0, %v3308_v42 }
 0x3a9   :  { %v3199_v31 = vor.u32 %v3577_v46, %v3196_v36 }
 0x3ac   :  { %v6637_v56 = vpop.f32.mrf.mxu1  ;;  %3064 = vmatpush.bf16.msra.mxu1 %v3519_v27  ;;  %v6761_v23 = vpop.f32.mrf.mxu0 }
 0x3ad   :  { %v2711_v17 = vadd.f32 %v6637_v56, %v6635_v33  ;;  %v3343_v33 = vor.u32 %v3613_v43, %v3340_v29  ;;  %v3468_v56 = vld [vmem:[%s6987_s3 + $0x278] sm:$0xf0] }
 0x3ae   :  { %v3471_v59 = vor.u32 %v3645_v34, %v3468_v56  ;;  %v3420_v43 = vld [vmem:[%s6987_s3 + $0x218] sm:$0xf0] }
 0x3af   :  { %3743 = vmatmul.lmr.bf16.gmra.8.mxu1  ;;  %3039 = vmatpush.bf16.msra.mxu0 %v3343_v33  ;;  %v2739_v38 = vadd.f32 %v6493_v24, %v2711_v17  ;;  %v3324_v24 = vld [vmem:[%s6987_s3 + $0x158] sm:$0xf0] }
 0x3b0   :  { %v2753_v49 = vpop.f32.mrf.mxu2  ;;  %3065 = vmatpush.bf16.msra.mxu1 %v3503_v20  ;;  %3703 = vmatmul.lmr.bf16.gmra.8.mxu0  ;;  %v3327_v3 = vor.u32 %v3609_v48, %v3324_v24 }
 0x3b1   :  { %v3581_v49 = vld [vmem:[%s6987_s3 + $0x6c] sm:$0xf] }
 0x3b2   :  { %2801 = vmatmul.bf16.gmra.mxu3 %v6280_v15  ;;  %3562 = vmatmul.msk.bf16.gmra.mxu2 %vm2658_vm7, %v6449_v45  ;;  %v3215_v63 = vor.u32 %v3581_v49, %v3212_v2  ;;  %v3601_v2 = vld [vmem:[%s6987_s3 + $0x10c] sm:$0xf] }
 0x3b3   :  { %3040 = vmatpush.bf16.msra.mxu0 %v3327_v3 }
 0x3b4   :  { %v6659_v52 = vpop.f32.mrf.mxu1  ;;  %3066 = vmatpush.bf16.msra.mxu1 %v3487_v51  ;;  %3011 = vmatpush.bf16.msrb.mxu3 %v3215_v63  ;;  %v2697_v30 = vpop.f32.mrf.mxu0  ;;  %v3292_v63 = vld [vmem:[%s6987_s3 + $0x118] sm:$0xf0] }
 0x3b5   :  { %v2714_v44 = vadd.f32 %v6659_v52, %v6657_v54  ;;  %v3641_v54 = vld [vmem:[%s6987_s3 + $0x24c] sm:$0xf]  ;;  %v3452_v52 = vld [vmem:[%s6987_s3 + $0x258] sm:$0xf0]  ;;  %v3295_v17 = vor.u32 %v3601_v2, %v3292_v63 }
 0x3b6   :  { %v3455_v39 = vor.u32 %v3641_v54, %v3452_v52 }
 0x3b7   :  { %3744 = vmatmul.lmr.bf16.gmra.8.mxu1  ;;  %v2742_v55 = vadd.f32 %v6537_v11, %v2714_v44  ;;  %3041 = vmatpush.bf16.msra.mxu0 %v3311_v61 }
 0x3b8   :  { %3067 = vmatpush.bf16.msra.mxu1 %v3471_v59  ;;  %3012 = vmatpush.bf16.msrb.mxu3 %v3199_v31 }
 0x3b9   :  { %3704 = vmatmul.lmr.bf16.gmra.8.mxu0 }
 0x3bb   :  { %3042 = vmatpush.bf16.msra.mxu0 %v3295_v17 }
 0x3bc   :  { %v6681_v58 = vpop.f32.mrf.mxu1  ;;  %3068 = vmatpush.bf16.msra.mxu1 %v3455_v39  ;;  %3013 = vmatpush.bf16.msrb.mxu3 %v3183_v40  ;;  %v2820_v56 = vpop.f32.mrf.mxu0 }
 0x3bd   :  { %v2716_v11 = vadd.f32 %v6681_v58, %v6679_v62  ;;  %v3436_v62 = vld [vmem:[%s6987_s3 + $0x238] sm:$0xf0]  ;;  %v3569_v58 = vld [vmem:[%s6987_s3 + $0xc] sm:$0xf] }
 0x3be   :  { %v3439_v14 = vor.u32 %v3637_v6, %v3436_v62  ;;  %v3167_v5 = vor.u32 %v3569_v58, %v3164_v50 }
 0x3bf   :  { %3745 = vmatmul.lmr.bf16.gmra.8.mxu1 }
 0x3c0   :  { %3069 = vmatpush.bf16.msra.mxu1 %v3439_v14  ;;  %3014 = vmatpush.bf16.msrb.mxu3 %v3167_v5 }
 0x3c1   :  { %3705 = vmatmul.lmr.bf16.vlgmr.msra.gmra.8.mxu0 }
 0x3c2   :  { %2806 = vmatmul.bf16.gmra.mxu3 %v6371_v18  ;;  %3563 = vmatmul.msk.bf16.gmra.mxu2 %vm2658_vm7, %v6495_v4 }
 0x3c4   :  { %v6706_v16 = vpop.f32.mrf.mxu1 }
 0x3c7   :  { %3746 = vmatmul.lmr.bf16.gmra.8.mxu1 }
 0x3c9   :  { %3706 = vmatmul.lmr.bf16.gmra.8.mxu0 }
 0x3cc   :  { %v6730_v13 = vpop.f32.mrf.mxu1 }
 0x3cd   :  { %v2721_v36 = vadd.f32 %v6730_v13, %v6728_v9 }
 0x3cf   :  { %3747 = vmatmul.lmr.bf16.gmra.8.mxu1 }
 0x3d1   :  { %3707 = vmatmul.lmr.bf16.gmra.8.mxu0 }
 0x3d2   :  { %2903 = vmatmul.bf16.vlgmr.msra.gmra.mxu3 %v6215_v57  ;;  %3564 = vmatmul.msk.bf16.vlgmr.msrb.gmra.mxu2 %vm2658_vm7, %v6356_v26 }
 0x3d4   :  { %v6763_v25 = vpop.f32.mrf.mxu1 }
 0x3d5   :  { %v2764_v28 = vpop.f32.mrf.mxu3  ;;  %v6745_v7 = vpop.f32.mrf.mxu2  ;;  %v2724_v31 = vadd.f32 %v6763_v25, %v6761_v23 }
 0x3d6   :  { %v2765_v26 = vadd.f32 %v2764_v28, %v2737_v10  ;;  %v2744_v10 = vadd.f32 %v6539_v60, %v2716_v11  ;;  %v3633_v28 = vld [vmem:[%s6987_s3 + $0x20c] sm:$0xf]  ;;  %v2719_v60 = vadd.f32 %v6706_v16, %v6704_v19 }
 0x3d7   :  { %3748 = vmatmul.lmr.bf16.gmra.8.mxu1  ;;  %v3423_v29 = vor.u32 %v3633_v28, %v3420_v43 }
 0x3d8   :  { %3119 = vst [vmem:[%s6988_s4] sm:$0xff] %v2765_v26  ;;  %v2747_v19 = vadd.f32 %v6580_v22, %v2719_v60 }
 0x3d9   :  { %3070 = vmatpush.bf16.msra.mxu1 %v3423_v29  ;;  %3708 = vmatmul.lmr.bf16.gmra.8.mxu0 }
 0x3dc   :  { %v2725_v12 = vpop.f32.mrf.mxu1 }
 0x3dd   :  { %v2766_v47 = vpop.f32.mrf.mxu3  ;;  %v6775_v32 = vpop.f32.mrf.mxu2 }
 0x3de   :  { %v2767_v27 = vadd.f32 %v2766_v47, %v2739_v38  ;;  %v2822_v47 = vpop.f32.mrf.mxu0 }
 0x3df   :  { %3749 = vmatmul.lmr.bf16.gmra.8.mxu1 }
 0x3e0   :  { %3123 = vst [vmem:[%s6988_s4 + $0x20] sm:$0xff] %v2767_v27 }
 0x3e1   :  { %3709 = vmatmul.lmr.bf16.gmra.8.mxu0 }
 0x3e2   :  { %2908 = vmatmul.bf16.gmra.mxu3 %v6277_v8  ;;  %3565 = vmatmul.msk.bf16.gmra.mxu2 %vm2658_vm7, %v6401_v53 }
 0x3e4   :  { %v2848_v46 = vpop.f32.mrf.mxu1 }
 0x3e5   :  { %v2769_v37 = vpop.f32.mrf.mxu3  ;;  %v6804_v20 = vpop.f32.mrf.mxu2 }
 0x3e6   :  { %v2770_v53 = vadd.f32 %v2769_v37, %v2742_v55  ;;  %v2825_v25 = vpop.f32.mrf.mxu0 }
 0x3e7   :  { %3750 = vmatmul.lmr.bf16.vlgmr.msra.gmra.8.mxu1 }
 0x3e8   :  { %3127 = vst [vmem:[%s6988_s4 + $0x40] sm:$0xff] %v2770_v53 }
 0x3e9   :  { %3710 = vmatmul.lmr.bf16.gmra.8.mxu0 }
 0x3ec   :  { %v2850_v44 = vpop.f32.mrf.mxu1 }
 0x3ed   :  { %v2771_v51 = vpop.f32.mrf.mxu3  ;;  %v6830_v49 = vpop.f32.mrf.mxu2 }
 0x3ee   :  { %v2772_v26 = vadd.f32 %v2771_v51, %v2744_v10  ;;  %v2827_v30 = vpop.f32.mrf.mxu0 }
 0x3ef   :  { %3751 = vmatmul.lmr.bf16.gmra.8.mxu1 }
 0x3f0   :  { %3131 = vst [vmem:[%s6988_s4 + $0x60] sm:$0xff] %v2772_v26 }
 0x3f1   :  { %3711 = vmatmul.lmr.bf16.gmra.8.mxu0 }
 0x3f2   :  { %2913 = vmatmul.bf16.gmra.mxu3 %v6280_v15  ;;  %3566 = vmatmul.msk.bf16.gmra.mxu2 %vm2658_vm7, %v6449_v45  ;;  %v2749_v45 = vadd.f32 %v6582_v41, %v2721_v36  ;;  %v2752_v41 = vadd.f32 %v6633_v21, %v2724_v31 }
 0x3f4   :  { %v2853_v27 = vpop.f32.mrf.mxu1 }
 0x3f5   :  { %v2774_v16 = vpop.f32.mrf.mxu3  ;;  %v6853_v34 = vpop.f32.mrf.mxu2 }
 0x3f6   :  { %v2775_v33 = vadd.f32 %v2774_v16, %v2747_v19  ;;  %v2830_v54 = vpop.f32.mrf.mxu0 }
 0x3f7   :  { %3752 = vmatmul.lmr.bf16.gmra.8.mxu1 }
 0x3f8   :  { %3135 = vst [vmem:[%s6988_s4 + $0x80] sm:$0xff] %v2775_v33 }
 0x3f9   :  { %3712 = vmatmul.lmr.bf16.gmra.8.mxu0 }
 0x3fd   :  { %v2776_v22 = vpop.f32.mrf.mxu3  ;;  %v6861_v59 = vpop.f32.mrf.mxu2 }
 0x3fe   :  { %v2777_v38 = vadd.f32 %v2776_v22, %v2749_v45  ;;  %v2832_v40 = vpop.f32.mrf.mxu0 }
 0x3ff   :  { %3753 = vmatmul.lmr.bf16.gmra.8.mxu1 }
 0x400   :  { %3139 = vst [vmem:[%s6988_s4 + $0xa0] sm:$0xff] %v2777_v38 }
 0x402   :  { %2918 = vmatmul.bf16.gmra.mxu3 %v6371_v18  ;;  %3567 = vmatmul.msk.bf16.gmra.mxu2 %vm2658_vm7, %v6495_v4  ;;  %v2855_v4 = vpop.f32.mrf.mxu1 }
 0x405   :  { %v2779_v9 = vpop.f32.mrf.mxu3  ;;  %v6872_v13 = vpop.f32.mrf.mxu2 }
 0x406   :  { %v2780_v23 = vadd.f32 %v2779_v9, %v2752_v41  ;;  %v2835_v61 = vpop.f32.mrf.mxu0 }
 0x407   :  { %3754 = vmatmul.lmr.bf16.gmra.8.mxu1 }
 0x408   :  { %3143 = vst [vmem:[%s6988_s4 + $0xc0] sm:$0x1] %v2780_v23 }
 0x40a   :  { %v2858_v52 = vpop.f32.mrf.mxu1 }
 0x40d   :  { %v2781_v48 = vpop.f32.mrf.mxu3  ;;  %v2893_v24 = vpop.f32.mrf.mxu2 }
 0x40e   :  { %v2837_v50 = vpop.f32.mrf.mxu0 }
 0x40f   :  { %3755 = vmatmul.lmr.bf16.gmra.8.mxu1 }
 0x412   :  { %3015 = vmatmul.bf16.vlgmr.msrb.gmra.mxu3 %v6215_v57  ;;  %v2860_v37 = vpop.f32.mrf.mxu1 }
 0x415   :  { %v2792_v21 = vpop.f32.mrf.mxu3  ;;  %v6878_v12 = vpop.f32.mrf.mxu2 }
 0x416   :  { %v2821_v3 = vadd.f32 %v2820_v56, %v2792_v21  ;;  %v2932_v28 = vpop.f32.mrf.mxu0 }
 0x417   :  { %3756 = vmatmul.lmr.bf16.gmra.8.mxu1 }
 0x418   :  { %v2849_v55 = vadd.f32 %v2848_v46, %v2821_v3 }
 0x41a   :  { %v2877_v39 = vadd.f32 %v6745_v7, %v2849_v55  ;;  %v2863_v6 = vpop.f32.mrf.mxu1 }
 0x41c   :  { %3120 = vst [vmem:[%s6988_s4 + $0x8] sm:$0xff] %v2877_v39 }
 0x41d   :  { %v2794_v35 = vpop.f32.mrf.mxu3  ;;  %v6884_v1 = vpop.f32.mrf.mxu2 }
 0x41e   :  { %v2823_v57 = vadd.f32 %v2822_v47, %v2794_v35  ;;  %v2934_v29 = vpop.f32.mrf.mxu0 }
 0x41f   :  { %3757 = vmatmul.lmr.bf16.gmra.8.mxu1 }
 0x420   :  { %v2851_v53 = vadd.f32 %v2850_v44, %v2823_v57 }
 0x422   :  { %v2879_v11 = vadd.f32 %v6775_v32, %v2851_v53  ;;  %3020 = vmatmul.bf16.gmra.mxu3 %v6277_v8  ;;  %v2865_v5 = vpop.f32.mrf.mxu1 }
 0x424   :  { %3124 = vst [vmem:[%s6988_s4 + $0x28] sm:$0xff] %v2879_v11 }
 0x425   :  { %v2797_v7 = vpop.f32.mrf.mxu3  ;;  %v6891_v0 = vpop.f32.mrf.mxu2 }
 0x426   :  { %v2826_v42 = vadd.f32 %v2825_v25, %v2797_v7  ;;  %v2937_v36 = vpop.f32.mrf.mxu0 }
 0x428   :  { %v2854_v62 = vadd.f32 %v2853_v27, %v2826_v42 }
 0x42a   :  { %v2882_v58 = vadd.f32 %v6804_v20, %v2854_v62  ;;  %v2960_v60 = vpop.f32.mrf.mxu1 }
 0x42c   :  { %3128 = vst [vmem:[%s6988_s4 + $0x48] sm:$0xff] %v2882_v58 }
 0x42d   :  { %v2799_v8 = vpop.f32.mrf.mxu3  ;;  %v6897_v32 = vpop.f32.mrf.mxu2 }
 0x42e   :  { %v2828_v14 = vadd.f32 %v2827_v30, %v2799_v8 }
 0x430   :  { %v2856_v10 = vadd.f32 %v2855_v4, %v2828_v14 }
 0x432   :  { %v2884_v51 = vadd.f32 %v6830_v49, %v2856_v10  ;;  %3025 = vmatmul.bf16.gmra.mxu3 %v6280_v15  ;;  %v2962_v19 = vpop.f32.mrf.mxu1 }
 0x434   :  { %3132 = vst [vmem:[%s6988_s4 + $0x68] sm:$0xff] %v2884_v51 }
 0x435   :  { %v2802_v20 = vpop.f32.mrf.mxu3  ;;  %v6904_v2 = vpop.f32.mrf.mxu2 }
 0x436   :  { %v2831_v63 = vadd.f32 %v2830_v54, %v2802_v20 }
 0x438   :  { %v2859_v26 = vadd.f32 %v2858_v52, %v2831_v63 }
 0x43a   :  { %v2887_v17 = vadd.f32 %v6853_v34, %v2859_v26  ;;  %v2965_v45 = vpop.f32.mrf.mxu1 }
 0x43c   :  { %3136 = vst [vmem:[%s6988_s4 + $0x88] sm:$0xff] %v2887_v17 }
 0x43d   :  { %v2804_v49 = vpop.f32.mrf.mxu3  ;;  %v6910_v43 = vpop.f32.mrf.mxu2 }
 0x43e   :  { %v2833_v15 = vadd.f32 %v2832_v40, %v2804_v49 }
 0x440   :  { %v2861_v16 = vadd.f32 %v2860_v37, %v2833_v15 }
 0x442   :  { %v2889_v33 = vadd.f32 %v6861_v59, %v2861_v16  ;;  %3030 = vmatmul.bf16.gmra.mxu3 %v6371_v18  ;;  %v2939_v18 = vpop.f32.mrf.mxu0  ;;  %v2967_v47 = vpop.f32.mrf.mxu1 }
 0x444   :  { %3140 = vst [vmem:[%s6988_s4 + $0xa8] sm:$0xff] %v2889_v33 }
 0x445   :  { %v2807_v34 = vpop.f32.mrf.mxu3  ;;  %v6917_v56 = vpop.f32.mrf.mxu2 }
 0x446   :  { %v2836_v46 = vadd.f32 %v2835_v61, %v2807_v34 }
 0x448   :  { %v2864_v22 = vadd.f32 %v2863_v6, %v2836_v46 }
 0x44a   :  { %v2892_v31 = vadd.f32 %v6872_v13, %v2864_v22  ;;  %v2942_v23 = vpop.f32.mrf.mxu0  ;;  %v2970_v25 = vpop.f32.mrf.mxu1 }
 0x44c   :  { %3144 = vst [vmem:[%s6988_s4 + $0xc8] sm:$0x1] %v2892_v31 }
 0x44d   :  { %v2809_v59 = vpop.f32.mrf.mxu3  ;;  %v3005_v38 = vpop.f32.mrf.mxu2 }
 0x452   :  { %v2944_v4 = vpop.f32.mrf.mxu0  ;;  %v2972_v21 = vpop.f32.mrf.mxu1 }
 0x455   :  { %v2904_v44 = vpop.f32.mrf.mxu3  ;;  %v6923_v41 = vpop.f32.mrf.mxu2 }
 0x456   :  { %v2933_v9 = vadd.f32 %v2932_v28, %v2904_v44 }
 0x458   :  { %v2961_v27 = vadd.f32 %v2960_v60, %v2933_v9 }
 0x45a   :  { %v2989_v48 = vadd.f32 %v6878_v12, %v2961_v27  ;;  %v2947_v39 = vpop.f32.mrf.mxu0  ;;  %v2975_v35 = vpop.f32.mrf.mxu1 }
 0x45c   :  { %3121 = vst [vmem:[%s6988_s4 + $0x10] sm:$0xff] %v2989_v48 }
 0x45d   :  { %v2906_v13 = vpop.f32.mrf.mxu3  ;;  %v6929_v24 = vpop.f32.mrf.mxu2 }
 0x45e   :  { %v2935_v30 = vadd.f32 %v2934_v29, %v2906_v13 }
 0x460   :  { %v2963_v3 = vadd.f32 %v2962_v19, %v2935_v30 }
 0x462   :  { %v2991_v54 = vadd.f32 %v6884_v1, %v2963_v3  ;;  %v2949_v1 = vpop.f32.mrf.mxu0  ;;  %v2977_v7 = vpop.f32.mrf.mxu1 }
 0x464   :  { %3125 = vst [vmem:[%s6988_s4 + $0x30] sm:$0xff] %v2991_v54 }
 0x465   :  { %v2909_v52 = vpop.f32.mrf.mxu3  ;;  %v3105_v55 = vpop.f32.mrf.mxu2 }
 0x466   :  { %v2938_v12 = vadd.f32 %v2937_v36, %v2909_v52 }
 0x468   :  { %v2966_v57 = vadd.f32 %v2965_v45, %v2938_v12 }
 0x46a   :  { %v2994_v40 = vadd.f32 %v6891_v0, %v2966_v57  ;;  %v3044_v0 = vpop.f32.mrf.mxu0  ;;  %v3072_v8 = vpop.f32.mrf.mxu1 }
 0x46c   :  { %3129 = vst [vmem:[%s6988_s4 + $0x50] sm:$0xff] %v2994_v40 }
 0x46d   :  { %v2911_v37 = vpop.f32.mrf.mxu3  ;;  %v3107_v53 = vpop.f32.mrf.mxu2 }
 0x46e   :  { %v2940_v11 = vadd.f32 %v2939_v18, %v2911_v37 }
 0x470   :  { %v2968_v42 = vadd.f32 %v2967_v47, %v2940_v11 }
 0x472   :  { %v2996_v61 = vadd.f32 %v6897_v32, %v2968_v42  ;;  %v3046_v32 = vpop.f32.mrf.mxu0  ;;  %v3074_v20 = vpop.f32.mrf.mxu1 }
 0x474   :  { %3133 = vst [vmem:[%s6988_s4 + $0x70] sm:$0xff] %v2996_v61 }
 0x475   :  { %v2914_v6 = vpop.f32.mrf.mxu3  ;;  %v3110_v62 = vpop.f32.mrf.mxu2 }
 0x476   :  { %v2943_v58 = vadd.f32 %v2942_v23, %v2914_v6 }
 0x478   :  { %v2971_v14 = vadd.f32 %v2970_v25, %v2943_v58 }
 0x47a   :  { %v2999_v50 = vadd.f32 %v6904_v2, %v2971_v14  ;;  %v3049_v2 = vpop.f32.mrf.mxu0  ;;  %v3077_v49 = vpop.f32.mrf.mxu1 }
 0x47c   :  { %3137 = vst [vmem:[%s6988_s4 + $0x90] sm:$0xff] %v2999_v50 }
 0x47d   :  { %v2916_v5 = vpop.f32.mrf.mxu3  ;;  %v3112_v10 = vpop.f32.mrf.mxu2 }
 0x47e   :  { %v2945_v51 = vadd.f32 %v2944_v4, %v2916_v5 }
 0x480   :  { %v2973_v63 = vadd.f32 %v2972_v21, %v2945_v51 }
 0x482   :  { %v3001_v28 = vadd.f32 %v6910_v43, %v2973_v63  ;;  %v3051_v33 = vpop.f32.mrf.mxu0  ;;  %v3079_v43 = vpop.f32.mrf.mxu1 }
 0x484   :  { %3141 = vst [vmem:[%s6988_s4 + $0xb0] sm:$0xff] %v3001_v28 }
 0x485   :  { %v2919_v60 = vpop.f32.mrf.mxu3  ;;  %v3115_v26 = vpop.f32.mrf.mxu2 }
 0x486   :  { %v2948_v17 = vadd.f32 %v2947_v39, %v2919_v60 }
 0x488   :  { %v2976_v15 = vadd.f32 %v2975_v35, %v2948_v17 }
 0x48a   :  { %v3004_v29 = vadd.f32 %v6917_v56, %v2976_v15  ;;  %v3054_v36 = vpop.f32.mrf.mxu0  ;;  %v3082_v45 = vpop.f32.mrf.mxu1 }
 0x48c   :  { %3145 = vst [vmem:[%s6988_s4 + $0xd0] sm:$0x1] %v3004_v29 }
 0x48d   :  { %v2921_v19 = vpop.f32.mrf.mxu3  ;;  %v3117_v16 = vpop.f32.mrf.mxu2 }
 0x492   :  { %v3056_v38 = vpop.f32.mrf.mxu0  ;;  %v3084_v18 = vpop.f32.mrf.mxu1 }
 0x495   :  { %v3016_v34 = vpop.f32.mrf.mxu3 }
 0x496   :  { %v3045_v46 = vadd.f32 %v3044_v0, %v3016_v34 }
 0x498   :  { %v3073_v22 = vadd.f32 %v3072_v8, %v3045_v46 }
 0x49a   :  { %v3101_v31 = vadd.f32 %v6923_v41, %v3073_v22  ;;  %v3059_v41 = vpop.f32.mrf.mxu0  ;;  %v3087_v25 = vpop.f32.mrf.mxu1 }
 0x49c   :  { %3122 = vst.msk [vmem:[%s6988_s4 + $0x18] sm:$0xff] %vm2658_vm7, %v3101_v31 }
 0x49d   :  { %v3018_v56 = vpop.f32.mrf.mxu3 }
 0x49e   :  { %v3047_v59 = vadd.f32 %v3046_v32, %v3018_v56 }
 0x4a0   :  { %v3075_v47 = vadd.f32 %v3074_v20, %v3047_v59 }
 0x4a2   :  { %v3103_v44 = vadd.f32 %v6929_v24, %v3075_v47  ;;  %v3061_v4 = vpop.f32.mrf.mxu0  ;;  %v3089_v24 = vpop.f32.mrf.mxu1 }
 0x4a4   :  { %3126 = vst.msk [vmem:[%s6988_s4 + $0x38] sm:$0xff] %vm2658_vm7, %v3103_v44 }
 0x4a5   :  { %v3021_v9 = vpop.f32.mrf.mxu3 }
 0x4a6   :  { %v3050_v23 = vadd.f32 %v3049_v2, %v3021_v9 }
 0x4a8   :  { %v3078_v27 = vadd.f32 %v3077_v49, %v3050_v23 }
 0x4aa   :  { %v3106_v48 = vadd.f32 %v3105_v55, %v3078_v27 }
 0x4ac   :  { %3130 = vst.msk [vmem:[%s6988_s4 + $0x58] sm:$0xff] %vm2658_vm7, %v3106_v48 }
 0x4ad   :  { %v3023_v13 = vpop.f32.mrf.mxu3 }
 0x4ae   :  { %v3052_v30 = vadd.f32 %v3051_v33, %v3023_v13 }
 0x4b0   :  { %v3080_v21 = vadd.f32 %v3079_v43, %v3052_v30 }
 0x4b2   :  { %v3108_v3 = vadd.f32 %v3107_v53, %v3080_v21 }
 0x4b4   :  { %3134 = vst.msk [vmem:[%s6988_s4 + $0x78] sm:$0xff] %vm2658_vm7, %v3108_v3 }
 0x4b5   :  { %v3026_v54 = vpop.f32.mrf.mxu3 }
 0x4b6   :  { %v3055_v52 = vadd.f32 %v3054_v36, %v3026_v54 }
 0x4b8   :  { %v3083_v12 = vadd.f32 %v3082_v45, %v3055_v52 }
 0x4ba   :  { %v3111_v55 = vadd.f32 %v3110_v62, %v3083_v12 }
 0x4bc   :  { %3138 = vst.msk [vmem:[%s6988_s4 + $0x98] sm:$0xff] %vm2658_vm7, %v3111_v55 }
 0x4bd   :  { %v3028_v39 = vpop.f32.mrf.mxu3 }
 0x4be   :  { %v3057_v35 = vadd.f32 %v3056_v38, %v3028_v39 }
 0x4c0   :  { %v3085_v57 = vadd.f32 %v3084_v18, %v3057_v35 }
 0x4c2   :  { %v3113_v40 = vadd.f32 %v3112_v10, %v3085_v57 }
 0x4c4   :  { %3142 = vst.msk [vmem:[%s6988_s4 + $0xb8] sm:$0xff] %vm2658_vm7, %v3113_v40 }
 0x4c5   :  { %v3031_v37 = vpop.f32.mrf.mxu3 }
 0x4c6   :  { %v3060_v53 = vadd.f32 %v3059_v41, %v3031_v37 }
 0x4c8   :  { %v3088_v11 = vadd.f32 %v3087_v25, %v3060_v53 }
 0x4ca   :  { %v3116_v1 = vadd.f32 %v3115_v26, %v3088_v11 }
 0x4cc   :  { %3147 = vst.msk [vmem:[%s6988_s4 + $0xd8] sm:$0x1] %vm3146_vm8, %v3116_v1 }
 0x4cd   :  { %v3033_v7 = vpop.f32.mrf.mxu3 }

</bundles_post_ra>
